<compile_context>
chip_gen: v5e
topology: v5e:2x2
jax: 0.10.0
libtpu: 0.0.40
codegen_flags: <defaults>
</compile_context>

<pallas_src>
import functools
import math

import jax
import jax.numpy as jnp
from jax.experimental import pallas as pl
from jax.experimental.pallas import tpu as pltpu


# ----------------------------------------------------------------------------
# Fused kernel: L bidirectional LSTM layers + LayerNorm + MLP head.
# ----------------------------------------------------------------------------
def _fused_lstm_head_kernel(*refs, T, B, H, L):
    """Ref layout (all full-array VMEM, no grid):
      refs[0]                       x_flat  (T*B, D0) f32, time-major
      refs[1+4l : 5+4l]             layer l: w_ih (D_l, 8H) bf16  [fwd 4H | bwd 4H]
                                             w_hh_f (H, 4H) bf16
                                             w_hh_r (H, 4H) bf16
                                             bias   (1, 8H) f32   (b_ih + b_hh)
      next 8                        ln_g, ln_b (1,2H); fc1_w (2H,H), fc1_b (1,H);
                                    fc2_w (H,H), fc2_b (1,H); fc3_w (H,O), fc3_b (1,O)
      next 1                        out_ref (B, O) f32
      scratch                       xg_sc (T*B, 8H) f32, seq_sc (T*B, 2H) f32
    """
    G = 4 * H
    x_ref = refs[0]
    idx = 1
    layer_refs = []
    for _ in range(L):
        layer_refs.append(refs[idx:idx + 4])
        idx += 4
    (ln_g_ref, ln_b_ref, w1_ref, b1_ref, w2_ref, b2_ref,
     w3_ref, b3_ref) = refs[idx:idx + 8]
    idx += 8
    out_ref = refs[idx]
    xg_sc, seq_sc = refs[idx + 1], refs[idx + 2]

    def run_layer(x_in, wih_ref, whhf_ref, whhr_ref, b_ref, write_seq):
        # Hoisted input projection: one (T*B, D) @ (D, 8H) matmul + bias, done once
        # per layer, off the serial recurrent critical path.
        xg_sc[...] = (
            jnp.dot(x_in.astype(jnp.bfloat16), wih_ref[...],
                    preferred_element_type=jnp.float32)
            + b_ref[...])
        w_f = whhf_ref[...]                       # (H, 4H) bf16, loaded once
        w_r = whhr_ref[...]
        z = jnp.zeros((B, H), jnp.float32)
        h_f, c_f, h_r, c_r = z, z, z, z
        h_r_first = z
        # Fully unrolled (T static) fused fwd+bwd recurrence: the two independent
        # chains interleave their MXU / EUP work within each step.
        for s in range(T):
            tf = s              # forward-direction time index
            tr = T - 1 - s      # backward-direction time index
            g_f = xg_sc[tf * B:(tf + 1) * B, 0:G] + jnp.dot(
                h_f.astype(jnp.bfloat16), w_f, preferred_element_type=jnp.float32)
            g_r = xg_sc[tr * B:(tr + 1) * B, G:2 * G] + jnp.dot(
                h_r.astype(jnp.bfloat16), w_r, preferred_element_type=jnp.float32)
            # Nonlinearities on the full (B, 4H) gate vregs (EUP), slice afterwards.
            sg_f = jax.nn.sigmoid(g_f)
            th_f = jnp.tanh(g_f)
            sg_r = jax.nn.sigmoid(g_r)
            th_r = jnp.tanh(g_r)
            # gate order (i, f, g, o), f32 elementwise state update
            c_f = sg_f[:, H:2 * H] * c_f + sg_f[:, 0:H] * th_f[:, 2 * H:3 * H]
            c_r = sg_r[:, H:2 * H] * c_r + sg_r[:, 0:H] * th_r[:, 2 * H:3 * H]
            h_f = sg_f[:, 3 * H:4 * H] * jnp.tanh(c_f)
            h_r = sg_r[:, 3 * H:4 * H] * jnp.tanh(c_r)
            if write_seq:
                # Layer output (time-major): row t = [h_fwd(t) | h_bwd(t)].
                seq_sc[tf * B:(tf + 1) * B, 0:H] = h_f
                seq_sc[tr * B:(tr + 1) * B, H:2 * H] = h_r
            if s == 0:
                h_r_first = h_r   # backward hidden at t = T-1 (needed by the head)
        return h_f, h_r_first

    cur = x_ref[...]
    h_f_fin = h_r_fin = None
    for l in range(L):
        wih_ref, whhf_ref, whhr_ref, b_ref = layer_refs[l]
        last_layer = (l == L - 1)
        h_f_fin, h_r_fin = run_layer(cur, wih_ref, whhf_ref, whhr_ref, b_ref,
                                     write_seq=not last_layer)
        if not last_layer:
            cur = seq_sc[...]     # (T*B, 2H) feeds the next layer (VMEM resident)
        # TODO(synk): inter-layer LSTM dropout is training-only; identity in eval.

    # lstm_out[:, -1, :] = [h_fwd(T-1) | h_bwd(T-1)]
    last = jnp.concatenate([h_f_fin, h_r_fin], axis=1)          # (B, 2H)

    # LayerNorm(2H) on the last timestep (row-wise, identical to LN of full seq).
    mean = jnp.mean(last, axis=-1, keepdims=True)
    var = jnp.mean((last - mean) ** 2, axis=-1, keepdims=True)
    ln = (last - mean) * jax.lax.rsqrt(var + 1e-5) * ln_g_ref[...] + ln_b_ref[...]

    # MLP head (dropout = identity in eval mode).
    h1 = jnp.maximum(
        jnp.dot(ln, w1_ref[...], preferred_element_type=jnp.float32) + b1_ref[...],
        0.0)
    h2 = jnp.maximum(
        jnp.dot(h1, w2_ref[...], preferred_element_type=jnp.float32) + b2_ref[...]
        + ln[:, 0:H], 0.0)
    out_ref[...] = (
        jnp.dot(h2, w3_ref[...], preferred_element_type=jnp.float32) + b3_ref[...])


# ----------------------------------------------------------------------------
# Wrapper: one pallas_call for the whole forward pass.
# ----------------------------------------------------------------------------
def lstm_model_forward(x, kp, *, hidden_size, num_layers, output_size, input_size=4):
    B = x.shape[0]
    H = hidden_size
    x = x.reshape(B, -1, input_size).astype(jnp.float32)        # x.view(B, -1, 4)
    T = x.shape[1]
    x_flat = jnp.transpose(x, (1, 0, 2)).reshape(T * B, input_size)   # time-major

    args = [x_flat]
    for l in range(num_layers):
        lw = kp["lstm"][l]
        args += [lw["w_ih"], lw["w_hh_f"], lw["w_hh_r"], lw["b"]]
    args += [kp["ln_g"], kp["ln_b"], kp["fc1_w"], kp["fc1_b"],
             kp["fc2_w"], kp["fc2_b"], kp["fc3_w"], kp["fc3_b"]]

    vmem = pl.BlockSpec(memory_space=pltpu.MemorySpace.VMEM)
    kernel = functools.partial(_fused_lstm_head_kernel, T=T, B=B, H=H, L=num_layers)
    return pl.pallas_call(
        kernel,
        out_shape=jax.ShapeDtypeStruct((B, output_size), jnp.float32),
        in_specs=[vmem] * len(args),
        out_specs=vmem,
        scratch_shapes=[
            pltpu.VMEM((T * B, 8 * H), jnp.float32),   # hoisted input projections
            pltpu.VMEM((T * B, 2 * H), jnp.float32),   # inter-layer activations
        ],
    )(*args)


# ----------------------------------------------------------------------------
# One-time parameter prep: transpose / stack / combine into MXU-friendly layouts.
# ----------------------------------------------------------------------------
def prepare_kernel_params(params, *, hidden_size, output_size):
    H = hidden_size
    kp = {"lstm": []}
    for lw in params["lstm"]:
        w_ih = jnp.concatenate(
            [jnp.asarray(lw["w_ih_f"], jnp.float32).T,
             jnp.asarray(lw["w_ih_r"], jnp.float32).T], axis=1)        # (D, 8H)
        b = jnp.concatenate(
            [jnp.asarray(lw["b_ih_f"], jnp.float32) + jnp.asarray(lw["b_hh_f"], jnp.float32),
             jnp.asarray(lw["b_ih_r"], jnp.float32) + jnp.asarray(lw["b_hh_r"], jnp.float32)],
        ).reshape(1, 8 * H)
        kp["lstm"].append({
            "w_ih": w_ih.astype(jnp.bfloat16),
            "w_hh_f": jnp.asarray(lw["w_hh_f"], jnp.float32).T.astype(jnp.bfloat16),
            "w_hh_r": jnp.asarray(lw["w_hh_r"], jnp.float32).T.astype(jnp.bfloat16),
            "b": b,
        })
    kp["ln_g"] = jnp.asarray(params["ln_g"], jnp.float32).reshape(1, 2 * H)
    kp["ln_b"] = jnp.asarray(params["ln_b"], jnp.float32).reshape(1, 2 * H)
    kp["fc1_w"] = jnp.asarray(params["fc1_w"], jnp.float32).T     # (2H, H)
    kp["fc1_b"] = jnp.asarray(params["fc1_b"], jnp.float32).reshape(1, H)
    kp["fc2_w"] = jnp.asarray(params["fc2_w"], jnp.float32).T     # (H, H)
    kp["fc2_b"] = jnp.asarray(params["fc2_b"], jnp.float32).reshape(1, H)
    kp["fc3_w"] = jnp.asarray(params["fc3_w"], jnp.float32).T     # (H, O)
    kp["fc3_b"] = jnp.asarray(params["fc3_b"], jnp.float32).reshape(1, output_size)
    return kp


# ----------------------------------------------------------------------------
# Deterministic parameter initialization (PyTorch-style uniform bounds, PT layout).
# ----------------------------------------------------------------------------
def init_params(key, *, input_size, hidden_size, num_layers, output_size):
    H = hidden_size
    k_lstm = 1.0 / math.sqrt(H)

    def uni(k, shape, bound):
        return jax.random.uniform(k, shape, jnp.float32, -bound, bound)

    params = {"lstm": []}
    for layer in range(num_layers):
        d_in = input_size if layer == 0 else 2 * H
        keys = jax.random.split(jax.random.fold_in(key, layer), 8)
        params["lstm"].append({
            "w_ih_f": uni(keys[0], (4 * H, d_in), k_lstm),
            "w_hh_f": uni(keys[1], (4 * H, H), k_lstm),
            "b_ih_f": uni(keys[2], (4 * H,), k_lstm),
            "b_hh_f": uni(keys[3], (4 * H,), k_lstm),
            "w_ih_r": uni(keys[4], (4 * H, d_in), k_lstm),
            "w_hh_r": uni(keys[5], (4 * H, H), k_lstm),
            "b_ih_r": uni(keys[6], (4 * H,), k_lstm),
            "b_hh_r": uni(keys[7], (4 * H,), k_lstm),
        })

    hk = jax.random.split(jax.random.fold_in(key, 1000), 6)
    params["ln_g"] = jnp.ones((2 * H,), jnp.float32)
    params["ln_b"] = jnp.zeros((2 * H,), jnp.float32)
    k1 = 1.0 / math.sqrt(2 * H)
    k2 = 1.0 / math.sqrt(H)
    params["fc1_w"] = uni(hk[0], (H, 2 * H), k1)
    params["fc1_b"] = uni(hk[1], (H,), k1)
    params["fc2_w"] = uni(hk[2], (H, H), k2)
    params["fc2_b"] = uni(hk[3], (H,), k2)
    params["fc3_w"] = uni(hk[4], (output_size, H), k2)
    params["fc3_b"] = uni(hk[5], (output_size,), k2)
    return params


# ----------------------------------------------------------------------------
# Pure-JAX f32 reference of the PyTorch forward (for validation).
# ----------------------------------------------------------------------------
def reference_forward(x, params, *, hidden_size, num_layers, output_size, input_size=4):
    B = x.shape[0]
    H = hidden_size
    x = x.reshape(B, -1, input_size).astype(jnp.float32)        # (B, T, D)

    def run_dir(x_seq, w_ih, w_hh, b_ih, b_hh, reverse):
        def cell(carry, x_t):
            h, c = carry
            gates = x_t @ w_ih.T + b_ih + h @ w_hh.T + b_hh
            i = jax.nn.sigmoid(gates[:, 0 * H:1 * H])
            f = jax.nn.sigmoid(gates[:, 1 * H:2 * H])
            g = jnp.tanh(gates[:, 2 * H:3 * H])
            o = jax.nn.sigmoid(gates[:, 3 * H:4 * H])
            c = f * c + i * g
            h = o * jnp.tanh(c)
            return (h, c), h
        xs = jnp.transpose(x_seq, (1, 0, 2))
        if reverse:
            xs = xs[::-1]
        z = jnp.zeros((x_seq.shape[0], H), jnp.float32)
        _, hs = jax.lax.scan(cell, (z, z), xs)
        if reverse:
            hs = hs[::-1]
        return jnp.transpose(hs, (1, 0, 2))

    inp = x
    for lw in params["lstm"]:
        hf = run_dir(inp, lw["w_ih_f"], lw["w_hh_f"], lw["b_ih_f"], lw["b_hh_f"], False)
        hb = run_dir(inp, lw["w_ih_r"], lw["w_hh_r"], lw["b_ih_r"], lw["b_hh_r"], True)
        inp = jnp.concatenate([hf, hb], axis=-1)
    last = inp[:, -1, :]
    mean = jnp.mean(last, -1, keepdims=True)
    var = jnp.mean((last - mean) ** 2, -1, keepdims=True)
    ln = (last - mean) * jax.lax.rsqrt(var + 1e-5) * params["ln_g"] + params["ln_b"]
    h1 = jax.nn.relu(ln @ params["fc1_w"].T + params["fc1_b"])
    h2 = jax.nn.relu(h1 @ params["fc2_w"].T + params["fc2_b"] + ln[:, :H])
    return h2 @ params["fc3_w"].T + params["fc3_b"]


if __name__ == "__main__":
    INPUT_SIZE = 4      # forced by x.view(B, -1, 4)
    HIDDEN = 32
    LAYERS = 2
    OUT = 8
    B, FEAT = 2, 64     # x: (2, 64) -> view -> (2, 16, 4), T = 16

    key = jax.random.PRNGKey(0)
    x = jax.random.normal(jax.random.fold_in(key, 7), (B, FEAT), jnp.float32)
    params = init_params(key, input_size=INPUT_SIZE, hidden_size=HIDDEN,
                         num_layers=LAYERS, output_size=OUT)
    kparams = prepare_kernel_params(params, hidden_size=HIDDEN, output_size=OUT)

    fwd = jax.jit(functools.partial(lstm_model_forward, hidden_size=HIDDEN,
                                    num_layers=LAYERS, output_size=OUT,
                                    input_size=INPUT_SIZE))
    out = fwd(x, kparams)
    jax.block_until_ready(out)
    assert out.shape == (B, OUT), out.shape
    assert bool(jnp.all(jnp.isfinite(out)))

    # Validate against the pure-JAX f32 reference (relaxed tolerance: LSTM matmul
    # operands are bf16 on the MXU with f32 accumulation).
    ref = reference_forward(x, params, hidden_size=HIDDEN, num_layers=LAYERS,
                            output_size=OUT, input_size=INPUT_SIZE)
    max_err = float(jnp.max(jnp.abs(out - ref)))
    assert max_err < 1e-1, max_err
    print("KERNEL_OK")
</pallas_src>

<mosaic_0001>
module attributes {stable_mosaic.version = 11 : i64} {
  func.func @_fused_lstm_head_kernel(%arg0: memref<32x4xf32, #tpu.memory_space<vmem>>, %arg1: memref<4x256xbf16, #tpu.memory_space<vmem>>, %arg2: memref<32x128xbf16, #tpu.memory_space<vmem>>, %arg3: memref<32x128xbf16, #tpu.memory_space<vmem>>, %arg4: memref<1x256xf32, #tpu.memory_space<vmem>>, %arg5: memref<64x256xbf16, #tpu.memory_space<vmem>>, %arg6: memref<32x128xbf16, #tpu.memory_space<vmem>>, %arg7: memref<32x128xbf16, #tpu.memory_space<vmem>>, %arg8: memref<1x256xf32, #tpu.memory_space<vmem>>, %arg9: memref<1x64xf32, #tpu.memory_space<vmem>>, %arg10: memref<1x64xf32, #tpu.memory_space<vmem>>, %arg11: memref<64x32xf32, #tpu.memory_space<vmem>>, %arg12: memref<1x32xf32, #tpu.memory_space<vmem>>, %arg13: memref<32x32xf32, #tpu.memory_space<vmem>>, %arg14: memref<1x32xf32, #tpu.memory_space<vmem>>, %arg15: memref<32x8xf32, #tpu.memory_space<vmem>>, %arg16: memref<1x8xf32, #tpu.memory_space<vmem>>, %arg17: memref<2x8xf32, #tpu.memory_space<vmem>>, %arg18: memref<32x256xf32, #tpu.memory_space<vmem>>, %arg19: memref<32x64xf32, #tpu.memory_space<vmem>>) attributes {dimension_semantics = [], scalar_prefetch = 0 : i64, scratch_operands = 2 : i64, tpu.core_type = #tpu.core_type<tc>} {
    %c0 = arith.constant 0 : index
    %c0_0 = arith.constant 0 : index
    %0 = vector.load %arg0[%c0, %c0_0] : memref<32x4xf32, #tpu.memory_space<vmem>>, vector<32x4xf32>
    %1 = arith.truncf %0 : vector<32x4xf32> to vector<32x4xbf16>
    %c0_1 = arith.constant 0 : index
    %c0_2 = arith.constant 0 : index
    %2 = vector.load %arg1[%c0_1, %c0_2] : memref<4x256xbf16, #tpu.memory_space<vmem>>, vector<4x256xbf16>
    %cst = arith.constant dense<0.000000e+00> : vector<32x256xf32>
    %3 = tpu.matmul %1, %2, %cst {dimension_numbers = #tpu.dot_dimension_numbers<[1], [0], [0], [1], [0, 0, 1, 1], [], []>} : vector<32x4xbf16>, vector<4x256xbf16>, vector<32x256xf32> -> vector<32x256xf32>
    %c0_3 = arith.constant 0 : index
    %c0_4 = arith.constant 0 : index
    %4 = vector.load %arg4[%c0_3, %c0_4] : memref<1x256xf32, #tpu.memory_space<vmem>>, vector<1x256xf32>
    %5 = vector.broadcast %4 : vector<1x256xf32> to vector<32x256xf32>
    %6 = arith.addf %3, %5 : vector<32x256xf32>
    %c0_5 = arith.constant 0 : index
    %c0_6 = arith.constant 0 : index
    %7 = vector.load %arg18[%c0_5, %c0_6] : memref<32x256xf32, #tpu.memory_space<vmem>>, vector<32x256xf32>
    tpu.vector_store %arg18[%c0_5, %c0_6], %6 {strides = array<i32>} : memref<32x256xf32, #tpu.memory_space<vmem>>, vector<32x256xf32>,
    %c0_7 = arith.constant 0 : index
    %c0_8 = arith.constant 0 : index
    %8 = vector.load %arg2[%c0_7, %c0_8] : memref<32x128xbf16, #tpu.memory_space<vmem>>, vector<32x128xbf16>
    %c0_9 = arith.constant 0 : index
    %c0_10 = arith.constant 0 : index
    %9 = vector.load %arg3[%c0_9, %c0_10] : memref<32x128xbf16, #tpu.memory_space<vmem>>, vector<32x128xbf16>
    %cst_11 = arith.constant 0.000000e+00 : f32
    %10 = vector.broadcast %cst_11 : f32 to vector<2x32xf32>
    %c0_12 = arith.constant 0 : index
    %c0_13 = arith.constant 0 : index
    %11 = vector.load %arg18[%c0_12, %c0_13] : memref<32x256xf32, #tpu.memory_space<vmem>>, vector<2x128xf32>
    %12 = arith.truncf %10 : vector<2x32xf32> to vector<2x32xbf16>
    %cst_14 = arith.constant dense<0.000000e+00> : vector<2x128xf32>
    %13 = tpu.matmul %12, %8, %cst_14 {dimension_numbers = #tpu.dot_dimension_numbers<[1], [0], [0], [1], [0, 0, 1, 1], [], []>} : vector<2x32xbf16>, vector<32x128xbf16>, vector<2x128xf32> -> vector<2x128xf32>
    %14 = arith.addf %11, %13 : vector<2x128xf32>
    %c30 = arith.constant 30 : index
    %c128 = arith.constant 128 : index
    %15 = vector.load %arg18[%c30, %c128] : memref<32x256xf32, #tpu.memory_space<vmem>>, vector<2x128xf32>
    %16 = arith.truncf %10 : vector<2x32xf32> to vector<2x32xbf16>
    %cst_15 = arith.constant dense<0.000000e+00> : vector<2x128xf32>
    %17 = tpu.matmul %16, %9, %cst_15 {dimension_numbers = #tpu.dot_dimension_numbers<[1], [0], [0], [1], [0, 0, 1, 1], [], []>} : vector<2x32xbf16>, vector<32x128xbf16>, vector<2x128xf32> -> vector<2x128xf32>
    %18 = arith.addf %15, %17 : vector<2x128xf32>
    %19 = arith.negf %14 : vector<2x128xf32>
    %20 = math.exp %19 : vector<2x128xf32>
    %cst_16 = arith.constant 1.000000e+00 : f32
    %21 = vector.broadcast %cst_16 : f32 to vector<2x128xf32>
    %22 = arith.addf %21, %20 : vector<2x128xf32>
    %23 = arith.divf %21, %22 : vector<2x128xf32>
    %24 = math.tanh %14 : vector<2x128xf32>
    %25 = arith.negf %18 : vector<2x128xf32>
    %26 = math.exp %25 : vector<2x128xf32>
    %cst_17 = arith.constant 1.000000e+00 : f32
    %27 = vector.broadcast %cst_17 : f32 to vector<2x128xf32>
    %28 = arith.addf %27, %26 : vector<2x128xf32>
    %29 = arith.divf %27, %28 : vector<2x128xf32>
    %30 = math.tanh %18 : vector<2x128xf32>
    %31 = vector.extract_strided_slice %23 {offsets = [0, 32], sizes = [2, 32], strides = [1, 1]} : vector<2x128xf32> to vector<2x32xf32>
    %32 = arith.mulf %31, %10 : vector<2x32xf32>
    %33 = vector.extract_strided_slice %23 {offsets = [0, 0], sizes = [2, 32], strides = [1, 1]} : vector<2x128xf32> to vector<2x32xf32>
    %34 = vector.extract_strided_slice %24 {offsets = [0, 64], sizes = [2, 32], strides = [1, 1]} : vector<2x128xf32> to vector<2x32xf32>
    %35 = arith.mulf %33, %34 : vector<2x32xf32>
    %36 = arith.addf %32, %35 : vector<2x32xf32>
    %37 = vector.extract_strided_slice %29 {offsets = [0, 32], sizes = [2, 32], strides = [1, 1]} : vector<2x128xf32> to vector<2x32xf32>
    %38 = arith.mulf %37, %10 : vector<2x32xf32>
    %39 = vector.extract_strided_slice %29 {offsets = [0, 0], sizes = [2, 32], strides = [1, 1]} : vector<2x128xf32> to vector<2x32xf32>
    %40 = vector.extract_strided_slice %30 {offsets = [0, 64], sizes = [2, 32], strides = [1, 1]} : vector<2x128xf32> to vector<2x32xf32>
    %41 = arith.mulf %39, %40 : vector<2x32xf32>
    %42 = arith.addf %38, %41 : vector<2x32xf32>
    %43 = vector.extract_strided_slice %23 {offsets = [0, 96], sizes = [2, 32], strides = [1, 1]} : vector<2x128xf32> to vector<2x32xf32>
    %44 = math.tanh %36 : vector<2x32xf32>
    %45 = arith.mulf %43, %44 : vector<2x32xf32>
    %46 = vector.extract_strided_slice %29 {offsets = [0, 96], sizes = [2, 32], strides = [1, 1]} : vector<2x128xf32> to vector<2x32xf32>
    %47 = math.tanh %42 : vector<2x32xf32>
    %48 = arith.mulf %46, %47 : vector<2x32xf32>
    %c0_18 = arith.constant 0 : index
    %c0_19 = arith.constant 0 : index
    %49 = vector.load %arg19[%c0_18, %c0_19] : memref<32x64xf32, #tpu.memory_space<vmem>>, vector<2x32xf32>
    tpu.vector_store %arg19[%c0_18, %c0_19], %45 {strides = array<i32>} : memref<32x64xf32, #tpu.memory_space<vmem>>, vector<2x32xf32>,
    %c30_20 = arith.constant 30 : index
    %c32 = arith.constant 32 : index
    %50 = vector.load %arg19[%c30_20, %c32] : memref<32x64xf32, #tpu.memory_space<vmem>>, vector<2x32xf32>
    tpu.vector_store %arg19[%c30_20, %c32], %48 {strides = array<i32>} : memref<32x64xf32, #tpu.memory_space<vmem>>, vector<2x32xf32>,
    %c2 = arith.constant 2 : index
    %c0_21 = arith.constant 0 : index
    %51 = vector.load %arg18[%c2, %c0_21] : memref<32x256xf32, #tpu.memory_space<vmem>>, vector<2x128xf32>
    %52 = arith.truncf %45 : vector<2x32xf32> to vector<2x32xbf16>
    %cst_22 = arith.constant dense<0.000000e+00> : vector<2x128xf32>
    %53 = tpu.matmul %52, %8, %cst_22 {dimension_numbers = #tpu.dot_dimension_numbers<[1], [0], [0], [1], [0, 0, 1, 1], [], []>} : vector<2x32xbf16>, vector<32x128xbf16>, vector<2x128xf32> -> vector<2x128xf32>
    %54 = arith.addf %51, %53 : vector<2x128xf32>
    %c28 = arith.constant 28 : index
    %c128_23 = arith.constant 128 : index
    %55 = vector.load %arg18[%c28, %c128_23] : memref<32x256xf32, #tpu.memory_space<vmem>>, vector<2x128xf32>
    %56 = arith.truncf %48 : vector<2x32xf32> to vector<2x32xbf16>
    %cst_24 = arith.constant dense<0.000000e+00> : vector<2x128xf32>
    %57 = tpu.matmul %56, %9, %cst_24 {dimension_numbers = #tpu.dot_dimension_numbers<[1], [0], [0], [1], [0, 0, 1, 1], [], []>} : vector<2x32xbf16>, vector<32x128xbf16>, vector<2x128xf32> -> vector<2x128xf32>
    %58 = arith.addf %55, %57 : vector<2x128xf32>
    %59 = arith.negf %54 : vector<2x128xf32>
    %60 = math.exp %59 : vector<2x128xf32>
    %cst_25 = arith.constant 1.000000e+00 : f32
    %61 = vector.broadcast %cst_25 : f32 to vector<2x128xf32>
    %62 = arith.addf %61, %60 : vector<2x128xf32>
    %63 = arith.divf %61, %62 : vector<2x128xf32>
    %64 = math.tanh %54 : vector<2x128xf32>
    %65 = arith.negf %58 : vector<2x128xf32>
    %66 = math.exp %65 : vector<2x128xf32>
    %cst_26 = arith.constant 1.000000e+00 : f32
    %67 = vector.broadcast %cst_26 : f32 to vector<2x128xf32>
    %68 = arith.addf %67, %66 : vector<2x128xf32>
    %69 = arith.divf %67, %68 : vector<2x128xf32>
    %70 = math.tanh %58 : vector<2x128xf32>
    %71 = vector.extract_strided_slice %63 {offsets = [0, 32], sizes = [2, 32], strides = [1, 1]} : vector<2x128xf32> to vector<2x32xf32>
    %72 = arith.mulf %71, %36 : vector<2x32xf32>
    %73 = vector.extract_strided_slice %63 {offsets = [0, 0], sizes = [2, 32], strides = [1, 1]} : vector<2x128xf32> to vector<2x32xf32>
    %74 = vector.extract_strided_slice %64 {offsets = [0, 64], sizes = [2, 32], strides = [1, 1]} : vector<2x128xf32> to vector<2x32xf32>
    %75 = arith.mulf %73, %74 : vector<2x32xf32>
    %76 = arith.addf %72, %75 : vector<2x32xf32>
    %77 = vector.extract_strided_slice %69 {offsets = [0, 32], sizes = [2, 32], strides = [1, 1]} : vector<2x128xf32> to vector<2x32xf32>
    %78 = arith.mulf %77, %42 : vector<2x32xf32>
    %79 = vector.extract_strided_slice %69 {offsets = [0, 0], sizes = [2, 32], strides = [1, 1]} : vector<2x128xf32> to vector<2x32xf32>
    %80 = vector.extract_strided_slice %70 {offsets = [0, 64], sizes = [2, 32], strides = [1, 1]} : vector<2x128xf32> to vector<2x32xf32>
    %81 = arith.mulf %79, %80 : vector<2x32xf32>
    %82 = arith.addf %78, %81 : vector<2x32xf32>
    %83 = vector.extract_strided_slice %63 {offsets = [0, 96], sizes = [2, 32], strides = [1, 1]} : vector<2x128xf32> to vector<2x32xf32>
    %84 = math.tanh %76 : vector<2x32xf32>
    %85 = arith.mulf %83, %84 : vector<2x32xf32>
    %86 = vector.extract_strided_slice %69 {offsets = [0, 96], sizes = [2, 32], strides = [1, 1]} : vector<2x128xf32> to vector<2x32xf32>
    %87 = math.tanh %82 : vector<2x32xf32>
    %88 = arith.mulf %86, %87 : vector<2x32xf32>
    %c2_27 = arith.constant 2 : index
    %c0_28 = arith.constant 0 : index
    %89 = vector.load %arg19[%c2_27, %c0_28] : memref<32x64xf32, #tpu.memory_space<vmem>>, vector<2x32xf32>
    tpu.vector_store %arg19[%c2_27, %c0_28], %85 {strides = array<i32>} : memref<32x64xf32, #tpu.memory_space<vmem>>, vector<2x32xf32>,
    %c28_29 = arith.constant 28 : index
    %c32_30 = arith.constant 32 : index
    %90 = vector.load %arg19[%c28_29, %c32_30] : memref<32x64xf32, #tpu.memory_space<vmem>>, vector<2x32xf32>
    tpu.vector_store %arg19[%c28_29, %c32_30], %88 {strides = array<i32>} : memref<32x64xf32, #tpu.memory_space<vmem>>, vector<2x32xf32>,
    %c4 = arith.constant 4 : index
    %c0_31 = arith.constant 0 : index
    %91 = vector.load %arg18[%c4, %c0_31] : memref<32x256xf32, #tpu.memory_space<vmem>>, vector<2x128xf32>
    %92 = arith.truncf %85 : vector<2x32xf32> to vector<2x32xbf16>
    %cst_32 = arith.constant dense<0.000000e+00> : vector<2x128xf32>
    %93 = tpu.matmul %92, %8, %cst_32 {dimension_numbers = #tpu.dot_dimension_numbers<[1], [0], [0], [1], [0, 0, 1, 1], [], []>} : vector<2x32xbf16>, vector<32x128xbf16>, vector<2x128xf32> -> vector<2x128xf32>
    %94 = arith.addf %91, %93 : vector<2x128xf32>
    %c26 = arith.constant 26 : index
    %c128_33 = arith.constant 128 : index
    %95 = vector.load %arg18[%c26, %c128_33] : memref<32x256xf32, #tpu.memory_space<vmem>>, vector<2x128xf32>
    %96 = arith.truncf %88 : vector<2x32xf32> to vector<2x32xbf16>
    %cst_34 = arith.constant dense<0.000000e+00> : vector<2x128xf32>
    %97 = tpu.matmul %96, %9, %cst_34 {dimension_numbers = #tpu.dot_dimension_numbers<[1], [0], [0], [1], [0, 0, 1, 1], [], []>} : vector<2x32xbf16>, vector<32x128xbf16>, vector<2x128xf32> -> vector<2x128xf32>
    %98 = arith.addf %95, %97 : vector<2x128xf32>
    %99 = arith.negf %94 : vector<2x128xf32>
    %100 = math.exp %99 : vector<2x128xf32>
    %cst_35 = arith.constant 1.000000e+00 : f32
    %101 = vector.broadcast %cst_35 : f32 to vector<2x128xf32>
    %102 = arith.addf %101, %100 : vector<2x128xf32>
    %103 = arith.divf %101, %102 : vector<2x128xf32>
    %104 = math.tanh %94 : vector<2x128xf32>
    %105 = arith.negf %98 : vector<2x128xf32>
    %106 = math.exp %105 : vector<2x128xf32>
    %cst_36 = arith.constant 1.000000e+00 : f32
    %107 = vector.broadcast %cst_36 : f32 to vector<2x128xf32>
    %108 = arith.addf %107, %106 : vector<2x128xf32>
    %109 = arith.divf %107, %108 : vector<2x128xf32>
    %110 = math.tanh %98 : vector<2x128xf32>
    %111 = vector.extract_strided_slice %103 {offsets = [0, 32], sizes = [2, 32], strides = [1, 1]} : vector<2x128xf32> to vector<2x32xf32>
    %112 = arith.mulf %111, %76 : vector<2x32xf32>
    %113 = vector.extract_strided_slice %103 {offsets = [0, 0], sizes = [2, 32], strides = [1, 1]} : vector<2x128xf32> to vector<2x32xf32>
    %114 = vector.extract_strided_slice %104 {offsets = [0, 64], sizes = [2, 32], strides = [1, 1]} : vector<2x128xf32> to vector<2x32xf32>
    %115 = arith.mulf %113, %114 : vector<2x32xf32>
    %116 = arith.addf %112, %115 : vector<2x32xf32>
    %117 = vector.extract_strided_slice %109 {offsets = [0, 32], sizes = [2, 32], strides = [1, 1]} : vector<2x128xf32> to vector<2x32xf32>
    %118 = arith.mulf %117, %82 : vector<2x32xf32>
    %119 = vector.extract_strided_slice %109 {offsets = [0, 0], sizes = [2, 32], strides = [1, 1]} : vector<2x128xf32> to vector<2x32xf32>
    %120 = vector.extract_strided_slice %110 {offsets = [0, 64], sizes = [2, 32], strides = [1, 1]} : vector<2x128xf32> to vector<2x32xf32>
    %121 = arith.mulf %119, %120 : vector<2x32xf32>
    %122 = arith.addf %118, %121 : vector<2x32xf32>
    %123 = vector.extract_strided_slice %103 {offsets = [0, 96], sizes = [2, 32], strides = [1, 1]} : vector<2x128xf32> to vector<2x32xf32>
    %124 = math.tanh %116 : vector<2x32xf32>
    %125 = arith.mulf %123, %124 : vector<2x32xf32>
    %126 = vector.extract_strided_slice %109 {offsets = [0, 96], sizes = [2, 32], strides = [1, 1]} : vector<2x128xf32> to vector<2x32xf32>
    %127 = math.tanh %122 : vector<2x32xf32>
    %128 = arith.mulf %126, %127 : vector<2x32xf32>
    %c4_37 = arith.constant 4 : index
    %c0_38 = arith.constant 0 : index
    %129 = vector.load %arg19[%c4_37, %c0_38] : memref<32x64xf32, #tpu.memory_space<vmem>>, vector<2x32xf32>
    tpu.vector_store %arg19[%c4_37, %c0_38], %125 {strides = array<i32>} : memref<32x64xf32, #tpu.memory_space<vmem>>, vector<2x32xf32>,
    %c26_39 = arith.constant 26 : index
    %c32_40 = arith.constant 32 : index
    %130 = vector.load %arg19[%c26_39, %c32_40] : memref<32x64xf32, #tpu.memory_space<vmem>>, vector<2x32xf32>
    tpu.vector_store %arg19[%c26_39, %c32_40], %128 {strides = array<i32>} : memref<32x64xf32, #tpu.memory_space<vmem>>, vector<2x32xf32>,
    %c6 = arith.constant 6 : index
    %c0_41 = arith.constant 0 : index
    %131 = vector.load %arg18[%c6, %c0_41] : memref<32x256xf32, #tpu.memory_space<vmem>>, vector<2x128xf32>
    %132 = arith.truncf %125 : vector<2x32xf32> to vector<2x32xbf16>
    %cst_42 = arith.constant dense<0.000000e+00> : vector<2x128xf32>
    %133 = tpu.matmul %132, %8, %cst_42 {dimension_numbers = #tpu.dot_dimension_numbers<[1], [0], [0], [1], [0, 0, 1, 1], [], []>} : vector<2x32xbf16>, vector<32x128xbf16>, vector<2x128xf32> -> vector<2x128xf32>
    %134 = arith.addf %131, %133 : vector<2x128xf32>
    %c24 = arith.constant 24 : index
    %c128_43 = arith.constant 128 : index
    %135 = vector.load %arg18[%c24, %c128_43] : memref<32x256xf32, #tpu.memory_space<vmem>>, vector<2x128xf32>
    %136 = arith.truncf %128 : vector<2x32xf32> to vector<2x32xbf16>
    %cst_44 = arith.constant dense<0.000000e+00> : vector<2x128xf32>
    %137 = tpu.matmul %136, %9, %cst_44 {dimension_numbers = #tpu.dot_dimension_numbers<[1], [0], [0], [1], [0, 0, 1, 1], [], []>} : vector<2x32xbf16>, vector<32x128xbf16>, vector<2x128xf32> -> vector<2x128xf32>
    %138 = arith.addf %135, %137 : vector<2x128xf32>
    %139 = arith.negf %134 : vector<2x128xf32>
    %140 = math.exp %139 : vector<2x128xf32>
    %cst_45 = arith.constant 1.000000e+00 : f32
    %141 = vector.broadcast %cst_45 : f32 to vector<2x128xf32>
    %142 = arith.addf %141, %140 : vector<2x128xf32>
    %143 = arith.divf %141, %142 : vector<2x128xf32>
    %144 = math.tanh %134 : vector<2x128xf32>
    %145 = arith.negf %138 : vector<2x128xf32>
    %146 = math.exp %145 : vector<2x128xf32>
    %cst_46 = arith.constant 1.000000e+00 : f32
    %147 = vector.broadcast %cst_46 : f32 to vector<2x128xf32>
    %148 = arith.addf %147, %146 : vector<2x128xf32>
    %149 = arith.divf %147, %148 : vector<2x128xf32>
    %150 = math.tanh %138 : vector<2x128xf32>
    %151 = vector.extract_strided_slice %143 {offsets = [0, 32], sizes = [2, 32], strides = [1, 1]} : vector<2x128xf32> to vector<2x32xf32>
    %152 = arith.mulf %151, %116 : vector<2x32xf32>
    %153 = vector.extract_strided_slice %143 {offsets = [0, 0], sizes = [2, 32], strides = [1, 1]} : vector<2x128xf32> to vector<2x32xf32>
    %154 = vector.extract_strided_slice %144 {offsets = [0, 64], sizes = [2, 32], strides = [1, 1]} : vector<2x128xf32> to vector<2x32xf32>
    %155 = arith.mulf %153, %154 : vector<2x32xf32>
    %156 = arith.addf %152, %155 : vector<2x32xf32>
    %157 = vector.extract_strided_slice %149 {offsets = [0, 32], sizes = [2, 32], strides = [1, 1]} : vector<2x128xf32> to vector<2x32xf32>
    %158 = arith.mulf %157, %122 : vector<2x32xf32>
    %159 = vector.extract_strided_slice %149 {offsets = [0, 0], sizes = [2, 32], strides = [1, 1]} : vector<2x128xf32> to vector<2x32xf32>
    %160 = vector.extract_strided_slice %150 {offsets = [0, 64], sizes = [2, 32], strides = [1, 1]} : vector<2x128xf32> to vector<2x32xf32>
    %161 = arith.mulf %159, %160 : vector<2x32xf32>
    %162 = arith.addf %158, %161 : vector<2x32xf32>
    %163 = vector.extract_strided_slice %143 {offsets = [0, 96], sizes = [2, 32], strides = [1, 1]} : vector<2x128xf32> to vector<2x32xf32>
    %164 = math.tanh %156 : vector<2x32xf32>
    %165 = arith.mulf %163, %164 : vector<2x32xf32>
    %166 = vector.extract_strided_slice %149 {offsets = [0, 96], sizes = [2, 32], strides = [1, 1]} : vector<2x128xf32> to vector<2x32xf32>
    %167 = math.tanh %162 : vector<2x32xf32>
    %168 = arith.mulf %166, %167 : vector<2x32xf32>
    %c6_47 = arith.constant 6 : index
    %c0_48 = arith.constant 0 : index
    %169 = vector.load %arg19[%c6_47, %c0_48] : memref<32x64xf32, #tpu.memory_space<vmem>>, vector<2x32xf32>
    tpu.vector_store %arg19[%c6_47, %c0_48], %165 {strides = array<i32>} : memref<32x64xf32, #tpu.memory_space<vmem>>, vector<2x32xf32>,
    %c24_49 = arith.constant 24 : index
    %c32_50 = arith.constant 32 : index
    %170 = vector.load %arg19[%c24_49, %c32_50] : memref<32x64xf32, #tpu.memory_space<vmem>>, vector<2x32xf32>
    tpu.vector_store %arg19[%c24_49, %c32_50], %168 {strides = array<i32>} : memref<32x64xf32, #tpu.memory_space<vmem>>, vector<2x32xf32>,
    %c8 = arith.constant 8 : index
    %c0_51 = arith.constant 0 : index
    %171 = vector.load %arg18[%c8, %c0_51] : memref<32x256xf32, #tpu.memory_space<vmem>>, vector<2x128xf32>
    %172 = arith.truncf %165 : vector<2x32xf32> to vector<2x32xbf16>
    %cst_52 = arith.constant dense<0.000000e+00> : vector<2x128xf32>
    %173 = tpu.matmul %172, %8, %cst_52 {dimension_numbers = #tpu.dot_dimension_numbers<[1], [0], [0], [1], [0, 0, 1, 1], [], []>} : vector<2x32xbf16>, vector<32x128xbf16>, vector<2x128xf32> -> vector<2x128xf32>
    %174 = arith.addf %171, %173 : vector<2x128xf32>
    %c22 = arith.constant 22 : index
    %c128_53 = arith.constant 128 : index
    %175 = vector.load %arg18[%c22, %c128_53] : memref<32x256xf32, #tpu.memory_space<vmem>>, vector<2x128xf32>
    %176 = arith.truncf %168 : vector<2x32xf32> to vector<2x32xbf16>
    %cst_54 = arith.constant dense<0.000000e+00> : vector<2x128xf32>
    %177 = tpu.matmul %176, %9, %cst_54 {dimension_numbers = #tpu.dot_dimension_numbers<[1], [0], [0], [1], [0, 0, 1, 1], [], []>} : vector<2x32xbf16>, vector<32x128xbf16>, vector<2x128xf32> -> vector<2x128xf32>
    %178 = arith.addf %175, %177 : vector<2x128xf32>
    %179 = arith.negf %174 : vector<2x128xf32>
    %180 = math.exp %179 : vector<2x128xf32>
    %cst_55 = arith.constant 1.000000e+00 : f32
    %181 = vector.broadcast %cst_55 : f32 to vector<2x128xf32>
    %182 = arith.addf %181, %180 : vector<2x128xf32>
    %183 = arith.divf %181, %182 : vector<2x128xf32>
    %184 = math.tanh %174 : vector<2x128xf32>
    %185 = arith.negf %178 : vector<2x128xf32>
    %186 = math.exp %185 : vector<2x128xf32>
    %cst_56 = arith.constant 1.000000e+00 : f32
    %187 = vector.broadcast %cst_56 : f32 to vector<2x128xf32>
    %188 = arith.addf %187, %186 : vector<2x128xf32>
    %189 = arith.divf %187, %188 : vector<2x128xf32>
    %190 = math.tanh %178 : vector<2x128xf32>
    %191 = vector.extract_strided_slice %183 {offsets = [0, 32], sizes = [2, 32], strides = [1, 1]} : vector<2x128xf32> to vector<2x32xf32>
    %192 = arith.mulf %191, %156 : vector<2x32xf32>
    %193 = vector.extract_strided_slice %183 {offsets = [0, 0], sizes = [2, 32], strides = [1, 1]} : vector<2x128xf32> to vector<2x32xf32>
    %194 = vector.extract_strided_slice %184 {offsets = [0, 64], sizes = [2, 32], strides = [1, 1]} : vector<2x128xf32> to vector<2x32xf32>
    %195 = arith.mulf %193, %194 : vector<2x32xf32>
    %196 = arith.addf %192, %195 : vector<2x32xf32>
    %197 = vector.extract_strided_slice %189 {offsets = [0, 32], sizes = [2, 32], strides = [1, 1]} : vector<2x128xf32> to vector<2x32xf32>
    %198 = arith.mulf %197, %162 : vector<2x32xf32>
    %199 = vector.extract_strided_slice %189 {offsets = [0, 0], sizes = [2, 32], strides = [1, 1]} : vector<2x128xf32> to vector<2x32xf32>
    %200 = vector.extract_strided_slice %190 {offsets = [0, 64], sizes = [2, 32], strides = [1, 1]} : vector<2x128xf32> to vector<2x32xf32>
    %201 = arith.mulf %199, %200 : vector<2x32xf32>
    %202 = arith.addf %198, %201 : vector<2x32xf32>
    %203 = vector.extract_strided_slice %183 {offsets = [0, 96], sizes = [2, 32], strides = [1, 1]} : vector<2x128xf32> to vector<2x32xf32>
    %204 = math.tanh %196 : vector<2x32xf32>
    %205 = arith.mulf %203, %204 : vector<2x32xf32>
    %206 = vector.extract_strided_slice %189 {offsets = [0, 96], sizes = [2, 32], strides = [1, 1]} : vector<2x128xf32> to vector<2x32xf32>
    %207 = math.tanh %202 : vector<2x32xf32>
    %208 = arith.mulf %206, %207 : vector<2x32xf32>
    %c8_57 = arith.constant 8 : index
    %c0_58 = arith.constant 0 : index
    %209 = vector.load %arg19[%c8_57, %c0_58] : memref<32x64xf32, #tpu.memory_space<vmem>>, vector<2x32xf32>
    tpu.vector_store %arg19[%c8_57, %c0_58], %205 {strides = array<i32>} : memref<32x64xf32, #tpu.memory_space<vmem>>, vector<2x32xf32>,
    %c22_59 = arith.constant 22 : index
    %c32_60 = arith.constant 32 : index
    %210 = vector.load %arg19[%c22_59, %c32_60] : memref<32x64xf32, #tpu.memory_space<vmem>>, vector<2x32xf32>
    tpu.vector_store %arg19[%c22_59, %c32_60], %208 {strides = array<i32>} : memref<32x64xf32, #tpu.memory_space<vmem>>, vector<2x32xf32>,
    %c10 = arith.constant 10 : index
    %c0_61 = arith.constant 0 : index
    %211 = vector.load %arg18[%c10, %c0_61] : memref<32x256xf32, #tpu.memory_space<vmem>>, vector<2x128xf32>
    %212 = arith.truncf %205 : vector<2x32xf32> to vector<2x32xbf16>
    %cst_62 = arith.constant dense<0.000000e+00> : vector<2x128xf32>
    %213 = tpu.matmul %212, %8, %cst_62 {dimension_numbers = #tpu.dot_dimension_numbers<[1], [0], [0], [1], [0, 0, 1, 1], [], []>} : vector<2x32xbf16>, vector<32x128xbf16>, vector<2x128xf32> -> vector<2x128xf32>
    %214 = arith.addf %211, %213 : vector<2x128xf32>
    %c20 = arith.constant 20 : index
    %c128_63 = arith.constant 128 : index
    %215 = vector.load %arg18[%c20, %c128_63] : memref<32x256xf32, #tpu.memory_space<vmem>>, vector<2x128xf32>
    %216 = arith.truncf %208 : vector<2x32xf32> to vector<2x32xbf16>
    %cst_64 = arith.constant dense<0.000000e+00> : vector<2x128xf32>
    %217 = tpu.matmul %216, %9, %cst_64 {dimension_numbers = #tpu.dot_dimension_numbers<[1], [0], [0], [1], [0, 0, 1, 1], [], []>} : vector<2x32xbf16>, vector<32x128xbf16>, vector<2x128xf32> -> vector<2x128xf32>
    %218 = arith.addf %215, %217 : vector<2x128xf32>
    %219 = arith.negf %214 : vector<2x128xf32>
    %220 = math.exp %219 : vector<2x128xf32>
    %cst_65 = arith.constant 1.000000e+00 : f32
    %221 = vector.broadcast %cst_65 : f32 to vector<2x128xf32>
    %222 = arith.addf %221, %220 : vector<2x128xf32>
    %223 = arith.divf %221, %222 : vector<2x128xf32>
    %224 = math.tanh %214 : vector<2x128xf32>
    %225 = arith.negf %218 : vector<2x128xf32>
    %226 = math.exp %225 : vector<2x128xf32>
    %cst_66 = arith.constant 1.000000e+00 : f32
    %227 = vector.broadcast %cst_66 : f32 to vector<2x128xf32>
    %228 = arith.addf %227, %226 : vector<2x128xf32>
    %229 = arith.divf %227, %228 : vector<2x128xf32>
    %230 = math.tanh %218 : vector<2x128xf32>
    %231 = vector.extract_strided_slice %223 {offsets = [0, 32], sizes = [2, 32], strides = [1, 1]} : vector<2x128xf32> to vector<2x32xf32>
    %232 = arith.mulf %231, %196 : vector<2x32xf32>
    %233 = vector.extract_strided_slice %223 {offsets = [0, 0], sizes = [2, 32], strides = [1, 1]} : vector<2x128xf32> to vector<2x32xf32>
    %234 = vector.extract_strided_slice %224 {offsets = [0, 64], sizes = [2, 32], strides = [1, 1]} : vector<2x128xf32> to vector<2x32xf32>
    %235 = arith.mulf %233, %234 : vector<2x32xf32>
    %236 = arith.addf %232, %235 : vector<2x32xf32>
    %237 = vector.extract_strided_slice %229 {offsets = [0, 32], sizes = [2, 32], strides = [1, 1]} : vector<2x128xf32> to vector<2x32xf32>
    %238 = arith.mulf %237, %202 : vector<2x32xf32>
    %239 = vector.extract_strided_slice %229 {offsets = [0, 0], sizes = [2, 32], strides = [1, 1]} : vector<2x128xf32> to vector<2x32xf32>
    %240 = vector.extract_strided_slice %230 {offsets = [0, 64], sizes = [2, 32], strides = [1, 1]} : vector<2x128xf32> to vector<2x32xf32>
    %241 = arith.mulf %239, %240 : vector<2x32xf32>
    %242 = arith.addf %238, %241 : vector<2x32xf32>
    %243 = vector.extract_strided_slice %223 {offsets = [0, 96], sizes = [2, 32], strides = [1, 1]} : vector<2x128xf32> to vector<2x32xf32>
    %244 = math.tanh %236 : vector<2x32xf32>
    %245 = arith.mulf %243, %244 : vector<2x32xf32>
    %246 = vector.extract_strided_slice %229 {offsets = [0, 96], sizes = [2, 32], strides = [1, 1]} : vector<2x128xf32> to vector<2x32xf32>
    %247 = math.tanh %242 : vector<2x32xf32>
    %248 = arith.mulf %246, %247 : vector<2x32xf32>
    %c10_67 = arith.constant 10 : index
    %c0_68 = arith.constant 0 : index
    %249 = vector.load %arg19[%c10_67, %c0_68] : memref<32x64xf32, #tpu.memory_space<vmem>>, vector<2x32xf32>
    tpu.vector_store %arg19[%c10_67, %c0_68], %245 {strides = array<i32>} : memref<32x64xf32, #tpu.memory_space<vmem>>, vector<2x32xf32>,
    %c20_69 = arith.constant 20 : index
    %c32_70 = arith.constant 32 : index
    %250 = vector.load %arg19[%c20_69, %c32_70] : memref<32x64xf32, #tpu.memory_space<vmem>>, vector<2x32xf32>
    tpu.vector_store %arg19[%c20_69, %c32_70], %248 {strides = array<i32>} : memref<32x64xf32, #tpu.memory_space<vmem>>, vector<2x32xf32>,
    %c12 = arith.constant 12 : index
    %c0_71 = arith.constant 0 : index
    %251 = vector.load %arg18[%c12, %c0_71] : memref<32x256xf32, #tpu.memory_space<vmem>>, vector<2x128xf32>
    %252 = arith.truncf %245 : vector<2x32xf32> to vector<2x32xbf16>
    %cst_72 = arith.constant dense<0.000000e+00> : vector<2x128xf32>
    %253 = tpu.matmul %252, %8, %cst_72 {dimension_numbers = #tpu.dot_dimension_numbers<[1], [0], [0], [1], [0, 0, 1, 1], [], []>} : vector<2x32xbf16>, vector<32x128xbf16>, vector<2x128xf32> -> vector<2x128xf32>
    %254 = arith.addf %251, %253 : vector<2x128xf32>
    %c18 = arith.constant 18 : index
    %c128_73 = arith.constant 128 : index
    %255 = vector.load %arg18[%c18, %c128_73] : memref<32x256xf32, #tpu.memory_space<vmem>>, vector<2x128xf32>
    %256 = arith.truncf %248 : vector<2x32xf32> to vector<2x32xbf16>
    %cst_74 = arith.constant dense<0.000000e+00> : vector<2x128xf32>
    %257 = tpu.matmul %256, %9, %cst_74 {dimension_numbers = #tpu.dot_dimension_numbers<[1], [0], [0], [1], [0, 0, 1, 1], [], []>} : vector<2x32xbf16>, vector<32x128xbf16>, vector<2x128xf32> -> vector<2x128xf32>
    %258 = arith.addf %255, %257 : vector<2x128xf32>
    %259 = arith.negf %254 : vector<2x128xf32>
    %260 = math.exp %259 : vector<2x128xf32>
    %cst_75 = arith.constant 1.000000e+00 : f32
    %261 = vector.broadcast %cst_75 : f32 to vector<2x128xf32>
    %262 = arith.addf %261, %260 : vector<2x128xf32>
    %263 = arith.divf %261, %262 : vector<2x128xf32>
    %264 = math.tanh %254 : vector<2x128xf32>
    %265 = arith.negf %258 : vector<2x128xf32>
    %266 = math.exp %265 : vector<2x128xf32>
    %cst_76 = arith.constant 1.000000e+00 : f32
    %267 = vector.broadcast %cst_76 : f32 to vector<2x128xf32>
    %268 = arith.addf %267, %266 : vector<2x128xf32>
    %269 = arith.divf %267, %268 : vector<2x128xf32>
    %270 = math.tanh %258 : vector<2x128xf32>
    %271 = vector.extract_strided_slice %263 {offsets = [0, 32], sizes = [2, 32], strides = [1, 1]} : vector<2x128xf32> to vector<2x32xf32>
    %272 = arith.mulf %271, %236 : vector<2x32xf32>
    %273 = vector.extract_strided_slice %263 {offsets = [0, 0], sizes = [2, 32], strides = [1, 1]} : vector<2x128xf32> to vector<2x32xf32>
    %274 = vector.extract_strided_slice %264 {offsets = [0, 64], sizes = [2, 32], strides = [1, 1]} : vector<2x128xf32> to vector<2x32xf32>
    %275 = arith.mulf %273, %274 : vector<2x32xf32>
    %276 = arith.addf %272, %275 : vector<2x32xf32>
    %277 = vector.extract_strided_slice %269 {offsets = [0, 32], sizes = [2, 32], strides = [1, 1]} : vector<2x128xf32> to vector<2x32xf32>
    %278 = arith.mulf %277, %242 : vector<2x32xf32>
    %279 = vector.extract_strided_slice %269 {offsets = [0, 0], sizes = [2, 32], strides = [1, 1]} : vector<2x128xf32> to vector<2x32xf32>
    %280 = vector.extract_strided_slice %270 {offsets = [0, 64], sizes = [2, 32], strides = [1, 1]} : vector<2x128xf32> to vector<2x32xf32>
    %281 = arith.mulf %279, %280 : vector<2x32xf32>
    %282 = arith.addf %278, %281 : vector<2x32xf32>
    %283 = vector.extract_strided_slice %263 {offsets = [0, 96], sizes = [2, 32], strides = [1, 1]} : vector<2x128xf32> to vector<2x32xf32>
    %284 = math.tanh %276 : vector<2x32xf32>
    %285 = arith.mulf %283, %284 : vector<2x32xf32>
    %286 = vector.extract_strided_slice %269 {offsets = [0, 96], sizes = [2, 32], strides = [1, 1]} : vector<2x128xf32> to vector<2x32xf32>
    %287 = math.tanh %282 : vector<2x32xf32>
    %288 = arith.mulf %286, %287 : vector<2x32xf32>
    %c12_77 = arith.constant 12 : index
    %c0_78 = arith.constant 0 : index
    %289 = vector.load %arg19[%c12_77, %c0_78] : memref<32x64xf32, #tpu.memory_space<vmem>>, vector<2x32xf32>
    tpu.vector_store %arg19[%c12_77, %c0_78], %285 {strides = array<i32>} : memref<32x64xf32, #tpu.memory_space<vmem>>, vector<2x32xf32>,
    %c18_79 = arith.constant 18 : index
    %c32_80 = arith.constant 32 : index
    %290 = vector.load %arg19[%c18_79, %c32_80] : memref<32x64xf32, #tpu.memory_space<vmem>>, vector<2x32xf32>
    tpu.vector_store %arg19[%c18_79, %c32_80], %288 {strides = array<i32>} : memref<32x64xf32, #tpu.memory_space<vmem>>, vector<2x32xf32>,
    %c14 = arith.constant 14 : index
    %c0_81 = arith.constant 0 : index
    %291 = vector.load %arg18[%c14, %c0_81] : memref<32x256xf32, #tpu.memory_space<vmem>>, vector<2x128xf32>
    %292 = arith.truncf %285 : vector<2x32xf32> to vector<2x32xbf16>
    %cst_82 = arith.constant dense<0.000000e+00> : vector<2x128xf32>
    %293 = tpu.matmul %292, %8, %cst_82 {dimension_numbers = #tpu.dot_dimension_numbers<[1], [0], [0], [1], [0, 0, 1, 1], [], []>} : vector<2x32xbf16>, vector<32x128xbf16>, vector<2x128xf32> -> vector<2x128xf32>
    %294 = arith.addf %291, %293 : vector<2x128xf32>
    %c16 = arith.constant 16 : index
    %c128_83 = arith.constant 128 : index
    %295 = vector.load %arg18[%c16, %c128_83] : memref<32x256xf32, #tpu.memory_space<vmem>>, vector<2x128xf32>
    %296 = arith.truncf %288 : vector<2x32xf32> to vector<2x32xbf16>
    %cst_84 = arith.constant dense<0.000000e+00> : vector<2x128xf32>
    %297 = tpu.matmul %296, %9, %cst_84 {dimension_numbers = #tpu.dot_dimension_numbers<[1], [0], [0], [1], [0, 0, 1, 1], [], []>} : vector<2x32xbf16>, vector<32x128xbf16>, vector<2x128xf32> -> vector<2x128xf32>
    %298 = arith.addf %295, %297 : vector<2x128xf32>
    %299 = arith.negf %294 : vector<2x128xf32>
    %300 = math.exp %299 : vector<2x128xf32>
    %cst_85 = arith.constant 1.000000e+00 : f32
    %301 = vector.broadcast %cst_85 : f32 to vector<2x128xf32>
    %302 = arith.addf %301, %300 : vector<2x128xf32>
    %303 = arith.divf %301, %302 : vector<2x128xf32>
    %304 = math.tanh %294 : vector<2x128xf32>
    %305 = arith.negf %298 : vector<2x128xf32>
    %306 = math.exp %305 : vector<2x128xf32>
    %cst_86 = arith.constant 1.000000e+00 : f32
    %307 = vector.broadcast %cst_86 : f32 to vector<2x128xf32>
    %308 = arith.addf %307, %306 : vector<2x128xf32>
    %309 = arith.divf %307, %308 : vector<2x128xf32>
    %310 = math.tanh %298 : vector<2x128xf32>
    %311 = vector.extract_strided_slice %303 {offsets = [0, 32], sizes = [2, 32], strides = [1, 1]} : vector<2x128xf32> to vector<2x32xf32>
    %312 = arith.mulf %311, %276 : vector<2x32xf32>
    %313 = vector.extract_strided_slice %303 {offsets = [0, 0], sizes = [2, 32], strides = [1, 1]} : vector<2x128xf32> to vector<2x32xf32>
    %314 = vector.extract_strided_slice %304 {offsets = [0, 64], sizes = [2, 32], strides = [1, 1]} : vector<2x128xf32> to vector<2x32xf32>
    %315 = arith.mulf %313, %314 : vector<2x32xf32>
    %316 = arith.addf %312, %315 : vector<2x32xf32>
    %317 = vector.extract_strided_slice %309 {offsets = [0, 32], sizes = [2, 32], strides = [1, 1]} : vector<2x128xf32> to vector<2x32xf32>
    %318 = arith.mulf %317, %282 : vector<2x32xf32>
    %319 = vector.extract_strided_slice %309 {offsets = [0, 0], sizes = [2, 32], strides = [1, 1]} : vector<2x128xf32> to vector<2x32xf32>
    %320 = vector.extract_strided_slice %310 {offsets = [0, 64], sizes = [2, 32], strides = [1, 1]} : vector<2x128xf32> to vector<2x32xf32>
    %321 = arith.mulf %319, %320 : vector<2x32xf32>
    %322 = arith.addf %318, %321 : vector<2x32xf32>
    %323 = vector.extract_strided_slice %303 {offsets = [0, 96], sizes = [2, 32], strides = [1, 1]} : vector<2x128xf32> to vector<2x32xf32>
    %324 = math.tanh %316 : vector<2x32xf32>
    %325 = arith.mulf %323, %324 : vector<2x32xf32>
    %326 = vector.extract_strided_slice %309 {offsets = [0, 96], sizes = [2, 32], strides = [1, 1]} : vector<2x128xf32> to vector<2x32xf32>
    %327 = math.tanh %322 : vector<2x32xf32>
    %328 = arith.mulf %326, %327 : vector<2x32xf32>
    %c14_87 = arith.constant 14 : index
    %c0_88 = arith.constant 0 : index
    %329 = vector.load %arg19[%c14_87, %c0_88] : memref<32x64xf32, #tpu.memory_space<vmem>>, vector<2x32xf32>
    tpu.vector_store %arg19[%c14_87, %c0_88], %325 {strides = array<i32>} : memref<32x64xf32, #tpu.memory_space<vmem>>, vector<2x32xf32>,
    %c16_89 = arith.constant 16 : index
    %c32_90 = arith.constant 32 : index
    %330 = vector.load %arg19[%c16_89, %c32_90] : memref<32x64xf32, #tpu.memory_space<vmem>>, vector<2x32xf32>
    tpu.vector_store %arg19[%c16_89, %c32_90], %328 {strides = array<i32>} : memref<32x64xf32, #tpu.memory_space<vmem>>, vector<2x32xf32>,
    %c16_91 = arith.constant 16 : index
    %c0_92 = arith.constant 0 : index
    %331 = vector.load %arg18[%c16_91, %c0_92] : memref<32x256xf32, #tpu.memory_space<vmem>>, vector<2x128xf32>
    %332 = arith.truncf %325 : vector<2x32xf32> to vector<2x32xbf16>
    %cst_93 = arith.constant dense<0.000000e+00> : vector<2x128xf32>
    %333 = tpu.matmul %332, %8, %cst_93 {dimension_numbers = #tpu.dot_dimension_numbers<[1], [0], [0], [1], [0, 0, 1, 1], [], []>} : vector<2x32xbf16>, vector<32x128xbf16>, vector<2x128xf32> -> vector<2x128xf32>
    %334 = arith.addf %331, %333 : vector<2x128xf32>
    %c14_94 = arith.constant 14 : index
    %c128_95 = arith.constant 128 : index
    %335 = vector.load %arg18[%c14_94, %c128_95] : memref<32x256xf32, #tpu.memory_space<vmem>>, vector<2x128xf32>
    %336 = arith.truncf %328 : vector<2x32xf32> to vector<2x32xbf16>
    %cst_96 = arith.constant dense<0.000000e+00> : vector<2x128xf32>
    %337 = tpu.matmul %336, %9, %cst_96 {dimension_numbers = #tpu.dot_dimension_numbers<[1], [0], [0], [1], [0, 0, 1, 1], [], []>} : vector<2x32xbf16>, vector<32x128xbf16>, vector<2x128xf32> -> vector<2x128xf32>
    %338 = arith.addf %335, %337 : vector<2x128xf32>
    %339 = arith.negf %334 : vector<2x128xf32>
    %340 = math.exp %339 : vector<2x128xf32>
    %cst_97 = arith.constant 1.000000e+00 : f32
    %341 = vector.broadcast %cst_97 : f32 to vector<2x128xf32>
    %342 = arith.addf %341, %340 : vector<2x128xf32>
    %343 = arith.divf %341, %342 : vector<2x128xf32>
    %344 = math.tanh %334 : vector<2x128xf32>
    %345 = arith.negf %338 : vector<2x128xf32>
    %346 = math.exp %345 : vector<2x128xf32>
    %cst_98 = arith.constant 1.000000e+00 : f32
    %347 = vector.broadcast %cst_98 : f32 to vector<2x128xf32>
    %348 = arith.addf %347, %346 : vector<2x128xf32>
    %349 = arith.divf %347, %348 : vector<2x128xf32>
    %350 = math.tanh %338 : vector<2x128xf32>
    %351 = vector.extract_strided_slice %343 {offsets = [0, 32], sizes = [2, 32], strides = [1, 1]} : vector<2x128xf32> to vector<2x32xf32>
    %352 = arith.mulf %351, %316 : vector<2x32xf32>
    %353 = vector.extract_strided_slice %343 {offsets = [0, 0], sizes = [2, 32], strides = [1, 1]} : vector<2x128xf32> to vector<2x32xf32>
    %354 = vector.extract_strided_slice %344 {offsets = [0, 64], sizes = [2, 32], strides = [1, 1]} : vector<2x128xf32> to vector<2x32xf32>
    %355 = arith.mulf %353, %354 : vector<2x32xf32>
    %356 = arith.addf %352, %355 : vector<2x32xf32>
    %357 = vector.extract_strided_slice %349 {offsets = [0, 32], sizes = [2, 32], strides = [1, 1]} : vector<2x128xf32> to vector<2x32xf32>
    %358 = arith.mulf %357, %322 : vector<2x32xf32>
    %359 = vector.extract_strided_slice %349 {offsets = [0, 0], sizes = [2, 32], strides = [1, 1]} : vector<2x128xf32> to vector<2x32xf32>
    %360 = vector.extract_strided_slice %350 {offsets = [0, 64], sizes = [2, 32], strides = [1, 1]} : vector<2x128xf32> to vector<2x32xf32>
    %361 = arith.mulf %359, %360 : vector<2x32xf32>
    %362 = arith.addf %358, %361 : vector<2x32xf32>
    %363 = vector.extract_strided_slice %343 {offsets = [0, 96], sizes = [2, 32], strides = [1, 1]} : vector<2x128xf32> to vector<2x32xf32>
    %364 = math.tanh %356 : vector<2x32xf32>
    %365 = arith.mulf %363, %364 : vector<2x32xf32>
    %366 = vector.extract_strided_slice %349 {offsets = [0, 96], sizes = [2, 32], strides = [1, 1]} : vector<2x128xf32> to vector<2x32xf32>
    %367 = math.tanh %362 : vector<2x32xf32>
    %368 = arith.mulf %366, %367 : vector<2x32xf32>
    %c16_99 = arith.constant 16 : index
    %c0_100 = arith.constant 0 : index
    %369 = vector.load %arg19[%c16_99, %c0_100] : memref<32x64xf32, #tpu.memory_space<vmem>>, vector<2x32xf32>
    tpu.vector_store %arg19[%c16_99, %c0_100], %365 {strides = array<i32>} : memref<32x64xf32, #tpu.memory_space<vmem>>, vector<2x32xf32>,
    %c14_101 = arith.constant 14 : index
    %c32_102 = arith.constant 32 : index
    %370 = vector.load %arg19[%c14_101, %c32_102] : memref<32x64xf32, #tpu.memory_space<vmem>>, vector<2x32xf32>
    tpu.vector_store %arg19[%c14_101, %c32_102], %368 {strides = array<i32>} : memref<32x64xf32, #tpu.memory_space<vmem>>, vector<2x32xf32>,
    %c18_103 = arith.constant 18 : index
    %c0_104 = arith.constant 0 : index
    %371 = vector.load %arg18[%c18_103, %c0_104] : memref<32x256xf32, #tpu.memory_space<vmem>>, vector<2x128xf32>
    %372 = arith.truncf %365 : vector<2x32xf32> to vector<2x32xbf16>
    %cst_105 = arith.constant dense<0.000000e+00> : vector<2x128xf32>
    %373 = tpu.matmul %372, %8, %cst_105 {dimension_numbers = #tpu.dot_dimension_numbers<[1], [0], [0], [1], [0, 0, 1, 1], [], []>} : vector<2x32xbf16>, vector<32x128xbf16>, vector<2x128xf32> -> vector<2x128xf32>
    %374 = arith.addf %371, %373 : vector<2x128xf32>
    %c12_106 = arith.constant 12 : index
    %c128_107 = arith.constant 128 : index
    %375 = vector.load %arg18[%c12_106, %c128_107] : memref<32x256xf32, #tpu.memory_space<vmem>>, vector<2x128xf32>
    %376 = arith.truncf %368 : vector<2x32xf32> to vector<2x32xbf16>
    %cst_108 = arith.constant dense<0.000000e+00> : vector<2x128xf32>
    %377 = tpu.matmul %376, %9, %cst_108 {dimension_numbers = #tpu.dot_dimension_numbers<[1], [0], [0], [1], [0, 0, 1, 1], [], []>} : vector<2x32xbf16>, vector<32x128xbf16>, vector<2x128xf32> -> vector<2x128xf32>
    %378 = arith.addf %375, %377 : vector<2x128xf32>
    %379 = arith.negf %374 : vector<2x128xf32>
    %380 = math.exp %379 : vector<2x128xf32>
    %cst_109 = arith.constant 1.000000e+00 : f32
    %381 = vector.broadcast %cst_109 : f32 to vector<2x128xf32>
    %382 = arith.addf %381, %380 : vector<2x128xf32>
    %383 = arith.divf %381, %382 : vector<2x128xf32>
    %384 = math.tanh %374 : vector<2x128xf32>
    %385 = arith.negf %378 : vector<2x128xf32>
    %386 = math.exp %385 : vector<2x128xf32>
    %cst_110 = arith.constant 1.000000e+00 : f32
    %387 = vector.broadcast %cst_110 : f32 to vector<2x128xf32>
    %388 = arith.addf %387, %386 : vector<2x128xf32>
    %389 = arith.divf %387, %388 : vector<2x128xf32>
    %390 = math.tanh %378 : vector<2x128xf32>
    %391 = vector.extract_strided_slice %383 {offsets = [0, 32], sizes = [2, 32], strides = [1, 1]} : vector<2x128xf32> to vector<2x32xf32>
    %392 = arith.mulf %391, %356 : vector<2x32xf32>
    %393 = vector.extract_strided_slice %383 {offsets = [0, 0], sizes = [2, 32], strides = [1, 1]} : vector<2x128xf32> to vector<2x32xf32>
    %394 = vector.extract_strided_slice %384 {offsets = [0, 64], sizes = [2, 32], strides = [1, 1]} : vector<2x128xf32> to vector<2x32xf32>
    %395 = arith.mulf %393, %394 : vector<2x32xf32>
    %396 = arith.addf %392, %395 : vector<2x32xf32>
    %397 = vector.extract_strided_slice %389 {offsets = [0, 32], sizes = [2, 32], strides = [1, 1]} : vector<2x128xf32> to vector<2x32xf32>
    %398 = arith.mulf %397, %362 : vector<2x32xf32>
    %399 = vector.extract_strided_slice %389 {offsets = [0, 0], sizes = [2, 32], strides = [1, 1]} : vector<2x128xf32> to vector<2x32xf32>
    %400 = vector.extract_strided_slice %390 {offsets = [0, 64], sizes = [2, 32], strides = [1, 1]} : vector<2x128xf32> to vector<2x32xf32>
    %401 = arith.mulf %399, %400 : vector<2x32xf32>
    %402 = arith.addf %398, %401 : vector<2x32xf32>
    %403 = vector.extract_strided_slice %383 {offsets = [0, 96], sizes = [2, 32], strides = [1, 1]} : vector<2x128xf32> to vector<2x32xf32>
    %404 = math.tanh %396 : vector<2x32xf32>
    %405 = arith.mulf %403, %404 : vector<2x32xf32>
    %406 = vector.extract_strided_slice %389 {offsets = [0, 96], sizes = [2, 32], strides = [1, 1]} : vector<2x128xf32> to vector<2x32xf32>
    %407 = math.tanh %402 : vector<2x32xf32>
    %408 = arith.mulf %406, %407 : vector<2x32xf32>
    %c18_111 = arith.constant 18 : index
    %c0_112 = arith.constant 0 : index
    %409 = vector.load %arg19[%c18_111, %c0_112] : memref<32x64xf32, #tpu.memory_space<vmem>>, vector<2x32xf32>
    tpu.vector_store %arg19[%c18_111, %c0_112], %405 {strides = array<i32>} : memref<32x64xf32, #tpu.memory_space<vmem>>, vector<2x32xf32>,
    %c12_113 = arith.constant 12 : index
    %c32_114 = arith.constant 32 : index
    %410 = vector.load %arg19[%c12_113, %c32_114] : memref<32x64xf32, #tpu.memory_space<vmem>>, vector<2x32xf32>
    tpu.vector_store %arg19[%c12_113, %c32_114], %408 {strides = array<i32>} : memref<32x64xf32, #tpu.memory_space<vmem>>, vector<2x32xf32>,
    %c20_115 = arith.constant 20 : index
    %c0_116 = arith.constant 0 : index
    %411 = vector.load %arg18[%c20_115, %c0_116] : memref<32x256xf32, #tpu.memory_space<vmem>>, vector<2x128xf32>
    %412 = arith.truncf %405 : vector<2x32xf32> to vector<2x32xbf16>
    %cst_117 = arith.constant dense<0.000000e+00> : vector<2x128xf32>
    %413 = tpu.matmul %412, %8, %cst_117 {dimension_numbers = #tpu.dot_dimension_numbers<[1], [0], [0], [1], [0, 0, 1, 1], [], []>} : vector<2x32xbf16>, vector<32x128xbf16>, vector<2x128xf32> -> vector<2x128xf32>
    %414 = arith.addf %411, %413 : vector<2x128xf32>
    %c10_118 = arith.constant 10 : index
    %c128_119 = arith.constant 128 : index
    %415 = vector.load %arg18[%c10_118, %c128_119] : memref<32x256xf32, #tpu.memory_space<vmem>>, vector<2x128xf32>
    %416 = arith.truncf %408 : vector<2x32xf32> to vector<2x32xbf16>
    %cst_120 = arith.constant dense<0.000000e+00> : vector<2x128xf32>
    %417 = tpu.matmul %416, %9, %cst_120 {dimension_numbers = #tpu.dot_dimension_numbers<[1], [0], [0], [1], [0, 0, 1, 1], [], []>} : vector<2x32xbf16>, vector<32x128xbf16>, vector<2x128xf32> -> vector<2x128xf32>
    %418 = arith.addf %415, %417 : vector<2x128xf32>
    %419 = arith.negf %414 : vector<2x128xf32>
    %420 = math.exp %419 : vector<2x128xf32>
    %cst_121 = arith.constant 1.000000e+00 : f32
    %421 = vector.broadcast %cst_121 : f32 to vector<2x128xf32>
    %422 = arith.addf %421, %420 : vector<2x128xf32>
    %423 = arith.divf %421, %422 : vector<2x128xf32>
    %424 = math.tanh %414 : vector<2x128xf32>
    %425 = arith.negf %418 : vector<2x128xf32>
    %426 = math.exp %425 : vector<2x128xf32>
    %cst_122 = arith.constant 1.000000e+00 : f32
    %427 = vector.broadcast %cst_122 : f32 to vector<2x128xf32>
    %428 = arith.addf %427, %426 : vector<2x128xf32>
    %429 = arith.divf %427, %428 : vector<2x128xf32>
    %430 = math.tanh %418 : vector<2x128xf32>
    %431 = vector.extract_strided_slice %423 {offsets = [0, 32], sizes = [2, 32], strides = [1, 1]} : vector<2x128xf32> to vector<2x32xf32>
    %432 = arith.mulf %431, %396 : vector<2x32xf32>
    %433 = vector.extract_strided_slice %423 {offsets = [0, 0], sizes = [2, 32], strides = [1, 1]} : vector<2x128xf32> to vector<2x32xf32>
    %434 = vector.extract_strided_slice %424 {offsets = [0, 64], sizes = [2, 32], strides = [1, 1]} : vector<2x128xf32> to vector<2x32xf32>
    %435 = arith.mulf %433, %434 : vector<2x32xf32>
    %436 = arith.addf %432, %435 : vector<2x32xf32>
    %437 = vector.extract_strided_slice %429 {offsets = [0, 32], sizes = [2, 32], strides = [1, 1]} : vector<2x128xf32> to vector<2x32xf32>
    %438 = arith.mulf %437, %402 : vector<2x32xf32>
    %439 = vector.extract_strided_slice %429 {offsets = [0, 0], sizes = [2, 32], strides = [1, 1]} : vector<2x128xf32> to vector<2x32xf32>
    %440 = vector.extract_strided_slice %430 {offsets = [0, 64], sizes = [2, 32], strides = [1, 1]} : vector<2x128xf32> to vector<2x32xf32>
    %441 = arith.mulf %439, %440 : vector<2x32xf32>
    %442 = arith.addf %438, %441 : vector<2x32xf32>
    %443 = vector.extract_strided_slice %423 {offsets = [0, 96], sizes = [2, 32], strides = [1, 1]} : vector<2x128xf32> to vector<2x32xf32>
    %444 = math.tanh %436 : vector<2x32xf32>
    %445 = arith.mulf %443, %444 : vector<2x32xf32>
    %446 = vector.extract_strided_slice %429 {offsets = [0, 96], sizes = [2, 32], strides = [1, 1]} : vector<2x128xf32> to vector<2x32xf32>
    %447 = math.tanh %442 : vector<2x32xf32>
    %448 = arith.mulf %446, %447 : vector<2x32xf32>
    %c20_123 = arith.constant 20 : index
    %c0_124 = arith.constant 0 : index
    %449 = vector.load %arg19[%c20_123, %c0_124] : memref<32x64xf32, #tpu.memory_space<vmem>>, vector<2x32xf32>
    tpu.vector_store %arg19[%c20_123, %c0_124], %445 {strides = array<i32>} : memref<32x64xf32, #tpu.memory_space<vmem>>, vector<2x32xf32>,
    %c10_125 = arith.constant 10 : index
    %c32_126 = arith.constant 32 : index
    %450 = vector.load %arg19[%c10_125, %c32_126] : memref<32x64xf32, #tpu.memory_space<vmem>>, vector<2x32xf32>
    tpu.vector_store %arg19[%c10_125, %c32_126], %448 {strides = array<i32>} : memref<32x64xf32, #tpu.memory_space<vmem>>, vector<2x32xf32>,
    %c22_127 = arith.constant 22 : index
    %c0_128 = arith.constant 0 : index
    %451 = vector.load %arg18[%c22_127, %c0_128] : memref<32x256xf32, #tpu.memory_space<vmem>>, vector<2x128xf32>
    %452 = arith.truncf %445 : vector<2x32xf32> to vector<2x32xbf16>
    %cst_129 = arith.constant dense<0.000000e+00> : vector<2x128xf32>
    %453 = tpu.matmul %452, %8, %cst_129 {dimension_numbers = #tpu.dot_dimension_numbers<[1], [0], [0], [1], [0, 0, 1, 1], [], []>} : vector<2x32xbf16>, vector<32x128xbf16>, vector<2x128xf32> -> vector<2x128xf32>
    %454 = arith.addf %451, %453 : vector<2x128xf32>
    %c8_130 = arith.constant 8 : index
    %c128_131 = arith.constant 128 : index
    %455 = vector.load %arg18[%c8_130, %c128_131] : memref<32x256xf32, #tpu.memory_space<vmem>>, vector<2x128xf32>
    %456 = arith.truncf %448 : vector<2x32xf32> to vector<2x32xbf16>
    %cst_132 = arith.constant dense<0.000000e+00> : vector<2x128xf32>
    %457 = tpu.matmul %456, %9, %cst_132 {dimension_numbers = #tpu.dot_dimension_numbers<[1], [0], [0], [1], [0, 0, 1, 1], [], []>} : vector<2x32xbf16>, vector<32x128xbf16>, vector<2x128xf32> -> vector<2x128xf32>
    %458 = arith.addf %455, %457 : vector<2x128xf32>
    %459 = arith.negf %454 : vector<2x128xf32>
    %460 = math.exp %459 : vector<2x128xf32>
    %cst_133 = arith.constant 1.000000e+00 : f32
    %461 = vector.broadcast %cst_133 : f32 to vector<2x128xf32>
    %462 = arith.addf %461, %460 : vector<2x128xf32>
    %463 = arith.divf %461, %462 : vector<2x128xf32>
    %464 = math.tanh %454 : vector<2x128xf32>
    %465 = arith.negf %458 : vector<2x128xf32>
    %466 = math.exp %465 : vector<2x128xf32>
    %cst_134 = arith.constant 1.000000e+00 : f32
    %467 = vector.broadcast %cst_134 : f32 to vector<2x128xf32>
    %468 = arith.addf %467, %466 : vector<2x128xf32>
    %469 = arith.divf %467, %468 : vector<2x128xf32>
    %470 = math.tanh %458 : vector<2x128xf32>
    %471 = vector.extract_strided_slice %463 {offsets = [0, 32], sizes = [2, 32], strides = [1, 1]} : vector<2x128xf32> to vector<2x32xf32>
    %472 = arith.mulf %471, %436 : vector<2x32xf32>
    %473 = vector.extract_strided_slice %463 {offsets = [0, 0], sizes = [2, 32], strides = [1, 1]} : vector<2x128xf32> to vector<2x32xf32>
    %474 = vector.extract_strided_slice %464 {offsets = [0, 64], sizes = [2, 32], strides = [1, 1]} : vector<2x128xf32> to vector<2x32xf32>
    %475 = arith.mulf %473, %474 : vector<2x32xf32>
    %476 = arith.addf %472, %475 : vector<2x32xf32>
    %477 = vector.extract_strided_slice %469 {offsets = [0, 32], sizes = [2, 32], strides = [1, 1]} : vector<2x128xf32> to vector<2x32xf32>
    %478 = arith.mulf %477, %442 : vector<2x32xf32>
    %479 = vector.extract_strided_slice %469 {offsets = [0, 0], sizes = [2, 32], strides = [1, 1]} : vector<2x128xf32> to vector<2x32xf32>
    %480 = vector.extract_strided_slice %470 {offsets = [0, 64], sizes = [2, 32], strides = [1, 1]} : vector<2x128xf32> to vector<2x32xf32>
    %481 = arith.mulf %479, %480 : vector<2x32xf32>
    %482 = arith.addf %478, %481 : vector<2x32xf32>
    %483 = vector.extract_strided_slice %463 {offsets = [0, 96], sizes = [2, 32], strides = [1, 1]} : vector<2x128xf32> to vector<2x32xf32>
    %484 = math.tanh %476 : vector<2x32xf32>
    %485 = arith.mulf %483, %484 : vector<2x32xf32>
    %486 = vector.extract_strided_slice %469 {offsets = [0, 96], sizes = [2, 32], strides = [1, 1]} : vector<2x128xf32> to vector<2x32xf32>
    %487 = math.tanh %482 : vector<2x32xf32>
    %488 = arith.mulf %486, %487 : vector<2x32xf32>
    %c22_135 = arith.constant 22 : index
    %c0_136 = arith.constant 0 : index
    %489 = vector.load %arg19[%c22_135, %c0_136] : memref<32x64xf32, #tpu.memory_space<vmem>>, vector<2x32xf32>
    tpu.vector_store %arg19[%c22_135, %c0_136], %485 {strides = array<i32>} : memref<32x64xf32, #tpu.memory_space<vmem>>, vector<2x32xf32>,
    %c8_137 = arith.constant 8 : index
    %c32_138 = arith.constant 32 : index
    %490 = vector.load %arg19[%c8_137, %c32_138] : memref<32x64xf32, #tpu.memory_space<vmem>>, vector<2x32xf32>
    tpu.vector_store %arg19[%c8_137, %c32_138], %488 {strides = array<i32>} : memref<32x64xf32, #tpu.memory_space<vmem>>, vector<2x32xf32>,
    %c24_139 = arith.constant 24 : index
    %c0_140 = arith.constant 0 : index
    %491 = vector.load %arg18[%c24_139, %c0_140] : memref<32x256xf32, #tpu.memory_space<vmem>>, vector<2x128xf32>
    %492 = arith.truncf %485 : vector<2x32xf32> to vector<2x32xbf16>
    %cst_141 = arith.constant dense<0.000000e+00> : vector<2x128xf32>
    %493 = tpu.matmul %492, %8, %cst_141 {dimension_numbers = #tpu.dot_dimension_numbers<[1], [0], [0], [1], [0, 0, 1, 1], [], []>} : vector<2x32xbf16>, vector<32x128xbf16>, vector<2x128xf32> -> vector<2x128xf32>
    %494 = arith.addf %491, %493 : vector<2x128xf32>
    %c6_142 = arith.constant 6 : index
    %c128_143 = arith.constant 128 : index
    %495 = vector.load %arg18[%c6_142, %c128_143] : memref<32x256xf32, #tpu.memory_space<vmem>>, vector<2x128xf32>
    %496 = arith.truncf %488 : vector<2x32xf32> to vector<2x32xbf16>
    %cst_144 = arith.constant dense<0.000000e+00> : vector<2x128xf32>
    %497 = tpu.matmul %496, %9, %cst_144 {dimension_numbers = #tpu.dot_dimension_numbers<[1], [0], [0], [1], [0, 0, 1, 1], [], []>} : vector<2x32xbf16>, vector<32x128xbf16>, vector<2x128xf32> -> vector<2x128xf32>
    %498 = arith.addf %495, %497 : vector<2x128xf32>
    %499 = arith.negf %494 : vector<2x128xf32>
    %500 = math.exp %499 : vector<2x128xf32>
    %cst_145 = arith.constant 1.000000e+00 : f32
    %501 = vector.broadcast %cst_145 : f32 to vector<2x128xf32>
    %502 = arith.addf %501, %500 : vector<2x128xf32>
    %503 = arith.divf %501, %502 : vector<2x128xf32>
    %504 = math.tanh %494 : vector<2x128xf32>
    %505 = arith.negf %498 : vector<2x128xf32>
    %506 = math.exp %505 : vector<2x128xf32>
    %cst_146 = arith.constant 1.000000e+00 : f32
    %507 = vector.broadcast %cst_146 : f32 to vector<2x128xf32>
    %508 = arith.addf %507, %506 : vector<2x128xf32>
    %509 = arith.divf %507, %508 : vector<2x128xf32>
    %510 = math.tanh %498 : vector<2x128xf32>
    %511 = vector.extract_strided_slice %503 {offsets = [0, 32], sizes = [2, 32], strides = [1, 1]} : vector<2x128xf32> to vector<2x32xf32>
    %512 = arith.mulf %511, %476 : vector<2x32xf32>
    %513 = vector.extract_strided_slice %503 {offsets = [0, 0], sizes = [2, 32], strides = [1, 1]} : vector<2x128xf32> to vector<2x32xf32>
    %514 = vector.extract_strided_slice %504 {offsets = [0, 64], sizes = [2, 32], strides = [1, 1]} : vector<2x128xf32> to vector<2x32xf32>
    %515 = arith.mulf %513, %514 : vector<2x32xf32>
    %516 = arith.addf %512, %515 : vector<2x32xf32>
    %517 = vector.extract_strided_slice %509 {offsets = [0, 32], sizes = [2, 32], strides = [1, 1]} : vector<2x128xf32> to vector<2x32xf32>
    %518 = arith.mulf %517, %482 : vector<2x32xf32>
    %519 = vector.extract_strided_slice %509 {offsets = [0, 0], sizes = [2, 32], strides = [1, 1]} : vector<2x128xf32> to vector<2x32xf32>
    %520 = vector.extract_strided_slice %510 {offsets = [0, 64], sizes = [2, 32], strides = [1, 1]} : vector<2x128xf32> to vector<2x32xf32>
    %521 = arith.mulf %519, %520 : vector<2x32xf32>
    %522 = arith.addf %518, %521 : vector<2x32xf32>
    %523 = vector.extract_strided_slice %503 {offsets = [0, 96], sizes = [2, 32], strides = [1, 1]} : vector<2x128xf32> to vector<2x32xf32>
    %524 = math.tanh %516 : vector<2x32xf32>
    %525 = arith.mulf %523, %524 : vector<2x32xf32>
    %526 = vector.extract_strided_slice %509 {offsets = [0, 96], sizes = [2, 32], strides = [1, 1]} : vector<2x128xf32> to vector<2x32xf32>
    %527 = math.tanh %522 : vector<2x32xf32>
    %528 = arith.mulf %526, %527 : vector<2x32xf32>
    %c24_147 = arith.constant 24 : index
    %c0_148 = arith.constant 0 : index
    %529 = vector.load %arg19[%c24_147, %c0_148] : memref<32x64xf32, #tpu.memory_space<vmem>>, vector<2x32xf32>
    tpu.vector_store %arg19[%c24_147, %c0_148], %525 {strides = array<i32>} : memref<32x64xf32, #tpu.memory_space<vmem>>, vector<2x32xf32>,
    %c6_149 = arith.constant 6 : index
    %c32_150 = arith.constant 32 : index
    %530 = vector.load %arg19[%c6_149, %c32_150] : memref<32x64xf32, #tpu.memory_space<vmem>>, vector<2x32xf32>
    tpu.vector_store %arg19[%c6_149, %c32_150], %528 {strides = array<i32>} : memref<32x64xf32, #tpu.memory_space<vmem>>, vector<2x32xf32>,
    %c26_151 = arith.constant 26 : index
    %c0_152 = arith.constant 0 : index
    %531 = vector.load %arg18[%c26_151, %c0_152] : memref<32x256xf32, #tpu.memory_space<vmem>>, vector<2x128xf32>
    %532 = arith.truncf %525 : vector<2x32xf32> to vector<2x32xbf16>
    %cst_153 = arith.constant dense<0.000000e+00> : vector<2x128xf32>
    %533 = tpu.matmul %532, %8, %cst_153 {dimension_numbers = #tpu.dot_dimension_numbers<[1], [0], [0], [1], [0, 0, 1, 1], [], []>} : vector<2x32xbf16>, vector<32x128xbf16>, vector<2x128xf32> -> vector<2x128xf32>
    %534 = arith.addf %531, %533 : vector<2x128xf32>
    %c4_154 = arith.constant 4 : index
    %c128_155 = arith.constant 128 : index
    %535 = vector.load %arg18[%c4_154, %c128_155] : memref<32x256xf32, #tpu.memory_space<vmem>>, vector<2x128xf32>
    %536 = arith.truncf %528 : vector<2x32xf32> to vector<2x32xbf16>
    %cst_156 = arith.constant dense<0.000000e+00> : vector<2x128xf32>
    %537 = tpu.matmul %536, %9, %cst_156 {dimension_numbers = #tpu.dot_dimension_numbers<[1], [0], [0], [1], [0, 0, 1, 1], [], []>} : vector<2x32xbf16>, vector<32x128xbf16>, vector<2x128xf32> -> vector<2x128xf32>
    %538 = arith.addf %535, %537 : vector<2x128xf32>
    %539 = arith.negf %534 : vector<2x128xf32>
    %540 = math.exp %539 : vector<2x128xf32>
    %cst_157 = arith.constant 1.000000e+00 : f32
    %541 = vector.broadcast %cst_157 : f32 to vector<2x128xf32>
    %542 = arith.addf %541, %540 : vector<2x128xf32>
    %543 = arith.divf %541, %542 : vector<2x128xf32>
    %544 = math.tanh %534 : vector<2x128xf32>
    %545 = arith.negf %538 : vector<2x128xf32>
    %546 = math.exp %545 : vector<2x128xf32>
    %cst_158 = arith.constant 1.000000e+00 : f32
    %547 = vector.broadcast %cst_158 : f32 to vector<2x128xf32>
    %548 = arith.addf %547, %546 : vector<2x128xf32>
    %549 = arith.divf %547, %548 : vector<2x128xf32>
    %550 = math.tanh %538 : vector<2x128xf32>
    %551 = vector.extract_strided_slice %543 {offsets = [0, 32], sizes = [2, 32], strides = [1, 1]} : vector<2x128xf32> to vector<2x32xf32>
    %552 = arith.mulf %551, %516 : vector<2x32xf32>
    %553 = vector.extract_strided_slice %543 {offsets = [0, 0], sizes = [2, 32], strides = [1, 1]} : vector<2x128xf32> to vector<2x32xf32>
    %554 = vector.extract_strided_slice %544 {offsets = [0, 64], sizes = [2, 32], strides = [1, 1]} : vector<2x128xf32> to vector<2x32xf32>
    %555 = arith.mulf %553, %554 : vector<2x32xf32>
    %556 = arith.addf %552, %555 : vector<2x32xf32>
    %557 = vector.extract_strided_slice %549 {offsets = [0, 32], sizes = [2, 32], strides = [1, 1]} : vector<2x128xf32> to vector<2x32xf32>
    %558 = arith.mulf %557, %522 : vector<2x32xf32>
    %559 = vector.extract_strided_slice %549 {offsets = [0, 0], sizes = [2, 32], strides = [1, 1]} : vector<2x128xf32> to vector<2x32xf32>
    %560 = vector.extract_strided_slice %550 {offsets = [0, 64], sizes = [2, 32], strides = [1, 1]} : vector<2x128xf32> to vector<2x32xf32>
    %561 = arith.mulf %559, %560 : vector<2x32xf32>
    %562 = arith.addf %558, %561 : vector<2x32xf32>
    %563 = vector.extract_strided_slice %543 {offsets = [0, 96], sizes = [2, 32], strides = [1, 1]} : vector<2x128xf32> to vector<2x32xf32>
    %564 = math.tanh %556 : vector<2x32xf32>
    %565 = arith.mulf %563, %564 : vector<2x32xf32>
    %566 = vector.extract_strided_slice %549 {offsets = [0, 96], sizes = [2, 32], strides = [1, 1]} : vector<2x128xf32> to vector<2x32xf32>
    %567 = math.tanh %562 : vector<2x32xf32>
    %568 = arith.mulf %566, %567 : vector<2x32xf32>
    %c26_159 = arith.constant 26 : index
    %c0_160 = arith.constant 0 : index
    %569 = vector.load %arg19[%c26_159, %c0_160] : memref<32x64xf32, #tpu.memory_space<vmem>>, vector<2x32xf32>
    tpu.vector_store %arg19[%c26_159, %c0_160], %565 {strides = array<i32>} : memref<32x64xf32, #tpu.memory_space<vmem>>, vector<2x32xf32>,
    %c4_161 = arith.constant 4 : index
    %c32_162 = arith.constant 32 : index
    %570 = vector.load %arg19[%c4_161, %c32_162] : memref<32x64xf32, #tpu.memory_space<vmem>>, vector<2x32xf32>
    tpu.vector_store %arg19[%c4_161, %c32_162], %568 {strides = array<i32>} : memref<32x64xf32, #tpu.memory_space<vmem>>, vector<2x32xf32>,
    %c28_163 = arith.constant 28 : index
    %c0_164 = arith.constant 0 : index
    %571 = vector.load %arg18[%c28_163, %c0_164] : memref<32x256xf32, #tpu.memory_space<vmem>>, vector<2x128xf32>
    %572 = arith.truncf %565 : vector<2x32xf32> to vector<2x32xbf16>
    %cst_165 = arith.constant dense<0.000000e+00> : vector<2x128xf32>
    %573 = tpu.matmul %572, %8, %cst_165 {dimension_numbers = #tpu.dot_dimension_numbers<[1], [0], [0], [1], [0, 0, 1, 1], [], []>} : vector<2x32xbf16>, vector<32x128xbf16>, vector<2x128xf32> -> vector<2x128xf32>
    %574 = arith.addf %571, %573 : vector<2x128xf32>
    %c2_166 = arith.constant 2 : index
    %c128_167 = arith.constant 128 : index
    %575 = vector.load %arg18[%c2_166, %c128_167] : memref<32x256xf32, #tpu.memory_space<vmem>>, vector<2x128xf32>
    %576 = arith.truncf %568 : vector<2x32xf32> to vector<2x32xbf16>
    %cst_168 = arith.constant dense<0.000000e+00> : vector<2x128xf32>
    %577 = tpu.matmul %576, %9, %cst_168 {dimension_numbers = #tpu.dot_dimension_numbers<[1], [0], [0], [1], [0, 0, 1, 1], [], []>} : vector<2x32xbf16>, vector<32x128xbf16>, vector<2x128xf32> -> vector<2x128xf32>
    %578 = arith.addf %575, %577 : vector<2x128xf32>
    %579 = arith.negf %574 : vector<2x128xf32>
    %580 = math.exp %579 : vector<2x128xf32>
    %cst_169 = arith.constant 1.000000e+00 : f32
    %581 = vector.broadcast %cst_169 : f32 to vector<2x128xf32>
    %582 = arith.addf %581, %580 : vector<2x128xf32>
    %583 = arith.divf %581, %582 : vector<2x128xf32>
    %584 = math.tanh %574 : vector<2x128xf32>
    %585 = arith.negf %578 : vector<2x128xf32>
    %586 = math.exp %585 : vector<2x128xf32>
    %cst_170 = arith.constant 1.000000e+00 : f32
    %587 = vector.broadcast %cst_170 : f32 to vector<2x128xf32>
    %588 = arith.addf %587, %586 : vector<2x128xf32>
    %589 = arith.divf %587, %588 : vector<2x128xf32>
    %590 = math.tanh %578 : vector<2x128xf32>
    %591 = vector.extract_strided_slice %583 {offsets = [0, 32], sizes = [2, 32], strides = [1, 1]} : vector<2x128xf32> to vector<2x32xf32>
    %592 = arith.mulf %591, %556 : vector<2x32xf32>
    %593 = vector.extract_strided_slice %583 {offsets = [0, 0], sizes = [2, 32], strides = [1, 1]} : vector<2x128xf32> to vector<2x32xf32>
    %594 = vector.extract_strided_slice %584 {offsets = [0, 64], sizes = [2, 32], strides = [1, 1]} : vector<2x128xf32> to vector<2x32xf32>
    %595 = arith.mulf %593, %594 : vector<2x32xf32>
    %596 = arith.addf %592, %595 : vector<2x32xf32>
    %597 = vector.extract_strided_slice %589 {offsets = [0, 32], sizes = [2, 32], strides = [1, 1]} : vector<2x128xf32> to vector<2x32xf32>
    %598 = arith.mulf %597, %562 : vector<2x32xf32>
    %599 = vector.extract_strided_slice %589 {offsets = [0, 0], sizes = [2, 32], strides = [1, 1]} : vector<2x128xf32> to vector<2x32xf32>
    %600 = vector.extract_strided_slice %590 {offsets = [0, 64], sizes = [2, 32], strides = [1, 1]} : vector<2x128xf32> to vector<2x32xf32>
    %601 = arith.mulf %599, %600 : vector<2x32xf32>
    %602 = arith.addf %598, %601 : vector<2x32xf32>
    %603 = vector.extract_strided_slice %583 {offsets = [0, 96], sizes = [2, 32], strides = [1, 1]} : vector<2x128xf32> to vector<2x32xf32>
    %604 = math.tanh %596 : vector<2x32xf32>
    %605 = arith.mulf %603, %604 : vector<2x32xf32>
    %606 = vector.extract_strided_slice %589 {offsets = [0, 96], sizes = [2, 32], strides = [1, 1]} : vector<2x128xf32> to vector<2x32xf32>
    %607 = math.tanh %602 : vector<2x32xf32>
    %608 = arith.mulf %606, %607 : vector<2x32xf32>
    %c28_171 = arith.constant 28 : index
    %c0_172 = arith.constant 0 : index
    %609 = vector.load %arg19[%c28_171, %c0_172] : memref<32x64xf32, #tpu.memory_space<vmem>>, vector<2x32xf32>
    tpu.vector_store %arg19[%c28_171, %c0_172], %605 {strides = array<i32>} : memref<32x64xf32, #tpu.memory_space<vmem>>, vector<2x32xf32>,
    %c2_173 = arith.constant 2 : index
    %c32_174 = arith.constant 32 : index
    %610 = vector.load %arg19[%c2_173, %c32_174] : memref<32x64xf32, #tpu.memory_space<vmem>>, vector<2x32xf32>
    tpu.vector_store %arg19[%c2_173, %c32_174], %608 {strides = array<i32>} : memref<32x64xf32, #tpu.memory_space<vmem>>, vector<2x32xf32>,
    %c30_175 = arith.constant 30 : index
    %c0_176 = arith.constant 0 : index
    %611 = vector.load %arg18[%c30_175, %c0_176] : memref<32x256xf32, #tpu.memory_space<vmem>>, vector<2x128xf32>
    %612 = arith.truncf %605 : vector<2x32xf32> to vector<2x32xbf16>
    %cst_177 = arith.constant dense<0.000000e+00> : vector<2x128xf32>
    %613 = tpu.matmul %612, %8, %cst_177 {dimension_numbers = #tpu.dot_dimension_numbers<[1], [0], [0], [1], [0, 0, 1, 1], [], []>} : vector<2x32xbf16>, vector<32x128xbf16>, vector<2x128xf32> -> vector<2x128xf32>
    %614 = arith.addf %611, %613 : vector<2x128xf32>
    %c0_178 = arith.constant 0 : index
    %c128_179 = arith.constant 128 : index
    %615 = vector.load %arg18[%c0_178, %c128_179] : memref<32x256xf32, #tpu.memory_space<vmem>>, vector<2x128xf32>
    %616 = arith.truncf %608 : vector<2x32xf32> to vector<2x32xbf16>
    %cst_180 = arith.constant dense<0.000000e+00> : vector<2x128xf32>
    %617 = tpu.matmul %616, %9, %cst_180 {dimension_numbers = #tpu.dot_dimension_numbers<[1], [0], [0], [1], [0, 0, 1, 1], [], []>} : vector<2x32xbf16>, vector<32x128xbf16>, vector<2x128xf32> -> vector<2x128xf32>
    %618 = arith.addf %615, %617 : vector<2x128xf32>
    %619 = arith.negf %614 : vector<2x128xf32>
    %620 = math.exp %619 : vector<2x128xf32>
    %cst_181 = arith.constant 1.000000e+00 : f32
    %621 = vector.broadcast %cst_181 : f32 to vector<2x128xf32>
    %622 = arith.addf %621, %620 : vector<2x128xf32>
    %623 = arith.divf %621, %622 : vector<2x128xf32>
    %624 = math.tanh %614 : vector<2x128xf32>
    %625 = arith.negf %618 : vector<2x128xf32>
    %626 = math.exp %625 : vector<2x128xf32>
    %cst_182 = arith.constant 1.000000e+00 : f32
    %627 = vector.broadcast %cst_182 : f32 to vector<2x128xf32>
    %628 = arith.addf %627, %626 : vector<2x128xf32>
    %629 = arith.divf %627, %628 : vector<2x128xf32>
    %630 = math.tanh %618 : vector<2x128xf32>
    %631 = vector.extract_strided_slice %623 {offsets = [0, 32], sizes = [2, 32], strides = [1, 1]} : vector<2x128xf32> to vector<2x32xf32>
    %632 = arith.mulf %631, %596 : vector<2x32xf32>
    %633 = vector.extract_strided_slice %623 {offsets = [0, 0], sizes = [2, 32], strides = [1, 1]} : vector<2x128xf32> to vector<2x32xf32>
    %634 = vector.extract_strided_slice %624 {offsets = [0, 64], sizes = [2, 32], strides = [1, 1]} : vector<2x128xf32> to vector<2x32xf32>
    %635 = arith.mulf %633, %634 : vector<2x32xf32>
    %636 = arith.addf %632, %635 : vector<2x32xf32>
    %637 = vector.extract_strided_slice %629 {offsets = [0, 32], sizes = [2, 32], strides = [1, 1]} : vector<2x128xf32> to vector<2x32xf32>
    %638 = arith.mulf %637, %602 : vector<2x32xf32>
    %639 = vector.extract_strided_slice %629 {offsets = [0, 0], sizes = [2, 32], strides = [1, 1]} : vector<2x128xf32> to vector<2x32xf32>
    %640 = vector.extract_strided_slice %630 {offsets = [0, 64], sizes = [2, 32], strides = [1, 1]} : vector<2x128xf32> to vector<2x32xf32>
    %641 = arith.mulf %639, %640 : vector<2x32xf32>
    %642 = arith.addf %638, %641 : vector<2x32xf32>
    %643 = vector.extract_strided_slice %623 {offsets = [0, 96], sizes = [2, 32], strides = [1, 1]} : vector<2x128xf32> to vector<2x32xf32>
    %644 = math.tanh %636 : vector<2x32xf32>
    %645 = arith.mulf %643, %644 : vector<2x32xf32>
    %646 = vector.extract_strided_slice %629 {offsets = [0, 96], sizes = [2, 32], strides = [1, 1]} : vector<2x128xf32> to vector<2x32xf32>
    %647 = math.tanh %642 : vector<2x32xf32>
    %648 = arith.mulf %646, %647 : vector<2x32xf32>
    %c30_183 = arith.constant 30 : index
    %c0_184 = arith.constant 0 : index
    %649 = vector.load %arg19[%c30_183, %c0_184] : memref<32x64xf32, #tpu.memory_space<vmem>>, vector<2x32xf32>
    tpu.vector_store %arg19[%c30_183, %c0_184], %645 {strides = array<i32>} : memref<32x64xf32, #tpu.memory_space<vmem>>, vector<2x32xf32>,
    %c0_185 = arith.constant 0 : index
    %c32_186 = arith.constant 32 : index
    %650 = vector.load %arg19[%c0_185, %c32_186] : memref<32x64xf32, #tpu.memory_space<vmem>>, vector<2x32xf32>
    tpu.vector_store %arg19[%c0_185, %c32_186], %648 {strides = array<i32>} : memref<32x64xf32, #tpu.memory_space<vmem>>, vector<2x32xf32>,
    %c0_187 = arith.constant 0 : index
    %c0_188 = arith.constant 0 : index
    %651 = vector.load %arg19[%c0_187, %c0_188] : memref<32x64xf32, #tpu.memory_space<vmem>>, vector<32x64xf32>
    %652 = arith.truncf %651 : vector<32x64xf32> to vector<32x64xbf16>
    %c0_189 = arith.constant 0 : index
    %c0_190 = arith.constant 0 : index
    %653 = vector.load %arg5[%c0_189, %c0_190] : memref<64x256xbf16, #tpu.memory_space<vmem>>, vector<64x256xbf16>
    %cst_191 = arith.constant dense<0.000000e+00> : vector<32x256xf32>
    %654 = tpu.matmul %652, %653, %cst_191 {dimension_numbers = #tpu.dot_dimension_numbers<[1], [0], [0], [1], [0, 0, 1, 1], [], []>} : vector<32x64xbf16>, vector<64x256xbf16>, vector<32x256xf32> -> vector<32x256xf32>
    %c0_192 = arith.constant 0 : index
    %c0_193 = arith.constant 0 : index
    %655 = vector.load %arg8[%c0_192, %c0_193] : memref<1x256xf32, #tpu.memory_space<vmem>>, vector<1x256xf32>
    %656 = vector.broadcast %655 : vector<1x256xf32> to vector<32x256xf32>
    %657 = arith.addf %654, %656 : vector<32x256xf32>
    %c0_194 = arith.constant 0 : index
    %c0_195 = arith.constant 0 : index
    %658 = vector.load %arg18[%c0_194, %c0_195] : memref<32x256xf32, #tpu.memory_space<vmem>>, vector<32x256xf32>
    tpu.vector_store %arg18[%c0_194, %c0_195], %657 {strides = array<i32>} : memref<32x256xf32, #tpu.memory_space<vmem>>, vector<32x256xf32>,
    %c0_196 = arith.constant 0 : index
    %c0_197 = arith.constant 0 : index
    %659 = vector.load %arg6[%c0_196, %c0_197] : memref<32x128xbf16, #tpu.memory_space<vmem>>, vector<32x128xbf16>
    %c0_198 = arith.constant 0 : index
    %c0_199 = arith.constant 0 : index
    %660 = vector.load %arg7[%c0_198, %c0_199] : memref<32x128xbf16, #tpu.memory_space<vmem>>, vector<32x128xbf16>
    %cst_200 = arith.constant 0.000000e+00 : f32
    %661 = vector.broadcast %cst_200 : f32 to vector<2x32xf32>
    %c0_201 = arith.constant 0 : index
    %c0_202 = arith.constant 0 : index
    %662 = vector.load %arg18[%c0_201, %c0_202] : memref<32x256xf32, #tpu.memory_space<vmem>>, vector<2x128xf32>
    %663 = arith.truncf %661 : vector<2x32xf32> to vector<2x32xbf16>
    %cst_203 = arith.constant dense<0.000000e+00> : vector<2x128xf32>
    %664 = tpu.matmul %663, %659, %cst_203 {dimension_numbers = #tpu.dot_dimension_numbers<[1], [0], [0], [1], [0, 0, 1, 1], [], []>} : vector<2x32xbf16>, vector<32x128xbf16>, vector<2x128xf32> -> vector<2x128xf32>
    %665 = arith.addf %662, %664 : vector<2x128xf32>
    %c30_204 = arith.constant 30 : index
    %c128_205 = arith.constant 128 : index
    %666 = vector.load %arg18[%c30_204, %c128_205] : memref<32x256xf32, #tpu.memory_space<vmem>>, vector<2x128xf32>
    %667 = arith.truncf %661 : vector<2x32xf32> to vector<2x32xbf16>
    %cst_206 = arith.constant dense<0.000000e+00> : vector<2x128xf32>
    %668 = tpu.matmul %667, %660, %cst_206 {dimension_numbers = #tpu.dot_dimension_numbers<[1], [0], [0], [1], [0, 0, 1, 1], [], []>} : vector<2x32xbf16>, vector<32x128xbf16>, vector<2x128xf32> -> vector<2x128xf32>
    %669 = arith.addf %666, %668 : vector<2x128xf32>
    %670 = arith.negf %665 : vector<2x128xf32>
    %671 = math.exp %670 : vector<2x128xf32>
    %cst_207 = arith.constant 1.000000e+00 : f32
    %672 = vector.broadcast %cst_207 : f32 to vector<2x128xf32>
    %673 = arith.addf %672, %671 : vector<2x128xf32>
    %674 = arith.divf %672, %673 : vector<2x128xf32>
    %675 = math.tanh %665 : vector<2x128xf32>
    %676 = arith.negf %669 : vector<2x128xf32>
    %677 = math.exp %676 : vector<2x128xf32>
    %cst_208 = arith.constant 1.000000e+00 : f32
    %678 = vector.broadcast %cst_208 : f32 to vector<2x128xf32>
    %679 = arith.addf %678, %677 : vector<2x128xf32>
    %680 = arith.divf %678, %679 : vector<2x128xf32>
    %681 = math.tanh %669 : vector<2x128xf32>
    %682 = vector.extract_strided_slice %674 {offsets = [0, 32], sizes = [2, 32], strides = [1, 1]} : vector<2x128xf32> to vector<2x32xf32>
    %683 = arith.mulf %682, %661 : vector<2x32xf32>
    %684 = vector.extract_strided_slice %674 {offsets = [0, 0], sizes = [2, 32], strides = [1, 1]} : vector<2x128xf32> to vector<2x32xf32>
    %685 = vector.extract_strided_slice %675 {offsets = [0, 64], sizes = [2, 32], strides = [1, 1]} : vector<2x128xf32> to vector<2x32xf32>
    %686 = arith.mulf %684, %685 : vector<2x32xf32>
    %687 = arith.addf %683, %686 : vector<2x32xf32>
    %688 = vector.extract_strided_slice %680 {offsets = [0, 32], sizes = [2, 32], strides = [1, 1]} : vector<2x128xf32> to vector<2x32xf32>
    %689 = arith.mulf %688, %661 : vector<2x32xf32>
    %690 = vector.extract_strided_slice %680 {offsets = [0, 0], sizes = [2, 32], strides = [1, 1]} : vector<2x128xf32> to vector<2x32xf32>
    %691 = vector.extract_strided_slice %681 {offsets = [0, 64], sizes = [2, 32], strides = [1, 1]} : vector<2x128xf32> to vector<2x32xf32>
    %692 = arith.mulf %690, %691 : vector<2x32xf32>
    %693 = arith.addf %689, %692 : vector<2x32xf32>
    %694 = vector.extract_strided_slice %674 {offsets = [0, 96], sizes = [2, 32], strides = [1, 1]} : vector<2x128xf32> to vector<2x32xf32>
    %695 = math.tanh %687 : vector<2x32xf32>
    %696 = arith.mulf %694, %695 : vector<2x32xf32>
    %697 = vector.extract_strided_slice %680 {offsets = [0, 96], sizes = [2, 32], strides = [1, 1]} : vector<2x128xf32> to vector<2x32xf32>
    %698 = math.tanh %693 : vector<2x32xf32>
    %699 = arith.mulf %697, %698 : vector<2x32xf32>
    %c2_209 = arith.constant 2 : index
    %c0_210 = arith.constant 0 : index
    %700 = vector.load %arg18[%c2_209, %c0_210] : memref<32x256xf32, #tpu.memory_space<vmem>>, vector<2x128xf32>
    %701 = arith.truncf %696 : vector<2x32xf32> to vector<2x32xbf16>
    %cst_211 = arith.constant dense<0.000000e+00> : vector<2x128xf32>
    %702 = tpu.matmul %701, %659, %cst_211 {dimension_numbers = #tpu.dot_dimension_numbers<[1], [0], [0], [1], [0, 0, 1, 1], [], []>} : vector<2x32xbf16>, vector<32x128xbf16>, vector<2x128xf32> -> vector<2x128xf32>
    %703 = arith.addf %700, %702 : vector<2x128xf32>
    %704 = arith.negf %703 : vector<2x128xf32>
    %705 = math.exp %704 : vector<2x128xf32>
    %cst_212 = arith.constant 1.000000e+00 : f32
    %706 = vector.broadcast %cst_212 : f32 to vector<2x128xf32>
    %707 = arith.addf %706, %705 : vector<2x128xf32>
    %708 = arith.divf %706, %707 : vector<2x128xf32>
    %709 = math.tanh %703 : vector<2x128xf32>
    %710 = vector.extract_strided_slice %708 {offsets = [0, 32], sizes = [2, 32], strides = [1, 1]} : vector<2x128xf32> to vector<2x32xf32>
    %711 = arith.mulf %710, %687 : vector<2x32xf32>
    %712 = vector.extract_strided_slice %708 {offsets = [0, 0], sizes = [2, 32], strides = [1, 1]} : vector<2x128xf32> to vector<2x32xf32>
    %713 = vector.extract_strided_slice %709 {offsets = [0, 64], sizes = [2, 32], strides = [1, 1]} : vector<2x128xf32> to vector<2x32xf32>
    %714 = arith.mulf %712, %713 : vector<2x32xf32>
    %715 = arith.addf %711, %714 : vector<2x32xf32>
    %716 = vector.extract_strided_slice %708 {offsets = [0, 96], sizes = [2, 32], strides = [1, 1]} : vector<2x128xf32> to vector<2x32xf32>
    %717 = math.tanh %715 : vector<2x32xf32>
    %718 = arith.mulf %716, %717 : vector<2x32xf32>
    %c4_213 = arith.constant 4 : index
    %c0_214 = arith.constant 0 : index
    %719 = vector.load %arg18[%c4_213, %c0_214] : memref<32x256xf32, #tpu.memory_space<vmem>>, vector<2x128xf32>
    %720 = arith.truncf %718 : vector<2x32xf32> to vector<2x32xbf16>
    %cst_215 = arith.constant dense<0.000000e+00> : vector<2x128xf32>
    %721 = tpu.matmul %720, %659, %cst_215 {dimension_numbers = #tpu.dot_dimension_numbers<[1], [0], [0], [1], [0, 0, 1, 1], [], []>} : vector<2x32xbf16>, vector<32x128xbf16>, vector<2x128xf32> -> vector<2x128xf32>
    %722 = arith.addf %719, %721 : vector<2x128xf32>
    %723 = arith.negf %722 : vector<2x128xf32>
    %724 = math.exp %723 : vector<2x128xf32>
    %cst_216 = arith.constant 1.000000e+00 : f32
    %725 = vector.broadcast %cst_216 : f32 to vector<2x128xf32>
    %726 = arith.addf %725, %724 : vector<2x128xf32>
    %727 = arith.divf %725, %726 : vector<2x128xf32>
    %728 = math.tanh %722 : vector<2x128xf32>
    %729 = vector.extract_strided_slice %727 {offsets = [0, 32], sizes = [2, 32], strides = [1, 1]} : vector<2x128xf32> to vector<2x32xf32>
    %730 = arith.mulf %729, %715 : vector<2x32xf32>
    %731 = vector.extract_strided_slice %727 {offsets = [0, 0], sizes = [2, 32], strides = [1, 1]} : vector<2x128xf32> to vector<2x32xf32>
    %732 = vector.extract_strided_slice %728 {offsets = [0, 64], sizes = [2, 32], strides = [1, 1]} : vector<2x128xf32> to vector<2x32xf32>
    %733 = arith.mulf %731, %732 : vector<2x32xf32>
    %734 = arith.addf %730, %733 : vector<2x32xf32>
    %735 = vector.extract_strided_slice %727 {offsets = [0, 96], sizes = [2, 32], strides = [1, 1]} : vector<2x128xf32> to vector<2x32xf32>
    %736 = math.tanh %734 : vector<2x32xf32>
    %737 = arith.mulf %735, %736 : vector<2x32xf32>
    %c6_217 = arith.constant 6 : index
    %c0_218 = arith.constant 0 : index
    %738 = vector.load %arg18[%c6_217, %c0_218] : memref<32x256xf32, #tpu.memory_space<vmem>>, vector<2x128xf32>
    %739 = arith.truncf %737 : vector<2x32xf32> to vector<2x32xbf16>
    %cst_219 = arith.constant dense<0.000000e+00> : vector<2x128xf32>
    %740 = tpu.matmul %739, %659, %cst_219 {dimension_numbers = #tpu.dot_dimension_numbers<[1], [0], [0], [1], [0, 0, 1, 1], [], []>} : vector<2x32xbf16>, vector<32x128xbf16>, vector<2x128xf32> -> vector<2x128xf32>
    %741 = arith.addf %738, %740 : vector<2x128xf32>
    %742 = arith.negf %741 : vector<2x128xf32>
    %743 = math.exp %742 : vector<2x128xf32>
    %cst_220 = arith.constant 1.000000e+00 : f32
    %744 = vector.broadcast %cst_220 : f32 to vector<2x128xf32>
    %745 = arith.addf %744, %743 : vector<2x128xf32>
    %746 = arith.divf %744, %745 : vector<2x128xf32>
    %747 = math.tanh %741 : vector<2x128xf32>
    %748 = vector.extract_strided_slice %746 {offsets = [0, 32], sizes = [2, 32], strides = [1, 1]} : vector<2x128xf32> to vector<2x32xf32>
    %749 = arith.mulf %748, %734 : vector<2x32xf32>
    %750 = vector.extract_strided_slice %746 {offsets = [0, 0], sizes = [2, 32], strides = [1, 1]} : vector<2x128xf32> to vector<2x32xf32>
    %751 = vector.extract_strided_slice %747 {offsets = [0, 64], sizes = [2, 32], strides = [1, 1]} : vector<2x128xf32> to vector<2x32xf32>
    %752 = arith.mulf %750, %751 : vector<2x32xf32>
    %753 = arith.addf %749, %752 : vector<2x32xf32>
    %754 = vector.extract_strided_slice %746 {offsets = [0, 96], sizes = [2, 32], strides = [1, 1]} : vector<2x128xf32> to vector<2x32xf32>
    %755 = math.tanh %753 : vector<2x32xf32>
    %756 = arith.mulf %754, %755 : vector<2x32xf32>
    %c8_221 = arith.constant 8 : index
    %c0_222 = arith.constant 0 : index
    %757 = vector.load %arg18[%c8_221, %c0_222] : memref<32x256xf32, #tpu.memory_space<vmem>>, vector<2x128xf32>
    %758 = arith.truncf %756 : vector<2x32xf32> to vector<2x32xbf16>
    %cst_223 = arith.constant dense<0.000000e+00> : vector<2x128xf32>
    %759 = tpu.matmul %758, %659, %cst_223 {dimension_numbers = #tpu.dot_dimension_numbers<[1], [0], [0], [1], [0, 0, 1, 1], [], []>} : vector<2x32xbf16>, vector<32x128xbf16>, vector<2x128xf32> -> vector<2x128xf32>
    %760 = arith.addf %757, %759 : vector<2x128xf32>
    %761 = arith.negf %760 : vector<2x128xf32>
    %762 = math.exp %761 : vector<2x128xf32>
    %cst_224 = arith.constant 1.000000e+00 : f32
    %763 = vector.broadcast %cst_224 : f32 to vector<2x128xf32>
    %764 = arith.addf %763, %762 : vector<2x128xf32>
    %765 = arith.divf %763, %764 : vector<2x128xf32>
    %766 = math.tanh %760 : vector<2x128xf32>
    %767 = vector.extract_strided_slice %765 {offsets = [0, 32], sizes = [2, 32], strides = [1, 1]} : vector<2x128xf32> to vector<2x32xf32>
    %768 = arith.mulf %767, %753 : vector<2x32xf32>
    %769 = vector.extract_strided_slice %765 {offsets = [0, 0], sizes = [2, 32], strides = [1, 1]} : vector<2x128xf32> to vector<2x32xf32>
    %770 = vector.extract_strided_slice %766 {offsets = [0, 64], sizes = [2, 32], strides = [1, 1]} : vector<2x128xf32> to vector<2x32xf32>
    %771 = arith.mulf %769, %770 : vector<2x32xf32>
    %772 = arith.addf %768, %771 : vector<2x32xf32>
    %773 = vector.extract_strided_slice %765 {offsets = [0, 96], sizes = [2, 32], strides = [1, 1]} : vector<2x128xf32> to vector<2x32xf32>
    %774 = math.tanh %772 : vector<2x32xf32>
    %775 = arith.mulf %773, %774 : vector<2x32xf32>
    %c10_225 = arith.constant 10 : index
    %c0_226 = arith.constant 0 : index
    %776 = vector.load %arg18[%c10_225, %c0_226] : memref<32x256xf32, #tpu.memory_space<vmem>>, vector<2x128xf32>
    %777 = arith.truncf %775 : vector<2x32xf32> to vector<2x32xbf16>
    %cst_227 = arith.constant dense<0.000000e+00> : vector<2x128xf32>
    %778 = tpu.matmul %777, %659, %cst_227 {dimension_numbers = #tpu.dot_dimension_numbers<[1], [0], [0], [1], [0, 0, 1, 1], [], []>} : vector<2x32xbf16>, vector<32x128xbf16>, vector<2x128xf32> -> vector<2x128xf32>
    %779 = arith.addf %776, %778 : vector<2x128xf32>
    %780 = arith.negf %779 : vector<2x128xf32>
    %781 = math.exp %780 : vector<2x128xf32>
    %cst_228 = arith.constant 1.000000e+00 : f32
    %782 = vector.broadcast %cst_228 : f32 to vector<2x128xf32>
    %783 = arith.addf %782, %781 : vector<2x128xf32>
    %784 = arith.divf %782, %783 : vector<2x128xf32>
    %785 = math.tanh %779 : vector<2x128xf32>
    %786 = vector.extract_strided_slice %784 {offsets = [0, 32], sizes = [2, 32], strides = [1, 1]} : vector<2x128xf32> to vector<2x32xf32>
    %787 = arith.mulf %786, %772 : vector<2x32xf32>
    %788 = vector.extract_strided_slice %784 {offsets = [0, 0], sizes = [2, 32], strides = [1, 1]} : vector<2x128xf32> to vector<2x32xf32>
    %789 = vector.extract_strided_slice %785 {offsets = [0, 64], sizes = [2, 32], strides = [1, 1]} : vector<2x128xf32> to vector<2x32xf32>
    %790 = arith.mulf %788, %789 : vector<2x32xf32>
    %791 = arith.addf %787, %790 : vector<2x32xf32>
    %792 = vector.extract_strided_slice %784 {offsets = [0, 96], sizes = [2, 32], strides = [1, 1]} : vector<2x128xf32> to vector<2x32xf32>
    %793 = math.tanh %791 : vector<2x32xf32>
    %794 = arith.mulf %792, %793 : vector<2x32xf32>
    %c12_229 = arith.constant 12 : index
    %c0_230 = arith.constant 0 : index
    %795 = vector.load %arg18[%c12_229, %c0_230] : memref<32x256xf32, #tpu.memory_space<vmem>>, vector<2x128xf32>
    %796 = arith.truncf %794 : vector<2x32xf32> to vector<2x32xbf16>
    %cst_231 = arith.constant dense<0.000000e+00> : vector<2x128xf32>
    %797 = tpu.matmul %796, %659, %cst_231 {dimension_numbers = #tpu.dot_dimension_numbers<[1], [0], [0], [1], [0, 0, 1, 1], [], []>} : vector<2x32xbf16>, vector<32x128xbf16>, vector<2x128xf32> -> vector<2x128xf32>
    %798 = arith.addf %795, %797 : vector<2x128xf32>
    %799 = arith.negf %798 : vector<2x128xf32>
    %800 = math.exp %799 : vector<2x128xf32>
    %cst_232 = arith.constant 1.000000e+00 : f32
    %801 = vector.broadcast %cst_232 : f32 to vector<2x128xf32>
    %802 = arith.addf %801, %800 : vector<2x128xf32>
    %803 = arith.divf %801, %802 : vector<2x128xf32>
    %804 = math.tanh %798 : vector<2x128xf32>
    %805 = vector.extract_strided_slice %803 {offsets = [0, 32], sizes = [2, 32], strides = [1, 1]} : vector<2x128xf32> to vector<2x32xf32>
    %806 = arith.mulf %805, %791 : vector<2x32xf32>
    %807 = vector.extract_strided_slice %803 {offsets = [0, 0], sizes = [2, 32], strides = [1, 1]} : vector<2x128xf32> to vector<2x32xf32>
    %808 = vector.extract_strided_slice %804 {offsets = [0, 64], sizes = [2, 32], strides = [1, 1]} : vector<2x128xf32> to vector<2x32xf32>
    %809 = arith.mulf %807, %808 : vector<2x32xf32>
    %810 = arith.addf %806, %809 : vector<2x32xf32>
    %811 = vector.extract_strided_slice %803 {offsets = [0, 96], sizes = [2, 32], strides = [1, 1]} : vector<2x128xf32> to vector<2x32xf32>
    %812 = math.tanh %810 : vector<2x32xf32>
    %813 = arith.mulf %811, %812 : vector<2x32xf32>
    %c14_233 = arith.constant 14 : index
    %c0_234 = arith.constant 0 : index
    %814 = vector.load %arg18[%c14_233, %c0_234] : memref<32x256xf32, #tpu.memory_space<vmem>>, vector<2x128xf32>
    %815 = arith.truncf %813 : vector<2x32xf32> to vector<2x32xbf16>
    %cst_235 = arith.constant dense<0.000000e+00> : vector<2x128xf32>
    %816 = tpu.matmul %815, %659, %cst_235 {dimension_numbers = #tpu.dot_dimension_numbers<[1], [0], [0], [1], [0, 0, 1, 1], [], []>} : vector<2x32xbf16>, vector<32x128xbf16>, vector<2x128xf32> -> vector<2x128xf32>
    %817 = arith.addf %814, %816 : vector<2x128xf32>
    %818 = arith.negf %817 : vector<2x128xf32>
    %819 = math.exp %818 : vector<2x128xf32>
    %cst_236 = arith.constant 1.000000e+00 : f32
    %820 = vector.broadcast %cst_236 : f32 to vector<2x128xf32>
    %821 = arith.addf %820, %819 : vector<2x128xf32>
    %822 = arith.divf %820, %821 : vector<2x128xf32>
    %823 = math.tanh %817 : vector<2x128xf32>
    %824 = vector.extract_strided_slice %822 {offsets = [0, 32], sizes = [2, 32], strides = [1, 1]} : vector<2x128xf32> to vector<2x32xf32>
    %825 = arith.mulf %824, %810 : vector<2x32xf32>
    %826 = vector.extract_strided_slice %822 {offsets = [0, 0], sizes = [2, 32], strides = [1, 1]} : vector<2x128xf32> to vector<2x32xf32>
    %827 = vector.extract_strided_slice %823 {offsets = [0, 64], sizes = [2, 32], strides = [1, 1]} : vector<2x128xf32> to vector<2x32xf32>
    %828 = arith.mulf %826, %827 : vector<2x32xf32>
    %829 = arith.addf %825, %828 : vector<2x32xf32>
    %830 = vector.extract_strided_slice %822 {offsets = [0, 96], sizes = [2, 32], strides = [1, 1]} : vector<2x128xf32> to vector<2x32xf32>
    %831 = math.tanh %829 : vector<2x32xf32>
    %832 = arith.mulf %830, %831 : vector<2x32xf32>
    %c16_237 = arith.constant 16 : index
    %c0_238 = arith.constant 0 : index
    %833 = vector.load %arg18[%c16_237, %c0_238] : memref<32x256xf32, #tpu.memory_space<vmem>>, vector<2x128xf32>
    %834 = arith.truncf %832 : vector<2x32xf32> to vector<2x32xbf16>
    %cst_239 = arith.constant dense<0.000000e+00> : vector<2x128xf32>
    %835 = tpu.matmul %834, %659, %cst_239 {dimension_numbers = #tpu.dot_dimension_numbers<[1], [0], [0], [1], [0, 0, 1, 1], [], []>} : vector<2x32xbf16>, vector<32x128xbf16>, vector<2x128xf32> -> vector<2x128xf32>
    %836 = arith.addf %833, %835 : vector<2x128xf32>
    %837 = arith.negf %836 : vector<2x128xf32>
    %838 = math.exp %837 : vector<2x128xf32>
    %cst_240 = arith.constant 1.000000e+00 : f32
    %839 = vector.broadcast %cst_240 : f32 to vector<2x128xf32>
    %840 = arith.addf %839, %838 : vector<2x128xf32>
    %841 = arith.divf %839, %840 : vector<2x128xf32>
    %842 = math.tanh %836 : vector<2x128xf32>
    %843 = vector.extract_strided_slice %841 {offsets = [0, 32], sizes = [2, 32], strides = [1, 1]} : vector<2x128xf32> to vector<2x32xf32>
    %844 = arith.mulf %843, %829 : vector<2x32xf32>
    %845 = vector.extract_strided_slice %841 {offsets = [0, 0], sizes = [2, 32], strides = [1, 1]} : vector<2x128xf32> to vector<2x32xf32>
    %846 = vector.extract_strided_slice %842 {offsets = [0, 64], sizes = [2, 32], strides = [1, 1]} : vector<2x128xf32> to vector<2x32xf32>
    %847 = arith.mulf %845, %846 : vector<2x32xf32>
    %848 = arith.addf %844, %847 : vector<2x32xf32>
    %849 = vector.extract_strided_slice %841 {offsets = [0, 96], sizes = [2, 32], strides = [1, 1]} : vector<2x128xf32> to vector<2x32xf32>
    %850 = math.tanh %848 : vector<2x32xf32>
    %851 = arith.mulf %849, %850 : vector<2x32xf32>
    %c18_241 = arith.constant 18 : index
    %c0_242 = arith.constant 0 : index
    %852 = vector.load %arg18[%c18_241, %c0_242] : memref<32x256xf32, #tpu.memory_space<vmem>>, vector<2x128xf32>
    %853 = arith.truncf %851 : vector<2x32xf32> to vector<2x32xbf16>
    %cst_243 = arith.constant dense<0.000000e+00> : vector<2x128xf32>
    %854 = tpu.matmul %853, %659, %cst_243 {dimension_numbers = #tpu.dot_dimension_numbers<[1], [0], [0], [1], [0, 0, 1, 1], [], []>} : vector<2x32xbf16>, vector<32x128xbf16>, vector<2x128xf32> -> vector<2x128xf32>
    %855 = arith.addf %852, %854 : vector<2x128xf32>
    %856 = arith.negf %855 : vector<2x128xf32>
    %857 = math.exp %856 : vector<2x128xf32>
    %cst_244 = arith.constant 1.000000e+00 : f32
    %858 = vector.broadcast %cst_244 : f32 to vector<2x128xf32>
    %859 = arith.addf %858, %857 : vector<2x128xf32>
    %860 = arith.divf %858, %859 : vector<2x128xf32>
    %861 = math.tanh %855 : vector<2x128xf32>
    %862 = vector.extract_strided_slice %860 {offsets = [0, 32], sizes = [2, 32], strides = [1, 1]} : vector<2x128xf32> to vector<2x32xf32>
    %863 = arith.mulf %862, %848 : vector<2x32xf32>
    %864 = vector.extract_strided_slice %860 {offsets = [0, 0], sizes = [2, 32], strides = [1, 1]} : vector<2x128xf32> to vector<2x32xf32>
    %865 = vector.extract_strided_slice %861 {offsets = [0, 64], sizes = [2, 32], strides = [1, 1]} : vector<2x128xf32> to vector<2x32xf32>
    %866 = arith.mulf %864, %865 : vector<2x32xf32>
    %867 = arith.addf %863, %866 : vector<2x32xf32>
    %868 = vector.extract_strided_slice %860 {offsets = [0, 96], sizes = [2, 32], strides = [1, 1]} : vector<2x128xf32> to vector<2x32xf32>
    %869 = math.tanh %867 : vector<2x32xf32>
    %870 = arith.mulf %868, %869 : vector<2x32xf32>
    %c20_245 = arith.constant 20 : index
    %c0_246 = arith.constant 0 : index
    %871 = vector.load %arg18[%c20_245, %c0_246] : memref<32x256xf32, #tpu.memory_space<vmem>>, vector<2x128xf32>
    %872 = arith.truncf %870 : vector<2x32xf32> to vector<2x32xbf16>
    %cst_247 = arith.constant dense<0.000000e+00> : vector<2x128xf32>
    %873 = tpu.matmul %872, %659, %cst_247 {dimension_numbers = #tpu.dot_dimension_numbers<[1], [0], [0], [1], [0, 0, 1, 1], [], []>} : vector<2x32xbf16>, vector<32x128xbf16>, vector<2x128xf32> -> vector<2x128xf32>
    %874 = arith.addf %871, %873 : vector<2x128xf32>
    %875 = arith.negf %874 : vector<2x128xf32>
    %876 = math.exp %875 : vector<2x128xf32>
    %cst_248 = arith.constant 1.000000e+00 : f32
    %877 = vector.broadcast %cst_248 : f32 to vector<2x128xf32>
    %878 = arith.addf %877, %876 : vector<2x128xf32>
    %879 = arith.divf %877, %878 : vector<2x128xf32>
    %880 = math.tanh %874 : vector<2x128xf32>
    %881 = vector.extract_strided_slice %879 {offsets = [0, 32], sizes = [2, 32], strides = [1, 1]} : vector<2x128xf32> to vector<2x32xf32>
    %882 = arith.mulf %881, %867 : vector<2x32xf32>
    %883 = vector.extract_strided_slice %879 {offsets = [0, 0], sizes = [2, 32], strides = [1, 1]} : vector<2x128xf32> to vector<2x32xf32>
    %884 = vector.extract_strided_slice %880 {offsets = [0, 64], sizes = [2, 32], strides = [1, 1]} : vector<2x128xf32> to vector<2x32xf32>
    %885 = arith.mulf %883, %884 : vector<2x32xf32>
    %886 = arith.addf %882, %885 : vector<2x32xf32>
    %887 = vector.extract_strided_slice %879 {offsets = [0, 96], sizes = [2, 32], strides = [1, 1]} : vector<2x128xf32> to vector<2x32xf32>
    %888 = math.tanh %886 : vector<2x32xf32>
    %889 = arith.mulf %887, %888 : vector<2x32xf32>
    %c22_249 = arith.constant 22 : index
    %c0_250 = arith.constant 0 : index
    %890 = vector.load %arg18[%c22_249, %c0_250] : memref<32x256xf32, #tpu.memory_space<vmem>>, vector<2x128xf32>
    %891 = arith.truncf %889 : vector<2x32xf32> to vector<2x32xbf16>
    %cst_251 = arith.constant dense<0.000000e+00> : vector<2x128xf32>
    %892 = tpu.matmul %891, %659, %cst_251 {dimension_numbers = #tpu.dot_dimension_numbers<[1], [0], [0], [1], [0, 0, 1, 1], [], []>} : vector<2x32xbf16>, vector<32x128xbf16>, vector<2x128xf32> -> vector<2x128xf32>
    %893 = arith.addf %890, %892 : vector<2x128xf32>
    %894 = arith.negf %893 : vector<2x128xf32>
    %895 = math.exp %894 : vector<2x128xf32>
    %cst_252 = arith.constant 1.000000e+00 : f32
    %896 = vector.broadcast %cst_252 : f32 to vector<2x128xf32>
    %897 = arith.addf %896, %895 : vector<2x128xf32>
    %898 = arith.divf %896, %897 : vector<2x128xf32>
    %899 = math.tanh %893 : vector<2x128xf32>
    %900 = vector.extract_strided_slice %898 {offsets = [0, 32], sizes = [2, 32], strides = [1, 1]} : vector<2x128xf32> to vector<2x32xf32>
    %901 = arith.mulf %900, %886 : vector<2x32xf32>
    %902 = vector.extract_strided_slice %898 {offsets = [0, 0], sizes = [2, 32], strides = [1, 1]} : vector<2x128xf32> to vector<2x32xf32>
    %903 = vector.extract_strided_slice %899 {offsets = [0, 64], sizes = [2, 32], strides = [1, 1]} : vector<2x128xf32> to vector<2x32xf32>
    %904 = arith.mulf %902, %903 : vector<2x32xf32>
    %905 = arith.addf %901, %904 : vector<2x32xf32>
    %906 = vector.extract_strided_slice %898 {offsets = [0, 96], sizes = [2, 32], strides = [1, 1]} : vector<2x128xf32> to vector<2x32xf32>
    %907 = math.tanh %905 : vector<2x32xf32>
    %908 = arith.mulf %906, %907 : vector<2x32xf32>
    %c24_253 = arith.constant 24 : index
    %c0_254 = arith.constant 0 : index
    %909 = vector.load %arg18[%c24_253, %c0_254] : memref<32x256xf32, #tpu.memory_space<vmem>>, vector<2x128xf32>
    %910 = arith.truncf %908 : vector<2x32xf32> to vector<2x32xbf16>
    %cst_255 = arith.constant dense<0.000000e+00> : vector<2x128xf32>
    %911 = tpu.matmul %910, %659, %cst_255 {dimension_numbers = #tpu.dot_dimension_numbers<[1], [0], [0], [1], [0, 0, 1, 1], [], []>} : vector<2x32xbf16>, vector<32x128xbf16>, vector<2x128xf32> -> vector<2x128xf32>
    %912 = arith.addf %909, %911 : vector<2x128xf32>
    %913 = arith.negf %912 : vector<2x128xf32>
    %914 = math.exp %913 : vector<2x128xf32>
    %cst_256 = arith.constant 1.000000e+00 : f32
    %915 = vector.broadcast %cst_256 : f32 to vector<2x128xf32>
    %916 = arith.addf %915, %914 : vector<2x128xf32>
    %917 = arith.divf %915, %916 : vector<2x128xf32>
    %918 = math.tanh %912 : vector<2x128xf32>
    %919 = vector.extract_strided_slice %917 {offsets = [0, 32], sizes = [2, 32], strides = [1, 1]} : vector<2x128xf32> to vector<2x32xf32>
    %920 = arith.mulf %919, %905 : vector<2x32xf32>
    %921 = vector.extract_strided_slice %917 {offsets = [0, 0], sizes = [2, 32], strides = [1, 1]} : vector<2x128xf32> to vector<2x32xf32>
    %922 = vector.extract_strided_slice %918 {offsets = [0, 64], sizes = [2, 32], strides = [1, 1]} : vector<2x128xf32> to vector<2x32xf32>
    %923 = arith.mulf %921, %922 : vector<2x32xf32>
    %924 = arith.addf %920, %923 : vector<2x32xf32>
    %925 = vector.extract_strided_slice %917 {offsets = [0, 96], sizes = [2, 32], strides = [1, 1]} : vector<2x128xf32> to vector<2x32xf32>
    %926 = math.tanh %924 : vector<2x32xf32>
    %927 = arith.mulf %925, %926 : vector<2x32xf32>
    %c26_257 = arith.constant 26 : index
    %c0_258 = arith.constant 0 : index
    %928 = vector.load %arg18[%c26_257, %c0_258] : memref<32x256xf32, #tpu.memory_space<vmem>>, vector<2x128xf32>
    %929 = arith.truncf %927 : vector<2x32xf32> to vector<2x32xbf16>
    %cst_259 = arith.constant dense<0.000000e+00> : vector<2x128xf32>
    %930 = tpu.matmul %929, %659, %cst_259 {dimension_numbers = #tpu.dot_dimension_numbers<[1], [0], [0], [1], [0, 0, 1, 1], [], []>} : vector<2x32xbf16>, vector<32x128xbf16>, vector<2x128xf32> -> vector<2x128xf32>
    %931 = arith.addf %928, %930 : vector<2x128xf32>
    %932 = arith.negf %931 : vector<2x128xf32>
    %933 = math.exp %932 : vector<2x128xf32>
    %cst_260 = arith.constant 1.000000e+00 : f32
    %934 = vector.broadcast %cst_260 : f32 to vector<2x128xf32>
    %935 = arith.addf %934, %933 : vector<2x128xf32>
    %936 = arith.divf %934, %935 : vector<2x128xf32>
    %937 = math.tanh %931 : vector<2x128xf32>
    %938 = vector.extract_strided_slice %936 {offsets = [0, 32], sizes = [2, 32], strides = [1, 1]} : vector<2x128xf32> to vector<2x32xf32>
    %939 = arith.mulf %938, %924 : vector<2x32xf32>
    %940 = vector.extract_strided_slice %936 {offsets = [0, 0], sizes = [2, 32], strides = [1, 1]} : vector<2x128xf32> to vector<2x32xf32>
    %941 = vector.extract_strided_slice %937 {offsets = [0, 64], sizes = [2, 32], strides = [1, 1]} : vector<2x128xf32> to vector<2x32xf32>
    %942 = arith.mulf %940, %941 : vector<2x32xf32>
    %943 = arith.addf %939, %942 : vector<2x32xf32>
    %944 = vector.extract_strided_slice %936 {offsets = [0, 96], sizes = [2, 32], strides = [1, 1]} : vector<2x128xf32> to vector<2x32xf32>
    %945 = math.tanh %943 : vector<2x32xf32>
    %946 = arith.mulf %944, %945 : vector<2x32xf32>
    %c28_261 = arith.constant 28 : index
    %c0_262 = arith.constant 0 : index
    %947 = vector.load %arg18[%c28_261, %c0_262] : memref<32x256xf32, #tpu.memory_space<vmem>>, vector<2x128xf32>
    %948 = arith.truncf %946 : vector<2x32xf32> to vector<2x32xbf16>
    %cst_263 = arith.constant dense<0.000000e+00> : vector<2x128xf32>
    %949 = tpu.matmul %948, %659, %cst_263 {dimension_numbers = #tpu.dot_dimension_numbers<[1], [0], [0], [1], [0, 0, 1, 1], [], []>} : vector<2x32xbf16>, vector<32x128xbf16>, vector<2x128xf32> -> vector<2x128xf32>
    %950 = arith.addf %947, %949 : vector<2x128xf32>
    %951 = arith.negf %950 : vector<2x128xf32>
    %952 = math.exp %951 : vector<2x128xf32>
    %cst_264 = arith.constant 1.000000e+00 : f32
    %953 = vector.broadcast %cst_264 : f32 to vector<2x128xf32>
    %954 = arith.addf %953, %952 : vector<2x128xf32>
    %955 = arith.divf %953, %954 : vector<2x128xf32>
    %956 = math.tanh %950 : vector<2x128xf32>
    %957 = vector.extract_strided_slice %955 {offsets = [0, 32], sizes = [2, 32], strides = [1, 1]} : vector<2x128xf32> to vector<2x32xf32>
    %958 = arith.mulf %957, %943 : vector<2x32xf32>
    %959 = vector.extract_strided_slice %955 {offsets = [0, 0], sizes = [2, 32], strides = [1, 1]} : vector<2x128xf32> to vector<2x32xf32>
    %960 = vector.extract_strided_slice %956 {offsets = [0, 64], sizes = [2, 32], strides = [1, 1]} : vector<2x128xf32> to vector<2x32xf32>
    %961 = arith.mulf %959, %960 : vector<2x32xf32>
    %962 = arith.addf %958, %961 : vector<2x32xf32>
    %963 = vector.extract_strided_slice %955 {offsets = [0, 96], sizes = [2, 32], strides = [1, 1]} : vector<2x128xf32> to vector<2x32xf32>
    %964 = math.tanh %962 : vector<2x32xf32>
    %965 = arith.mulf %963, %964 : vector<2x32xf32>
    %c30_265 = arith.constant 30 : index
    %c0_266 = arith.constant 0 : index
    %966 = vector.load %arg18[%c30_265, %c0_266] : memref<32x256xf32, #tpu.memory_space<vmem>>, vector<2x128xf32>
    %967 = arith.truncf %965 : vector<2x32xf32> to vector<2x32xbf16>
    %cst_267 = arith.constant dense<0.000000e+00> : vector<2x128xf32>
    %968 = tpu.matmul %967, %659, %cst_267 {dimension_numbers = #tpu.dot_dimension_numbers<[1], [0], [0], [1], [0, 0, 1, 1], [], []>} : vector<2x32xbf16>, vector<32x128xbf16>, vector<2x128xf32> -> vector<2x128xf32>
    %969 = arith.addf %966, %968 : vector<2x128xf32>
    %970 = arith.negf %969 : vector<2x128xf32>
    %971 = math.exp %970 : vector<2x128xf32>
    %cst_268 = arith.constant 1.000000e+00 : f32
    %972 = vector.broadcast %cst_268 : f32 to vector<2x128xf32>
    %973 = arith.addf %972, %971 : vector<2x128xf32>
    %974 = arith.divf %972, %973 : vector<2x128xf32>
    %975 = math.tanh %969 : vector<2x128xf32>
    %976 = vector.extract_strided_slice %974 {offsets = [0, 32], sizes = [2, 32], strides = [1, 1]} : vector<2x128xf32> to vector<2x32xf32>
    %977 = arith.mulf %976, %962 : vector<2x32xf32>
    %978 = vector.extract_strided_slice %974 {offsets = [0, 0], sizes = [2, 32], strides = [1, 1]} : vector<2x128xf32> to vector<2x32xf32>
    %979 = vector.extract_strided_slice %975 {offsets = [0, 64], sizes = [2, 32], strides = [1, 1]} : vector<2x128xf32> to vector<2x32xf32>
    %980 = arith.mulf %978, %979 : vector<2x32xf32>
    %981 = arith.addf %977, %980 : vector<2x32xf32>
    %982 = vector.extract_strided_slice %974 {offsets = [0, 96], sizes = [2, 32], strides = [1, 1]} : vector<2x128xf32> to vector<2x32xf32>
    %983 = math.tanh %981 : vector<2x32xf32>
    %984 = arith.mulf %982, %983 : vector<2x32xf32>
    %985 = tpu.concatenate %984, %699 in 1 : vector<2x32xf32>, vector<2x32xf32> -> vector<2x64xf32>
    %cst_269 = arith.constant dense<0.000000e+00> : vector<2xf32>
    %986 = vector.multi_reduction <add>, %985, %cst_269 [1] : vector<2x64xf32> to vector<2xf32>
    %987 = vector.shape_cast %986 : vector<2xf32> to vector<2x1xf32>
    %cst_270 = arith.constant 6.400000e+01 : f32
    %988 = vector.broadcast %cst_270 : f32 to vector<2x1xf32>
    %989 = arith.divf %987, %988 : vector<2x1xf32>
    %990 = vector.broadcast %989 : vector<2x1xf32> to vector<2x64xf32>
    %991 = arith.subf %985, %990 : vector<2x64xf32>
    %992 = arith.mulf %991, %991 : vector<2x64xf32>
    %cst_271 = arith.constant dense<0.000000e+00> : vector<2xf32>
    %993 = vector.multi_reduction <add>, %992, %cst_271 [1] : vector<2x64xf32> to vector<2xf32>
    %994 = vector.shape_cast %993 : vector<2xf32> to vector<2x1xf32>
    %cst_272 = arith.constant 6.400000e+01 : f32
    %995 = vector.broadcast %cst_272 : f32 to vector<2x1xf32>
    %996 = arith.divf %994, %995 : vector<2x1xf32>
    %997 = vector.broadcast %989 : vector<2x1xf32> to vector<2x64xf32>
    %998 = arith.subf %985, %997 : vector<2x64xf32>
    %cst_273 = arith.constant 9.99999974E-6 : f32
    %999 = vector.broadcast %cst_273 : f32 to vector<2x1xf32>
    %1000 = arith.addf %996, %999 : vector<2x1xf32>
    %1001 = math.rsqrt %1000 : vector<2x1xf32>
    %1002 = vector.broadcast %1001 : vector<2x1xf32> to vector<2x64xf32>
    %1003 = arith.mulf %998, %1002 : vector<2x64xf32>
    %c0_274 = arith.constant 0 : index
    %c0_275 = arith.constant 0 : index
    %1004 = vector.load %arg9[%c0_274, %c0_275] : memref<1x64xf32, #tpu.memory_space<vmem>>, vector<1x64xf32>
    %1005 = vector.broadcast %1004 : vector<1x64xf32> to vector<2x64xf32>
    %1006 = arith.mulf %1003, %1005 : vector<2x64xf32>
    %c0_276 = arith.constant 0 : index
    %c0_277 = arith.constant 0 : index
    %1007 = vector.load %arg10[%c0_276, %c0_277] : memref<1x64xf32, #tpu.memory_space<vmem>>, vector<1x64xf32>
    %1008 = vector.broadcast %1007 : vector<1x64xf32> to vector<2x64xf32>
    %1009 = arith.addf %1006, %1008 : vector<2x64xf32>
    %c0_278 = arith.constant 0 : index
    %c0_279 = arith.constant 0 : index
    %1010 = vector.load %arg11[%c0_278, %c0_279] : memref<64x32xf32, #tpu.memory_space<vmem>>, vector<64x32xf32>
    %cst_280 = arith.constant dense<0.000000e+00> : vector<2x32xf32>
    %1011 = tpu.matmul %1009, %1010, %cst_280 {dimension_numbers = #tpu.dot_dimension_numbers<[1], [0], [0], [1], [0, 0, 1, 1], [], []>} : vector<2x64xf32>, vector<64x32xf32>, vector<2x32xf32> -> vector<2x32xf32>
    %c0_281 = arith.constant 0 : index
    %c0_282 = arith.constant 0 : index
    %1012 = vector.load %arg12[%c0_281, %c0_282] : memref<1x32xf32, #tpu.memory_space<vmem>>, vector<1x32xf32>
    %1013 = vector.broadcast %1012 : vector<1x32xf32> to vector<2x32xf32>
    %1014 = arith.addf %1011, %1013 : vector<2x32xf32>
    %cst_283 = arith.constant 0.000000e+00 : f32
    %1015 = vector.broadcast %cst_283 : f32 to vector<2x32xf32>
    %1016 = arith.maximumf %1014, %1015 : vector<2x32xf32>
    %c0_284 = arith.constant 0 : index
    %c0_285 = arith.constant 0 : index
    %1017 = vector.load %arg13[%c0_284, %c0_285] : memref<32x32xf32, #tpu.memory_space<vmem>>, vector<32x32xf32>
    %cst_286 = arith.constant dense<0.000000e+00> : vector<2x32xf32>
    %1018 = tpu.matmul %1016, %1017, %cst_286 {dimension_numbers = #tpu.dot_dimension_numbers<[1], [0], [0], [1], [0, 0, 1, 1], [], []>} : vector<2x32xf32>, vector<32x32xf32>, vector<2x32xf32> -> vector<2x32xf32>
    %c0_287 = arith.constant 0 : index
    %c0_288 = arith.constant 0 : index
    %1019 = vector.load %arg14[%c0_287, %c0_288] : memref<1x32xf32, #tpu.memory_space<vmem>>, vector<1x32xf32>
    %1020 = vector.broadcast %1019 : vector<1x32xf32> to vector<2x32xf32>
    %1021 = arith.addf %1018, %1020 : vector<2x32xf32>
    %1022 = vector.extract_strided_slice %1009 {offsets = [0, 0], sizes = [2, 32], strides = [1, 1]} : vector<2x64xf32> to vector<2x32xf32>
    %1023 = arith.addf %1021, %1022 : vector<2x32xf32>
    %cst_289 = arith.constant 0.000000e+00 : f32
    %1024 = vector.broadcast %cst_289 : f32 to vector<2x32xf32>
    %1025 = arith.maximumf %1023, %1024 : vector<2x32xf32>
    %c0_290 = arith.constant 0 : index
    %c0_291 = arith.constant 0 : index
    %1026 = vector.load %arg15[%c0_290, %c0_291] : memref<32x8xf32, #tpu.memory_space<vmem>>, vector<32x8xf32>
    %cst_292 = arith.constant dense<0.000000e+00> : vector<2x8xf32>
    %1027 = tpu.matmul %1025, %1026, %cst_292 {dimension_numbers = #tpu.dot_dimension_numbers<[1], [0], [0], [1], [0, 0, 1, 1], [], []>} : vector<2x32xf32>, vector<32x8xf32>, vector<2x8xf32> -> vector<2x8xf32>
    %c0_293 = arith.constant 0 : index
    %c0_294 = arith.constant 0 : index
    %1028 = vector.load %arg16[%c0_293, %c0_294] : memref<1x8xf32, #tpu.memory_space<vmem>>, vector<1x8xf32>
    %1029 = vector.broadcast %1028 : vector<1x8xf32> to vector<2x8xf32>
    %1030 = arith.addf %1027, %1029 : vector<2x8xf32>
    %c0_295 = arith.constant 0 : index
    %c0_296 = arith.constant 0 : index
    %1031 = vector.load %arg17[%c0_295, %c0_296] : memref<2x8xf32, #tpu.memory_space<vmem>>, vector<2x8xf32>
    tpu.vector_store %arg17[%c0_295, %c0_296], %1030 {strides = array<i32>} : memref<2x8xf32, #tpu.memory_space<vmem>>, vector<2x8xf32>,
    return
  }
}

</mosaic_0001>

<bundles_post_ra>
// kernel: lstm_model_forward.1
= control target key start
LH: loop header
LB: loop body
LE: loop exit
PB: predicated region body
PF: predicated region fallthrough
CT: control target
= control target key end

     0   :  { %s5443_s0 = inlined_call_operand.vmem [shape: f32[32,4], index: 0, kind: input, shape index: {}]   ;;  %s5444_s1 = inlined_call_operand.vmem [shape: bf16[4,256], index: 1, kind: input, shape index: {}]   ;;  %s5445_s2 = inlined_call_operand.vmem [shape: bf16[32,128], index: 2, kind: input, shape index: {}]   ;;  %s5446_s3 = inlined_call_operand.vmem [shape: bf16[32,128], index: 3, kind: input, shape index: {}]   ;;  %s5447_s4 = inlined_call_operand.vmem [shape: f32[1,256], index: 4, kind: input, shape index: {}]   ;;  %s5448_s5 = inlined_call_operand.vmem [shape: bf16[64,256], index: 5, kind: input, shape index: {}]   ;;  %s5449_s6 = inlined_call_operand.vmem [shape: bf16[32,128], index: 6, kind: input, shape index: {}]   ;;  %s5450_s7 = inlined_call_operand.vmem [shape: bf16[32,128], index: 7, kind: input, shape index: {}]   ;;  %s5451_s8 = inlined_call_operand.vmem [shape: f32[1,256], index: 8, kind: input, shape index: {}]   ;;  %s5452_s9 = inlined_call_operand.vmem [shape: f32[1,64], index: 9, kind: input, shape index: {}]   ;;  %s5453_s10 = inlined_call_operand.vmem [shape: f32[1,64], index: 10, kind: input, shape index: {}]   ;;  %s5454_s11 = inlined_call_operand.vmem [shape: f32[64,32], index: 11, kind: input, shape index: {}]   ;;  %s5455_s12 = inlined_call_operand.vmem [shape: f32[1,32], index: 12, kind: input, shape index: {}]   ;;  %s5456_s13 = inlined_call_operand.vmem [shape: f32[32,32], index: 13, kind: input, shape index: {}]   ;;  %s5457_s14 = inlined_call_operand.vmem [shape: f32[1,32], index: 14, kind: input, shape index: {}]   ;;  %s5458_s15 = inlined_call_operand.vmem [shape: f32[32,8], index: 15, kind: input, shape index: {}]   ;;  %s5459_s16 = inlined_call_operand.vmem [shape: f32[1,8], index: 16, kind: input, shape index: {}]   ;;  %s5460_s17 = inlined_call_operand.hbm [shape: f32[2,8], index: 17, kind: output, shape index: {}]  }
   0x1   :  { %5462 = sst [smem:[#allocation7_spill]] %s5443_s0 }
   0x2   :  { %5463 = sst [smem:[#allocation8_spill]] %s5444_s1 }
   0x3   :  { %s5464_s26 = sld [smem:[#allocation8_spill]]  ;;  %v4516_v1 = vld [vmem:[%s5446_s3 + $0x8] sm:$0xff]  ;;  %v4522_v2 = vld [vmem:[%s5446_s3] sm:$0xff] }
   0x4   :  { %191 = vmatpush.bf16.msra.mxu3 %v4516_v1 }
   0x9   :  { %v64_v0 = vld [vmem:[%s5464_s26] sm:$0xf] }
   0xa   :  { %72 = vst [vmem:[#allocation1] ss:$4 sm:$0xff] %v64_v0 }
   0xb   :  { %22 = vsyncpa [#allocation5], 0  ;;  %vm82_vm0 = vcmask 1041408   ;;  %s5465_s19 = sld [smem:[#allocation7_spill]]  ;;  %192 = vmatpush.bf16.msra.mxu3 %v4522_v2  ;;  %vm75_vm1 = vcmask 31744   ;;  %v4415_v8 = vmov 0  }
   0xc   :  { %v4558_v12 = vld [vmem:[%s5447_s4] sm:$0x3]  ;;  %s4416_s4 = smov 64   ;;  %s4417_s27 = smov 32   ;;  %v4566_v44 = vld [vmem:[%s5445_s2 + $0x8] sm:$0xff]  ;;  %vm154_vm10 = vcmask 261120  }
   0xd   :  { %v68_v13 = vperm.slane %v4558_v12, 1  ;;  %164 = vmatpush.bf16.msra.mxu2 %v4566_v44  ;;  %v4573_v46 = vld [vmem:[%s5445_s2] sm:$0xff]  ;;  %v4594_v51 = vperm.slane %v4558_v12, 0  ;;  %s4419_s26 = smov [#allocation4]  }
   0xe   :  { %193 = vmatmul.bf16.vlgmr.msra.gmra.mxu3 %v4415_v8 }
   0xf   :  { %328 = vmatpush.bf16.msrb.mxu3 %v4516_v1 }
  0x11   :  { %v58_v3 = vld [vmem:[%s5465_s19] sm:$0xff]  ;;  %v59_v4 = vld [vmem:[%s5465_s19 + $0x8] sm:$0xff]  ;;  %v60_v9 = vld [vmem:[%s5465_s19 + $0x10] sm:$0xff]  ;;  %165 = vmatpush.bf16.msra.mxu2 %v4573_v46 }
  0x12   :  { %v74_v5 = vld.sshfl [vmem:[#allocation1 + $0x8] sm:$0xff pattern:$0x73625140]  ;;  %v4533_v7 = vpack.c.bf16 %v59_v4, %v58_v3  ;;  %v61_v10 = vld [vmem:[%s5465_s19 + $0x18] sm:$0xff] }
  0x13   :  { %v85_v6 = vsel %vm82_vm0, %v74_v5, 0  ;;  %329 = vmatpush.bf16.msrb.mxu3 %v4522_v2  ;;  %v4551_v11 = vpack.c.bf16 %v61_v10, %v60_v9  ;;  %v73_v43 = vld.sshfl [vmem:[#allocation1] sm:$0xff pattern:$0x73625140] }
  0x14   :  { %113 = vmatpush.bf16.msra.mxu1 %v85_v6  ;;  %v83_v45 = vsel %vm82_vm0, %v73_v43, 0  ;;  %166 = vmatmul.bf16.vlgmr.msra.gmra.mxu2 %v4415_v8 }
  0x15   :  { %94 = vmatpush.bf16.msra.mxu0 %v83_v45  ;;  %302 = vmatpush.bf16.msrb.mxu2 %v4566_v44 }
  0x17   :  { %3796 = vmatmul.msk.bf16.vlgmr.msra.gmra.mxu1 %vm75_vm1, %v4533_v7  ;;  %616 = vmatpush.bf16.msra.mxu3 %v4516_v1 }
  0x18   :  { %472 = vmatpush.bf16.msrb.mxu1 %v4516_v1  ;;  %3794 = vmatmul.msk.bf16.vlgmr.msra.gmra.mxu0 %vm75_vm1, %v4533_v7 }
  0x19   :  { %446 = vmatpush.bf16.msrb.mxu0 %v4566_v44  ;;  %303 = vmatpush.bf16.msrb.mxu2 %v4573_v46 }
  0x1b   :  { %617 = vmatpush.bf16.msra.mxu3 %v4522_v2 }
  0x1c   :  { %473 = vmatpush.bf16.msrb.mxu1 %v4522_v2 }
  0x1d   :  { %447 = vmatpush.bf16.msrb.mxu0 %v4573_v46  ;;  %590 = vmatpush.bf16.msra.mxu2 %v4566_v44 }
  0x20   :  { %753 = vmatpush.bf16.msra.mxu1 %v4516_v1 }
  0x21   :  { %731 = vmatpush.bf16.msra.mxu0 %v4566_v44  ;;  %591 = vmatpush.bf16.msra.mxu2 %v4573_v46 }
  0x24   :  { %754 = vmatpush.bf16.msra.mxu1 %v4522_v2 }
  0x25   :  { %732 = vmatpush.bf16.msra.mxu0 %v4573_v46 }
  0x27   :  { %3797 = vmatmul.msk.bf16.gmra.mxu1 %vm75_vm1, %v4551_v11 }
  0x28   :  { %3795 = vmatmul.msk.bf16.gmra.mxu0 %vm75_vm1, %v4551_v11 }
  0x91   :  { %v194_v16 = vpop.f32.mrf.mxu3 }
  0x92   :  { %v199_v24 = vrot.slane %v194_v16, 2 }
  0x94   :  { %v115_v14 = vpop.f32.mrf.mxu1 }
  0x95   :  { %v116_v15 = vadd.f32 %v115_v14, %v68_v13  ;;  %v96_v52 = vpop.f32.mrf.mxu0 }
  0x96   :  { %v97_v53 = vadd.f32 %v96_v52, %v4594_v51 }
  0x97   :  { %126 = vst [vmem:[#allocation2] sm:$0xff] %v116_v15  ;;  %v167_v55 = vpop.f32.mrf.mxu2 }
  0x98   :  { %125 = vst [vmem:[#allocation2 + $0x30] sm:$0xff] %v97_v53 }
  0x99   :  { %v196_v19 = vpop.f32.mrf.mxu3 }
  0x9c   :  { %v117_v17 = vpop.f32.mrf.mxu1 }
  0x9d   :  { %v118_v18 = vadd.f32 %v117_v17, %v68_v13  ;;  %v98_v6 = vpop.f32.mrf.mxu0 }
  0x9e   :  { %v99_v9 = vadd.f32 %v98_v6, %v4594_v51 }
  0x9f   :  { %128 = vst [vmem:[#allocation2 + $0x10] sm:$0xff] %v118_v18  ;;  %v141_v54 = vld [vmem:[#allocation2 + $0x30] sm:$0x3]  ;;  %v169_v59 = vpop.f32.mrf.mxu2 }
  0xa0   :  { %v171_v56 = vadd.f32 %v167_v55, %v141_v54  ;;  %127 = vst [vmem:[#allocation2 + $0x18] sm:$0xff] %v99_v9 }
  0xa2   :  { %v3814_v63 = vmul.f32 -1.442695, %v171_v56 }
  0xa4   :  { %v120_v20 = vpop.f32.mrf.mxu1 }
  0xa5   :  { %v121_v21 = vadd.f32 %v120_v20, %v68_v13 }
  0xa7   :  { %130 = vst [vmem:[#allocation2 + $0x20] sm:$0xff] %v121_v21 }
  0xac   :  { %v122_v22 = vpop.f32.mrf.mxu1 }
  0xad   :  { %v123_v23 = vadd.f32 %v122_v22, %v68_v13 }
  0xaf   :  { %132 = vst [vmem:[#allocation2 + $0x38] sm:$0xff] %v123_v23 }
  0xb6   :  { %v172_v25 = vld [vmem:[#allocation2 + $0x38] sm:$0xc0]  ;;  %v313_v22 = vld [vmem:[#allocation2 + $0x38] sm:$0x30] }
  0xb7   :  { %v201_v26 = vadd.f32 %v199_v24, %v172_v25 }
  0xb9   :  { %3989 = vtanh.f32 %v201_v26  ;;  %v3815_v28 = vmul.f32 -1.442695, %v201_v26 }
  0xbb   :  { %3991 = vpow2.f32 %v3815_v28 }
  0xbf   :  { %v3990_v27 = vpop.eup %3989 }
  0xc0   :  { %255 = vrot.lane.b32.xlu0 %v3990_v27, %s4416_s4 }
  0xc1   :  { %v3992_v29 = vpop.eup %3991 }
  0xc2   :  { %v225_v30 = vadd.f32 1.0, %v3992_v29 }
  0xc4   :  { %3993 = vrcp.f32 %v225_v30  ;;  %v237_v36 = vand.u32 2147483648, %v225_v30  ;;  %vm231_vm3 = vweird.f32 %v225_v30  ;;  %v235_v37 = vand.u32 2147483647, %v225_v30 }
  0xc6   :  { %v238_v39 = vor.u32 1.1754944e-38, %v237_v36  ;;  %vm236_vm5 = vcmp.eq.f32.partialorder %v235_v37, 8.507059e+37 }
  0xca   :  { %v3994_v31 = vpop.eup %3993 }
  0xcb   :  { %v227_v32 = vmul.f32 %v3994_v31, %v225_v30  ;;  %vm232_vm2 = vweird.f32 %v3994_v31 }
  0xcc   :  { %vm233_vm4 = vmor %vm231_vm3, %vm232_vm2 }
  0xcd   :  { %v228_v33 = vsub.f32 1.0, %v227_v32 }
  0xcf   :  { %v229_v34 = vmul.f32 %v3994_v31, %v228_v33 }
  0xd1   :  { %v230_v35 = vadd.f32 %v3994_v31, %v229_v34 }
  0xd3   :  { %v234_v38 = vsel %vm233_vm4, %v3994_v31, %v230_v35 }
  0xd4   :  { %v239_v41 = vsel %vm236_vm5, %v238_v39, %v234_v38 }
  0xd5   :  { %v253_v47 = vmul.f32 0.0, %v239_v41 }
 0x132   :  { %v256_v40 = vpop.permute.xlu0 %255 }
 0x133   :  { %v258_v42 = vmul.f32 %v256_v40, %v239_v41 }
 0x135   :  { %260 = vrot.lane.b32.xlu0 %v258_v42, %s4417_s27 }
 0x1a7   :  { %v261_v48 = vpop.permute.xlu0 %260 }
 0x1a8   :  { %v4589_v49 = vadd.f32 %v261_v48, %v253_v47 }
 0x1aa   :  { %3995 = vtanh.f32 %v4589_v49  ;;  %v394_v52 = vrot.slane %v4589_v49, 2 }
 0x1ab   :  { %3997 = vtanh.f32 %v171_v56 }
 0x1ac   :  { %3999 = vpow2.f32 %v3814_v63 }
 0x1b0   :  { %v3996_v50 = vpop.eup %3995 }
 0x1b1   :  { %272 = vrot.lane.b32.xlu1 %v3996_v50, %s4416_s4  ;;  %v3998_v60 = vpop.eup %3997 }
 0x1b2   :  { %244 = vrot.lane.b32.xlu2 %v3998_v60, %s4416_s4  ;;  %v4000_v0 = vpop.eup %3999 }
 0x1b3   :  { %v205_v3 = vadd.f32 1.0, %v4000_v0  ;;  %v288_v0 = vld [vmem:[#allocation2 + $0x30] sm:$0xc] }
 0x1b5   :  { %4001 = vrcp.f32 %v205_v3  ;;  %v217_v7 = vand.u32 2147483648, %v205_v3  ;;  %vm211_vm6 = vweird.f32 %v205_v3  ;;  %v215_v11 = vand.u32 2147483647, %v205_v3 }
 0x1b7   :  { %v218_v13 = vor.u32 1.1754944e-38, %v217_v7  ;;  %vm216_vm9 = vcmp.eq.f32.partialorder %v215_v11, 8.507059e+37 }
 0x1bb   :  { %v4002_v4 = vpop.eup %4001 }
 0x1bc   :  { %v207_v5 = vmul.f32 %v4002_v4, %v205_v3  ;;  %vm212_vm7 = vweird.f32 %v4002_v4 }
 0x1bd   :  { %vm213_vm8 = vmor %vm211_vm6, %vm212_vm7 }
 0x1be   :  { %v208_v10 = vsub.f32 1.0, %v207_v5 }
 0x1c0   :  { %v209_v12 = vmul.f32 %v4002_v4, %v208_v10 }
 0x1c2   :  { %v210_v14 = vadd.f32 %v4002_v4, %v209_v12 }
 0x1c4   :  { %v214_v16 = vsel %vm213_vm8, %v4002_v4, %v210_v14 }
 0x1c5   :  { %v219_v17 = vsel %vm216_vm9, %v218_v13, %v214_v16 }
 0x1c6   :  { %v242_v24 = vmul.f32 0.0, %v219_v17 }
 0x20c   :  { %v245_v15 = vpop.permute.xlu2 %244 }
 0x20d   :  { %v247_v18 = vmul.f32 %v245_v15, %v219_v17 }
 0x20f   :  { %249 = vrot.lane.b32.xlu0 %v247_v18, %s4417_s27 }
 0x223   :  { %v273_v57 = vpop.permute.xlu1 %272 }
 0x224   :  { %v4597_v58 = vmul.f32 %v273_v57, %v239_v41 }
 0x226   :  { %v314_v61 = vpack.c.bf16 %v4597_v58, %v4597_v58 }
 0x228   :  { %v316_v62 = vrot.slane %v314_v61, 3 }
 0x22a   :  { %317 = vrot.lane.b32.xlu1 %v316_v62, %s4417_s27 }
 0x281   :  { %v250_v25 = vpop.permute.xlu0 %249 }
 0x282   :  { %v4608_v27 = vadd.f32 %v250_v25, %v242_v24  ;;  %v457_v25 = vld [vmem:[#allocation2 + $0x38] sm:$0xc] }
 0x29c   :  { %v318_v19 = vpop.permute.xlu1 %317 }
 0x29d   :  { %3817 = vmatmul.msk.bf16.vlgmr.msrb.gmra.mxu3 %vm154_vm10, %v318_v19 }
 0x29e   :  { %894 = vmatpush.bf16.msrb.mxu3 %v4516_v1 }
 0x2a2   :  { %895 = vmatpush.bf16.msrb.mxu3 %v4522_v2 }
 0x320   :  { %v331_v20 = vpop.f32.mrf.mxu3 }
 0x321   :  { %v336_v21 = vrot.slane %v331_v20, 4 }
 0x323   :  { %v338_v23 = vadd.f32 %v336_v21, %v313_v22 }
 0x325   :  { %4003 = vtanh.f32 %v338_v23  ;;  %v3819_v30 = vmul.f32 -1.442695, %v338_v23 }
 0x326   :  { %4005 = vtanh.f32 %v4608_v27 }
 0x327   :  { %4007 = vpow2.f32 %v3819_v30  ;;  %v380_v30 = vrot.slane %v4608_v27, 6 }
 0x328   :  { %v333_v26 = vpop.f32.mrf.mxu3 }
 0x32b   :  { %v4004_v28 = vpop.eup %4003 }
 0x32c   :  { %398 = vrot.lane.b32.xlu2 %v4004_v28, %s4416_s4  ;;  %v4006_v29 = vpop.eup %4005 }
 0x32d   :  { %v4008_v31 = vpop.eup %4007 }
 0x32e   :  { %v362_v32 = vadd.f32 1.0, %v4008_v31 }
 0x330   :  { %4009 = vrcp.f32 %v362_v32  ;;  %v374_v38 = vand.u32 2147483648, %v362_v32  ;;  %vm368_vm12 = vweird.f32 %v362_v32  ;;  %v372_v39 = vand.u32 2147483647, %v362_v32 }
 0x332   :  { %v375_v41 = vor.u32 1.1754944e-38, %v374_v38  ;;  %vm373_vm14 = vcmp.eq.f32.partialorder %v372_v39, 8.507059e+37 }
 0x334   :  { %266 = vrot.lane.b32.xlu2 %v4006_v29, %s4416_s4 }
 0x336   :  { %v4010_v33 = vpop.eup %4009 }
 0x337   :  { %v364_v34 = vmul.f32 %v4010_v33, %v362_v32  ;;  %vm369_vm11 = vweird.f32 %v4010_v33 }
 0x338   :  { %vm370_vm13 = vmor %vm368_vm12, %vm369_vm11 }
 0x339   :  { %v365_v35 = vsub.f32 1.0, %v364_v34 }
 0x33b   :  { %v366_v36 = vmul.f32 %v4010_v33, %v365_v35 }
 0x33d   :  { %v367_v37 = vadd.f32 %v4010_v33, %v366_v36 }
 0x33f   :  { %v371_v40 = vsel %vm370_vm13, %v4010_v33, %v367_v37 }
 0x340   :  { %v376_v42 = vsel %vm373_vm14, %v375_v41, %v371_v40 }
 0x341   :  { %v396_v53 = vmul.f32 %v394_v52, %v376_v42 }
 0x386   :  { %v399_v43 = vpop.permute.xlu2 %398 }
 0x387   :  { %v401_v45 = vmul.f32 %v399_v43, %v376_v42 }
 0x389   :  { %403 = vrot.lane.b32.xlu1 %v401_v45, %s4417_s27 }
 0x38e   :  { %v267_v47 = vpop.permute.xlu2 %266 }
 0x38f   :  { %v4614_v48 = vmul.f32 %v267_v47, %v219_v17 }
 0x391   :  { %v289_v50 = vpack.c.bf16 %v4614_v48, %v4614_v48 }
 0x393   :  { %291 = vrot.lane.b32.xlu1 %v289_v50, %s4417_s27 }
 0x3fb   :  { %v404_v54 = vpop.permute.xlu1 %403 }
 0x3fc   :  { %v4620_v55 = vadd.f32 %v404_v54, %v396_v53 }
 0x3fe   :  { %4011 = vtanh.f32 %v4620_v55 }
 0x404   :  { %v4012_v56 = vpop.eup %4011 }
 0x405   :  { %415 = vrot.lane.b32.xlu0 %v4012_v56, %s4416_s4  ;;  %v292_v57 = vpop.permute.xlu1 %291 }
 0x406   :  { %3816 = vmatmul.msk.bf16.vlgmr.msrb.gmra.mxu2 %vm154_vm10, %v292_v57 }
 0x407   :  { %868 = vmatpush.bf16.msrb.mxu2 %v4566_v44 }
 0x40b   :  { %869 = vmatpush.bf16.msrb.mxu2 %v4573_v46 }
 0x477   :  { %v416_v59 = vpop.permute.xlu0 %415 }
 0x478   :  { %v4627_v60 = vmul.f32 %v416_v59, %v376_v42 }
 0x47a   :  { %v458_v49 = vpack.c.bf16 %v4627_v60, %v4627_v60 }
 0x47c   :  { %v460_v61 = vrot.slane %v458_v49, 2  ;;  %v538_v49 = vrot.slane %v4620_v55, 2 }
 0x47e   :  { %461 = vrot.lane.b32.xlu2 %v460_v61, %s4417_s27 }
 0x489   :  { %v305_v62 = vpop.f32.mrf.mxu2 }
 0x48a   :  { %v310_v63 = vrot.slane %v305_v62, 6 }
 0x48c   :  { %v312_v3 = vadd.f32 %v310_v63, %v288_v0 }
 0x48e   :  { %4013 = vtanh.f32 %v312_v3  ;;  %v3818_v7 = vmul.f32 -1.442695, %v312_v3 }
 0x490   :  { %4015 = vpow2.f32 %v3818_v7 }
 0x491   :  { %v307_v4 = vpop.f32.mrf.mxu2 }
 0x492   :  { %v101_v4 = vpop.f32.mrf.mxu0 }
 0x494   :  { %v4014_v5 = vpop.eup %4013 }
 0x495   :  { %384 = vrot.lane.b32.xlu0 %v4014_v5, %s4416_s4  ;;  %v102_v5 = vadd.f32 %v101_v4, %v4594_v51 }
 0x496   :  { %v4016_v9 = vpop.eup %4015 }
 0x497   :  { %v342_v10 = vadd.f32 1.0, %v4016_v9  ;;  %129 = vst [vmem:[#allocation2 + $0x8] sm:$0xff] %v102_v5 }
 0x499   :  { %4017 = vrcp.f32 %v342_v10  ;;  %v354_v16 = vand.u32 2147483648, %v342_v10  ;;  %vm348_vm0 = vweird.f32 %v342_v10  ;;  %v352_v17 = vand.u32 2147483647, %v342_v10 }
 0x49a   :  { %v103_v55 = vpop.f32.mrf.mxu0 }
 0x49b   :  { %v355_v19 = vor.u32 1.1754944e-38, %v354_v16  ;;  %vm353_vm2 = vcmp.eq.f32.partialorder %v352_v17, 8.507059e+37 }
 0x49f   :  { %v4018_v11 = vpop.eup %4017 }
 0x4a0   :  { %v344_v12 = vmul.f32 %v4018_v11, %v342_v10  ;;  %vm349_vm15 = vweird.f32 %v4018_v11 }
 0x4a1   :  { %vm350_vm1 = vmor %vm348_vm0, %vm349_vm15 }
 0x4a2   :  { %v345_v13 = vsub.f32 1.0, %v344_v12 }
 0x4a4   :  { %v346_v14 = vmul.f32 %v4018_v11, %v345_v13 }
 0x4a6   :  { %v347_v15 = vadd.f32 %v4018_v11, %v346_v14  ;;  %v431_v14 = vld [vmem:[#allocation2 + $0x30] sm:$0x30] }
 0x4a8   :  { %v351_v18 = vsel %vm350_vm1, %v4018_v11, %v347_v15 }
 0x4a9   :  { %v356_v21 = vsel %vm353_vm2, %v355_v19, %v351_v18 }
 0x4aa   :  { %v382_v31 = vmul.f32 %v380_v30, %v356_v21 }
 0x4d8   :  { %v462_v6 = vpop.permute.xlu2 %461 }
 0x4d9   :  { %3821 = vmatmul.msk.bf16.vlgmr.msrb.gmra.mxu1 %vm154_vm10, %v462_v6  ;;  %v104_v6 = vadd.f32 %v103_v55, %v4594_v51 }
 0x4da   :  { %1036 = vmatpush.bf16.msrb.mxu1 %v4516_v1 }
 0x4db   :  { %131 = vst [vmem:[#allocation2 + $0x28] sm:$0xff] %v104_v6 }
 0x4de   :  { %1037 = vmatpush.bf16.msrb.mxu1 %v4522_v2 }
 0x507   :  { %v385_v20 = vpop.permute.xlu0 %384 }
 0x508   :  { %v387_v22 = vmul.f32 %v385_v20, %v356_v21 }
 0x50a   :  { %389 = vrot.lane.b32.xlu2 %v387_v22, %s4417_s27 }
 0x556   :  { %v475_v23 = vpop.f32.mrf.mxu1 }
 0x557   :  { %v480_v24 = vrot.slane %v475_v23, 6 }
 0x559   :  { %v482_v26 = vadd.f32 %v480_v24, %v457_v25 }
 0x55b   :  { %4019 = vtanh.f32 %v482_v26  ;;  %v3823_v35 = vmul.f32 -1.442695, %v482_v26 }
 0x55e   :  { %v477_v28 = vpop.f32.mrf.mxu1 }
 0x561   :  { %v4020_v29 = vpop.eup %4019 }
 0x562   :  { %542 = vrot.lane.b32.xlu1 %v4020_v29, %s4416_s4 }
 0x564   :  { %v390_v32 = vpop.permute.xlu2 %389 }
 0x565   :  { %v4639_v33 = vadd.f32 %v390_v32, %v382_v31 }
 0x567   :  { %4021 = vtanh.f32 %v4639_v33 }
 0x568   :  { %4023 = vpow2.f32 %v3823_v35  ;;  %v601_v35 = vld [vmem:[#allocation2 + $0x38] sm:$0x3] }
 0x56d   :  { %v4022_v34 = vpop.eup %4021 }
 0x56e   :  { %409 = vrot.lane.b32.xlu1 %v4022_v34, %s4416_s4  ;;  %v4024_v36 = vpop.eup %4023 }
 0x56f   :  { %v506_v37 = vadd.f32 1.0, %v4024_v36 }
 0x571   :  { %4025 = vrcp.f32 %v506_v37  ;;  %v518_v42 = vand.u32 2147483648, %v506_v37  ;;  %vm512_vm4 = vweird.f32 %v506_v37  ;;  %v516_v43 = vand.u32 2147483647, %v506_v37 }
 0x573   :  { %v519_v47 = vor.u32 1.1754944e-38, %v518_v42  ;;  %vm517_vm6 = vcmp.eq.f32.partialorder %v516_v43, 8.507059e+37 }
 0x577   :  { %v4026_v38 = vpop.eup %4025 }
 0x578   :  { %v508_v39 = vmul.f32 %v4026_v38, %v506_v37  ;;  %vm513_vm3 = vweird.f32 %v4026_v38 }
 0x579   :  { %vm514_vm5 = vmor %vm512_vm4, %vm513_vm3 }
 0x57a   :  { %v509_v40 = vsub.f32 1.0, %v508_v39 }
 0x57c   :  { %v510_v27 = vmul.f32 %v4026_v38, %v509_v40 }
 0x57e   :  { %v511_v41 = vadd.f32 %v4026_v38, %v510_v27 }
 0x580   :  { %v515_v45 = vsel %vm514_vm5, %v4026_v38, %v511_v41  ;;  %v524_v38 = vrot.slane %v4639_v33, 6 }
 0x581   :  { %v520_v52 = vsel %vm517_vm6, %v519_v47, %v515_v45 }
 0x582   :  { %v540_v61 = vmul.f32 %v538_v49, %v520_v52 }
 0x5d4   :  { %v543_v50 = vpop.permute.xlu1 %542 }
 0x5d5   :  { %v545_v53 = vmul.f32 %v543_v50, %v520_v52 }
 0x5d7   :  { %547 = vrot.lane.b32.xlu0 %v545_v53, %s4417_s27 }
 0x5e0   :  { %v410_v54 = vpop.permute.xlu1 %409 }
 0x5e1   :  { %v4644_v56 = vmul.f32 %v410_v54, %v356_v21 }
 0x5e3   :  { %v432_v57 = vpack.c.bf16 %v4644_v56, %v4644_v56 }
 0x5e5   :  { %v434_v59 = vrot.slane %v432_v57, 1 }
 0x5e7   :  { %435 = vrot.lane.b32.xlu0 %v434_v59, %s4417_s27 }
 0x649   :  { %v548_v62 = vpop.permute.xlu0 %547 }
 0x64a   :  { %v4650_v63 = vadd.f32 %v548_v62, %v540_v61 }
 0x64c   :  { %4027 = vtanh.f32 %v4650_v63 }
 0x652   :  { %v4028_v0 = vpop.eup %4027 }
 0x653   :  { %559 = vrot.lane.b32.xlu2 %v4028_v0, %s4416_s4 }
 0x659   :  { %v436_v3 = vpop.permute.xlu0 %435 }
 0x65a   :  { %3820 = vmatmul.msk.bf16.vlgmr.msrb.gmra.mxu0 %vm154_vm10, %v436_v3 }
 0x65b   :  { %1010 = vmatpush.bf16.msrb.mxu0 %v4566_v44 }
 0x65f   :  { %1011 = vmatpush.bf16.msrb.mxu0 %v4573_v46 }
 0x6ad   :  { %v560_v7 = vpop.permute.xlu2 %559 }
 0x6ae   :  { %v4659_v9 = vmul.f32 %v560_v7, %v520_v52 }
 0x6b0   :  { %v602_v10 = vpack.c.bf16 %v4659_v9, %v4659_v9 }
 0x6b2   :  { %v604_v11 = vrot.slane %v602_v10, 1  ;;  %v679_v10 = vrot.slane %v4650_v63, 2 }
 0x6b4   :  { %605 = vrot.lane.b32.xlu1 %v604_v11, %s4417_s27 }
 0x6d7   :  { %v449_v12 = vpop.f32.mrf.mxu0 }
 0x6d8   :  { %v454_v13 = vrot.slane %v449_v12, 4 }
 0x6da   :  { %v456_v15 = vadd.f32 %v454_v13, %v431_v14 }
 0x6dc   :  { %4029 = vtanh.f32 %v456_v15  ;;  %v3822_v51 = vmul.f32 -1.442695, %v456_v15 }
 0x6de   :  { %4031 = vpow2.f32 %v3822_v51 }
 0x6df   :  { %v451_v16 = vpop.f32.mrf.mxu0 }
 0x6e2   :  { %v4030_v17 = vpop.eup %4029 }
 0x6e3   :  { %528 = vrot.lane.b32.xlu2 %v4030_v17, %s4416_s4 }
 0x6e4   :  { %v4032_v18 = vpop.eup %4031 }
 0x6e5   :  { %v486_v19 = vadd.f32 1.0, %v4032_v18 }
 0x6e7   :  { %4033 = vrcp.f32 %v486_v19  ;;  %v498_v26 = vand.u32 2147483648, %v486_v19  ;;  %vm492_vm8 = vweird.f32 %v486_v19  ;;  %v496_v28 = vand.u32 2147483647, %v486_v19 }
 0x6e9   :  { %v499_v30 = vor.u32 1.1754944e-38, %v498_v26  ;;  %vm497_vm11 = vcmp.eq.f32.partialorder %v496_v28, 8.507059e+37 }
 0x6ed   :  { %v4034_v21 = vpop.eup %4033 }
 0x6ee   :  { %v488_v22 = vmul.f32 %v4034_v21, %v486_v19  ;;  %vm493_vm7 = vweird.f32 %v4034_v21  ;;  %v575_v19 = vld [vmem:[#allocation2 + $0x30] sm:$0xc0] }
 0x6ef   :  { %vm494_vm9 = vmor %vm492_vm8, %vm493_vm7 }
 0x6f0   :  { %v489_v23 = vsub.f32 1.0, %v488_v22 }
 0x6f2   :  { %v490_v24 = vmul.f32 %v4034_v21, %v489_v23 }
 0x6f4   :  { %v491_v25 = vadd.f32 %v4034_v21, %v490_v24 }
 0x6f6   :  { %v495_v29 = vsel %vm494_vm9, %v4034_v21, %v491_v25 }
 0x6f7   :  { %v500_v31 = vsel %vm497_vm11, %v499_v30, %v495_v29 }
 0x6f8   :  { %v526_v39 = vmul.f32 %v524_v38, %v500_v31 }
 0x726   :  { %v606_v20 = vpop.permute.xlu1 %605 }
 0x727   :  { %3825 = vmatmul.msk.bf16.vlgmr.msra.gmra.mxu3 %vm154_vm10, %v606_v20 }
 0x728   :  { %1178 = vmatpush.bf16.msra.mxu3 %v4516_v1 }
 0x72c   :  { %1179 = vmatpush.bf16.msra.mxu3 %v4522_v2 }
 0x73d   :  { %v529_v32 = vpop.permute.xlu2 %528 }
 0x73e   :  { %v531_v34 = vmul.f32 %v529_v32, %v500_v31 }
 0x740   :  { %533 = vrot.lane.b32.xlu1 %v531_v34, %s4417_s27  ;;  %v739_v34 = vld [vmem:[#allocation2 + $0x20] sm:$0xc0] }
 0x7aa   :  { %v619_v36 = vpop.f32.mrf.mxu3 }
 0x7ab   :  { %v623_v37 = vadd.f32 %v619_v36, %v601_v35 }
 0x7ad   :  { %4035 = vtanh.f32 %v623_v37  ;;  %v3827_v45 = vmul.f32 -1.442695, %v623_v37 }
 0x7b2   :  { %v621_v40 = vpop.f32.mrf.mxu3  ;;  %v534_v27 = vpop.permute.xlu1 %533 }
 0x7b3   :  { %v4036_v41 = vpop.eup %4035  ;;  %v4670_v42 = vadd.f32 %v534_v27, %v526_v39 }
 0x7b4   :  { %683 = vrot.lane.b32.xlu0 %v4036_v41, %s4416_s4 }
 0x7b5   :  { %4037 = vtanh.f32 %v4670_v42 }
 0x7b6   :  { %4039 = vpow2.f32 %v3827_v45 }
 0x7bb   :  { %v4038_v43 = vpop.eup %4037 }
 0x7bc   :  { %553 = vrot.lane.b32.xlu0 %v4038_v43, %s4416_s4  ;;  %v4040_v47 = vpop.eup %4039 }
 0x7bd   :  { %v647_v50 = vadd.f32 1.0, %v4040_v47 }
 0x7bf   :  { %4041 = vrcp.f32 %v647_v50  ;;  %v659_v59 = vand.u32 2147483648, %v647_v50  ;;  %vm653_vm13 = vweird.f32 %v647_v50  ;;  %v657_v49 = vand.u32 2147483647, %v647_v50 }
 0x7c1   :  { %v660_v62 = vor.u32 1.1754944e-38, %v659_v59  ;;  %vm658_vm15 = vcmp.eq.f32.partialorder %v657_v49, 8.507059e+37 }
 0x7c5   :  { %v4042_v52 = vpop.eup %4041 }
 0x7c6   :  { %v649_v33 = vmul.f32 %v4042_v52, %v647_v50  ;;  %vm654_vm12 = vweird.f32 %v4042_v52 }
 0x7c7   :  { %vm655_vm14 = vmor %vm653_vm13, %vm654_vm12 }
 0x7c8   :  { %v650_v53 = vsub.f32 1.0, %v649_v33 }
 0x7ca   :  { %v651_v54 = vmul.f32 %v4042_v52, %v650_v53 }
 0x7cc   :  { %v652_v57 = vadd.f32 %v4042_v52, %v651_v54 }
 0x7ce   :  { %v656_v61 = vsel %vm655_vm14, %v4042_v52, %v652_v57 }
 0x7cf   :  { %v661_v3 = vsel %vm658_vm15, %v660_v62, %v656_v61 }
 0x7d0   :  { %v681_v11 = vmul.f32 %v679_v10, %v661_v3  ;;  %v665_v10 = vrot.slane %v4670_v42, 6 }
 0x826   :  { %v684_v0 = vpop.permute.xlu0 %683 }
 0x827   :  { %v686_v4 = vmul.f32 %v684_v0, %v661_v3 }
 0x829   :  { %688 = vrot.lane.b32.xlu2 %v686_v4, %s4417_s27 }
 0x82e   :  { %v554_v5 = vpop.permute.xlu0 %553 }
 0x82f   :  { %v4676_v55 = vmul.f32 %v554_v5, %v500_v31 }
 0x831   :  { %v576_v6 = vpack.c.bf16 %v4676_v55, %v4676_v55 }
 0x833   :  { %v578_v7 = vrot.slane %v576_v6, 2 }
 0x835   :  { %579 = vrot.lane.b32.xlu2 %v578_v7, %s4417_s27 }
 0x883   :  { %v689_v12 = vpop.permute.xlu2 %688 }
 0x884   :  { %v4682_v13 = vadd.f32 %v689_v12, %v681_v11 }
 0x886   :  { %4043 = vtanh.f32 %v4682_v13 }
 0x88c   :  { %v4044_v14 = vpop.eup %4043 }
 0x88d   :  { %700 = vrot.lane.b32.xlu1 %v4044_v14, %s4416_s4 }
 0x88f   :  { %v580_v15 = vpop.permute.xlu2 %579 }
 0x890   :  { %3824 = vmatmul.msk.bf16.vlgmr.msra.gmra.mxu2 %vm154_vm10, %v580_v15 }
 0x891   :  { %1152 = vmatpush.bf16.msra.mxu2 %v4566_v44 }
 0x895   :  { %1153 = vmatpush.bf16.msra.mxu2 %v4573_v46 }
 0x8ff   :  { %v701_v16 = vpop.permute.xlu1 %700 }
 0x900   :  { %v4689_v17 = vmul.f32 %v701_v16, %v661_v3  ;;  %v819_v16 = vrot.slane %v4682_v13, 2 }
 0x902   :  { %v740_v63 = vpack.c.bf16 %v4689_v17, %v4689_v17 }
 0x904   :  { %742 = vrot.lane.b32.xlu0 %v740_v63, %s4417_s27 }
 0x913   :  { %v593_v51 = vpop.f32.mrf.mxu2 }
 0x914   :  { %v598_v18 = vrot.slane %v593_v51, 2 }
 0x916   :  { %v600_v20 = vadd.f32 %v598_v18, %v575_v19 }
 0x918   :  { %4045 = vtanh.f32 %v600_v20  ;;  %v3826_v24 = vmul.f32 -1.442695, %v600_v20 }
 0x91a   :  { %4047 = vpow2.f32 %v3826_v24 }
 0x91b   :  { %v595_v21 = vpop.f32.mrf.mxu2 }
 0x91e   :  { %v4046_v22 = vpop.eup %4045 }
 0x91f   :  { %669 = vrot.lane.b32.xlu2 %v4046_v22, %s4416_s4 }
 0x920   :  { %v4048_v25 = vpop.eup %4047 }
 0x921   :  { %v627_v26 = vadd.f32 1.0, %v4048_v25 }
 0x923   :  { %4049 = vrcp.f32 %v627_v26  ;;  %v639_v40 = vand.u32 2147483648, %v627_v26  ;;  %vm633_vm1 = vweird.f32 %v627_v26  ;;  %v637_v27 = vand.u32 2147483647, %v627_v26 }
 0x925   :  { %v640_v45 = vor.u32 1.1754944e-38, %v639_v40  ;;  %vm638_vm3 = vcmp.eq.f32.partialorder %v637_v27, 8.507059e+37 }
 0x929   :  { %v4050_v28 = vpop.eup %4049 }
 0x92a   :  { %v629_v29 = vmul.f32 %v4050_v28, %v627_v26  ;;  %vm634_vm0 = vweird.f32 %v4050_v28 }
 0x92b   :  { %vm635_vm2 = vmor %vm633_vm1, %vm634_vm0 }
 0x92c   :  { %v630_v32 = vsub.f32 1.0, %v629_v29  ;;  %v716_v29 = vld [vmem:[#allocation2 + $0x18] sm:$0x3] }
 0x92e   :  { %v631_v36 = vmul.f32 %v4050_v28, %v630_v32 }
 0x930   :  { %v632_v38 = vadd.f32 %v4050_v28, %v631_v36 }
 0x932   :  { %v636_v41 = vsel %vm635_vm2, %v4050_v28, %v632_v38 }
 0x933   :  { %v641_v47 = vsel %vm638_vm3, %v640_v45, %v636_v41 }
 0x934   :  { %v667_v11 = vmul.f32 %v665_v10, %v641_v47 }
 0x976   :  { %v743_v23 = vpop.permute.xlu0 %742 }
 0x977   :  { %3829 = vmatmul.msk.bf16.vlgmr.msra.gmra.mxu1 %vm154_vm10, %v743_v23 }
 0x978   :  { %1313 = vmatpush.bf16.msra.mxu1 %v4516_v1 }
 0x979   :  { %v670_v43 = vpop.permute.xlu2 %669 }
 0x97a   :  { %v672_v50 = vmul.f32 %v670_v43, %v641_v47 }
 0x97c   :  { %1314 = vmatpush.bf16.msra.mxu1 %v4522_v2 }
 0x9f4   :  { %v756_v30 = vpop.f32.mrf.mxu1 }
 0x9f5   :  { %v761_v31 = vrot.slane %v756_v30, 2 }
 0x9f7   :  { %v763_v35 = vadd.f32 %v761_v31, %v739_v34 }
 0x9f9   :  { %4051 = vtanh.f32 %v763_v35  ;;  %v3831_v52 = vmul.f32 -1.442695, %v763_v35 }
 0x9fb   :  { %4053 = vpow2.f32 %v3831_v52 }
 0x9fc   :  { %v758_v37 = vpop.f32.mrf.mxu1 }
 0x9ff   :  { %v4052_v39 = vpop.eup %4051 }
 0xa00   :  { %823 = vrot.lane.b32.xlu1 %v4052_v39, %s4416_s4 }
 0xa01   :  { %v4054_v33 = vpop.eup %4053 }
 0xa02   :  { %v787_v53 = vadd.f32 1.0, %v4054_v33 }
 0xa04   :  { %4055 = vrcp.f32 %v787_v53  ;;  %v799_v62 = vand.u32 2147483648, %v787_v53  ;;  %vm793_vm5 = vweird.f32 %v787_v53  ;;  %v797_v0 = vand.u32 2147483647, %v787_v53 }
 0xa06   :  { %v800_v4 = vor.u32 1.1754944e-38, %v799_v62  ;;  %vm798_vm7 = vcmp.eq.f32.partialorder %v797_v0, 8.507059e+37 }
 0xa08   :  { %674 = vrot.lane.b32.xlu1 %v672_v50, %s4417_s27 }
 0xa0a   :  { %v4056_v54 = vpop.eup %4055 }
 0xa0b   :  { %v789_v57 = vmul.f32 %v4056_v54, %v787_v53  ;;  %vm794_vm4 = vweird.f32 %v4056_v54 }
 0xa0c   :  { %vm795_vm6 = vmor %vm793_vm5, %vm794_vm4 }
 0xa0d   :  { %v790_v59 = vsub.f32 1.0, %v789_v57 }
 0xa0f   :  { %v791_v49 = vmul.f32 %v4056_v54, %v790_v59 }
 0xa11   :  { %v792_v61 = vadd.f32 %v4056_v54, %v791_v49 }
 0xa13   :  { %v796_v3 = vsel %vm795_vm6, %v4056_v54, %v792_v61 }
 0xa14   :  { %v801_v6 = vsel %vm798_vm7, %v800_v4, %v796_v3 }
 0xa15   :  { %v821_v63 = vmul.f32 %v819_v16, %v801_v6 }
 0xa72   :  { %v824_v5 = vpop.permute.xlu1 %823 }
 0xa73   :  { %v826_v7 = vmul.f32 %v824_v5, %v801_v6 }
 0xa75   :  { %828 = vrot.lane.b32.xlu0 %v826_v7, %s4417_s27 }
 0xa7a   :  { %v675_v12 = vpop.permute.xlu1 %674 }
 0xa7b   :  { %v4702_v14 = vadd.f32 %v675_v12, %v667_v11 }
 0xa7d   :  { %4057 = vtanh.f32 %v4702_v14  ;;  %v805_v3 = vrot.slane %v4702_v14, 6 }
 0xa83   :  { %v4058_v15 = vpop.eup %4057 }
 0xa84   :  { %694 = vrot.lane.b32.xlu0 %v4058_v15, %s4416_s4 }
 0xae7   :  { %v829_v51 = vpop.permute.xlu0 %828 }
 0xae8   :  { %v4707_v18 = vadd.f32 %v829_v51, %v821_v63 }
 0xaea   :  { %4059 = vtanh.f32 %v4707_v18 }
 0xaf0   :  { %v4060_v19 = vpop.eup %4059 }
 0xaf1   :  { %840 = vrot.lane.b32.xlu2 %v4060_v19, %s4416_s4 }
 0xaf6   :  { %v695_v42 = vpop.permute.xlu0 %694 }
 0xaf7   :  { %v4711_v20 = vmul.f32 %v695_v42, %v641_v47 }
 0xaf9   :  { %v717_v21 = vpack.c.bf16 %v4711_v20, %v4711_v20 }
 0xafb   :  { %v719_v22 = vrot.slane %v717_v21, 3 }
 0xafd   :  { %720 = vrot.lane.b32.xlu2 %v719_v22, %s4417_s27 }
 0xb4b   :  { %v841_v23 = vpop.permute.xlu2 %840 }
 0xb4c   :  { %v4716_v13 = vmul.f32 %v841_v23, %v801_v6 }
 0xb4e   :  { %v880_v24 = vpack.c.bf16 %v4716_v13, %v4716_v13 }
 0xb50   :  { %v882_v25 = vrot.slane %v880_v24, 3 }
 0xb52   :  { %883 = vrot.lane.b32.xlu1 %v882_v25, %s4417_s27 }
 0xb57   :  { %v721_v26 = vpop.permute.xlu2 %720 }
 0xb58   :  { %3828 = vmatmul.msk.bf16.vlgmr.msra.gmra.mxu0 %vm154_vm10, %v721_v26  ;;  %v960_v26 = vrot.slane %v4707_v18, 2 }
 0xb59   :  { %1291 = vmatpush.bf16.msra.mxu0 %v4566_v44 }
 0xb5d   :  { %1292 = vmatpush.bf16.msra.mxu0 %v4573_v46 }
 0xbc4   :  { %v884_v28 = vpop.permute.xlu1 %883 }
 0xbc5   :  { %3833 = vmatmul.msk.bf16.vlgmr.msrb.gmra.mxu3 %vm154_vm10, %v884_v28 }
 0xbc6   :  { %1454 = vmatpush.bf16.msrb.mxu3 %v4516_v1 }
 0xbca   :  { %1455 = vmatpush.bf16.msrb.mxu3 %v4522_v2  ;;  %v879_v2 = vld [vmem:[#allocation2 + $0x20] sm:$0x30] }
 0xbd5   :  { %v734_v30 = vpop.f32.mrf.mxu0 }
 0xbd6   :  { %v738_v31 = vadd.f32 %v734_v30, %v716_v29 }
 0xbd8   :  { %4061 = vtanh.f32 %v738_v31  ;;  %v3830_v35 = vmul.f32 -1.442695, %v738_v31 }
 0xbda   :  { %4063 = vpow2.f32 %v3830_v35 }
 0xbdd   :  { %v736_v32 = vpop.f32.mrf.mxu0 }
 0xbde   :  { %v4062_v34 = vpop.eup %4061 }
 0xbdf   :  { %809 = vrot.lane.b32.xlu0 %v4062_v34, %s4416_s4 }
 0xbe0   :  { %v4064_v36 = vpop.eup %4063 }
 0xbe1   :  { %v767_v37 = vadd.f32 1.0, %v4064_v36 }
 0xbe3   :  { %4065 = vrcp.f32 %v767_v37  ;;  %v779_v47 = vand.u32 2147483648, %v767_v37  ;;  %vm773_vm9 = vweird.f32 %v767_v37  ;;  %v777_v50 = vand.u32 2147483647, %v767_v37 }
 0xbe5   :  { %v780_v33 = vor.u32 1.1754944e-38, %v779_v47  ;;  %vm778_vm12 = vcmp.eq.f32.partialorder %v777_v50, 8.507059e+37 }
 0xbe9   :  { %v4066_v38 = vpop.eup %4065 }
 0xbea   :  { %v769_v39 = vmul.f32 %v4066_v38, %v767_v37  ;;  %vm774_vm8 = vweird.f32 %v4066_v38 }
 0xbeb   :  { %vm775_vm11 = vmor %vm773_vm9, %vm774_vm8 }
 0xbec   :  { %v770_v40 = vsub.f32 1.0, %v769_v39  ;;  %v4764_v39 = vld [vmem:[%s5446_s3] sm:$0xff] }
 0xbee   :  { %v771_v27 = vmul.f32 %v4066_v38, %v770_v40 }
 0xbf0   :  { %v772_v43 = vadd.f32 %v4066_v38, %v771_v27 }
 0xbf2   :  { %v776_v52 = vsel %vm775_vm11, %v4066_v38, %v772_v43  ;;  %v4758_v38 = vld [vmem:[%s5446_s3 + $0x8] sm:$0xff] }
 0xbf3   :  { %v781_v57 = vsel %vm778_vm12, %v780_v33, %v776_v52 }
 0xbf4   :  { %v807_v4 = vmul.f32 %v805_v3, %v781_v57 }
 0xc48   :  { %v897_v1 = vpop.f32.mrf.mxu3 }
 0xc49   :  { %v902_v41 = vrot.slane %v897_v1, 4 }
 0xc4b   :  { %v904_v45 = vadd.f32 %v902_v41, %v879_v2 }
 0xc4d   :  { %4067 = vtanh.f32 %v904_v45  ;;  %v3835_v61 = vmul.f32 -1.442695, %v904_v45 }
 0xc4f   :  { %4069 = vpow2.f32 %v3835_v61 }
 0xc50   :  { %v899_v53 = vpop.f32.mrf.mxu3 }
 0xc51   :  { %v810_v54 = vpop.permute.xlu0 %809 }
 0xc52   :  { %v812_v59 = vmul.f32 %v810_v54, %v781_v57 }
 0xc53   :  { %v4068_v49 = vpop.eup %4067 }
 0xc54   :  { %964 = vrot.lane.b32.xlu1 %v4068_v49, %s4416_s4  ;;  %814 = vrot.lane.b32.xlu2 %v812_v59, %s4417_s27 }
 0xc55   :  { %v4070_v62 = vpop.eup %4069 }
 0xc56   :  { %v928_v0 = vadd.f32 1.0, %v4070_v62 }
 0xc58   :  { %4071 = vrcp.f32 %v928_v0  ;;  %v940_v63 = vand.u32 2147483648, %v928_v0  ;;  %vm934_vm14 = vweird.f32 %v928_v0  ;;  %v938_v51 = vand.u32 2147483647, %v928_v0 }
 0xc5a   :  { %v941_v19 = vor.u32 1.1754944e-38, %v940_v63  ;;  %vm939_vm0 = vcmp.eq.f32.partialorder %v938_v51, 8.507059e+37 }
 0xc5e   :  { %v4072_v7 = vpop.eup %4071 }
 0xc5f   :  { %v930_v10 = vmul.f32 %v4072_v7, %v928_v0  ;;  %vm935_vm13 = vweird.f32 %v4072_v7 }
 0xc60   :  { %vm936_vm15 = vmor %vm934_vm14, %vm935_vm13 }
 0xc61   :  { %v931_v12 = vsub.f32 1.0, %v930_v10 }
 0xc63   :  { %v932_v15 = vmul.f32 %v4072_v7, %v931_v12 }
 0xc65   :  { %v933_v16 = vadd.f32 %v4072_v7, %v932_v15 }
 0xc67   :  { %v937_v14 = vsel %vm936_vm15, %v4072_v7, %v933_v16 }
 0xc68   :  { %v942_v21 = vsel %vm939_vm0, %v941_v19, %v937_v14 }
 0xc69   :  { %v962_v28 = vmul.f32 %v960_v26, %v942_v21 }
 0xcae   :  { %v815_v5 = vpop.permute.xlu2 %814 }
 0xcaf   :  { %v4731_v6 = vadd.f32 %v815_v5, %v807_v4  ;;  %v1021_v5 = vld [vmem:[#allocation2 + $0x20] sm:$0xc] }
 0xcb1   :  { %4073 = vtanh.f32 %v4731_v6  ;;  %v946_v63 = vrot.slane %v4731_v6, 6 }
 0xcb7   :  { %v4074_v11 = vpop.eup %4073 }
 0xcb8   :  { %834 = vrot.lane.b32.xlu1 %v4074_v11, %s4416_s4 }
 0xcc6   :  { %v965_v42 = vpop.permute.xlu1 %964 }
 0xcc7   :  { %v967_v22 = vmul.f32 %v965_v42, %v942_v21 }
 0xcc9   :  { %969 = vrot.lane.b32.xlu0 %v967_v22, %s4417_s27 }
 0xd2a   :  { %v835_v23 = vpop.permute.xlu1 %834 }
 0xd2b   :  { %v4736_v24 = vmul.f32 %v835_v23, %v781_v57 }
 0xd2d   :  { %v855_v25 = vpack.c.bf16 %v4736_v24, %v4736_v24 }
 0xd2f   :  { %857 = vrot.lane.b32.xlu0 %v855_v25, %s4417_s27 }
 0xd3b   :  { %v970_v29 = vpop.permute.xlu0 %969 }
 0xd3c   :  { %v4742_v30 = vadd.f32 %v970_v29, %v962_v28 }
 0xd3e   :  { %4075 = vtanh.f32 %v4742_v30 }
 0xd44   :  { %v4076_v31 = vpop.eup %4075 }
 0xd45   :  { %981 = vrot.lane.b32.xlu2 %v4076_v31, %s4416_s4 }
 0xd9f   :  { %v982_v32 = vpop.permute.xlu2 %981 }
 0xda0   :  { %v4746_v34 = vmul.f32 %v982_v32, %v942_v21 }
 0xda1   :  { %v858_v35 = vpop.permute.xlu0 %857 }
 0xda2   :  { %v1022_v36 = vpack.c.bf16 %v4746_v34, %v4746_v34  ;;  %3832 = vmatmul.msk.bf16.vlgmr.msrb.gmra.mxu2 %vm154_vm10, %v858_v35 }
 0xda3   :  { %1428 = vmatpush.bf16.msrb.mxu2 %v4566_v44 }
 0xda4   :  { %v1024_v18 = vrot.slane %v1022_v36, 2 }
 0xda6   :  { %1025 = vrot.lane.b32.xlu1 %v1024_v18, %s4417_s27  ;;  %v1102_v18 = vrot.slane %v4742_v30, 2  ;;  %v4790_v30 = vld [vmem:[%s5445_s2 + $0x8] sm:$0xff] }
 0xda7   :  { %1429 = vmatpush.bf16.msrb.mxu2 %v4573_v46  ;;  %v854_v46 = vld [vmem:[#allocation2 + $0x18] sm:$0xc] }
 0xe18   :  { %v1026_v37 = vpop.permute.xlu1 %1025 }
 0xe19   :  { %3837 = vmatmul.msk.bf16.vlgmr.msrb.gmra.mxu1 %vm154_vm10, %v1026_v37 }
 0xe1a   :  { %1596 = vmatpush.bf16.msrb.mxu1 %v4758_v38 }
 0xe1e   :  { %1597 = vmatpush.bf16.msrb.mxu1 %v4764_v39 }
 0xe25   :  { %v871_v44 = vpop.f32.mrf.mxu2 }
 0xe26   :  { %v876_v40 = vrot.slane %v871_v44, 6 }
 0xe28   :  { %v878_v27 = vadd.f32 %v876_v40, %v854_v46 }
 0xe2a   :  { %4077 = vtanh.f32 %v878_v27  ;;  %v3834_v2 = vmul.f32 -1.442695, %v878_v27 }
 0xe2c   :  { %4079 = vpow2.f32 %v3834_v2 }
 0xe2d   :  { %v873_v1 = vpop.f32.mrf.mxu2 }
 0xe30   :  { %v4078_v41 = vpop.eup %4077 }
 0xe31   :  { %950 = vrot.lane.b32.xlu2 %v4078_v41, %s4416_s4 }
 0xe32   :  { %v4080_v43 = vpop.eup %4079 }
 0xe33   :  { %v908_v45 = vadd.f32 1.0, %v4080_v43 }
 0xe35   :  { %4081 = vrcp.f32 %v908_v45  ;;  %v920_v54 = vand.u32 2147483648, %v908_v45  ;;  %vm914_vm2 = vweird.f32 %v908_v45  ;;  %v918_v57 = vand.u32 2147483647, %v908_v45 }
 0xe37   :  { %v921_v49 = vor.u32 1.1754944e-38, %v920_v54  ;;  %vm919_vm4 = vcmp.eq.f32.partialorder %v918_v57, 8.507059e+37  ;;  %v995_v57 = vld [vmem:[#allocation2 + $0x18] sm:$0x30] }
 0xe3b   :  { %v4082_v47 = vpop.eup %4081 }
 0xe3c   :  { %v910_v50 = vmul.f32 %v4082_v47, %v908_v45  ;;  %vm915_vm1 = vweird.f32 %v4082_v47  ;;  %v4796_v45 = vld [vmem:[%s5445_s2] sm:$0xff] }
 0xe3d   :  { %vm916_vm3 = vmor %vm914_vm2, %vm915_vm1 }
 0xe3e   :  { %v911_v52 = vsub.f32 1.0, %v910_v50 }
 0xe40   :  { %v912_v33 = vmul.f32 %v4082_v47, %v911_v52 }
 0xe42   :  { %v913_v53 = vadd.f32 %v4082_v47, %v912_v33 }
 0xe44   :  { %v917_v59 = vsel %vm916_vm3, %v4082_v47, %v913_v53 }
 0xe45   :  { %v922_v62 = vsel %vm919_vm4, %v921_v49, %v917_v59 }
 0xe46   :  { %v948_v14 = vmul.f32 %v946_v63, %v922_v62 }
 0xe8b   :  { %v951_v61 = vpop.permute.xlu2 %950 }
 0xe8c   :  { %v953_v0 = vmul.f32 %v951_v61, %v922_v62 }
 0xe8e   :  { %955 = vrot.lane.b32.xlu1 %v953_v0, %s4417_s27 }
 0xe96   :  { %v1039_v3 = vpop.f32.mrf.mxu1 }
 0xe97   :  { %v1044_v4 = vrot.slane %v1039_v3, 6 }
 0xe99   :  { %v1046_v7 = vadd.f32 %v1044_v4, %v1021_v5 }
 0xe9b   :  { %4083 = vtanh.f32 %v1046_v7  ;;  %v3839_v12 = vmul.f32 -1.442695, %v1046_v7 }
 0xe9d   :  { %4085 = vpow2.f32 %v3839_v12 }
 0xe9e   :  { %v1041_v10 = vpop.f32.mrf.mxu1 }
 0xea1   :  { %v4084_v11 = vpop.eup %4083 }
 0xea2   :  { %1106 = vrot.lane.b32.xlu0 %v4084_v11, %s4416_s4 }
 0xea3   :  { %v4086_v15 = vpop.eup %4085 }
 0xea4   :  { %v1070_v16 = vadd.f32 1.0, %v4086_v15 }
 0xea6   :  { %4087 = vrcp.f32 %v1070_v16  ;;  %v1082_v28 = vand.u32 2147483648, %v1070_v16  ;;  %vm1076_vm6 = vweird.f32 %v1070_v16  ;;  %v1080_v29 = vand.u32 2147483647, %v1070_v16 }
 0xea8   :  { %v1083_v31 = vor.u32 1.1754944e-38, %v1082_v28  ;;  %vm1081_vm8 = vcmp.eq.f32.partialorder %v1080_v29, 8.507059e+37 }
 0xeac   :  { %v4088_v51 = vpop.eup %4087 }
 0xead   :  { %v1072_v21 = vmul.f32 %v4088_v51, %v1070_v16  ;;  %vm1077_vm5 = vweird.f32 %v4088_v51 }
 0xeae   :  { %vm1078_vm7 = vmor %vm1076_vm6, %vm1077_vm5 }
 0xeaf   :  { %v1073_v22 = vsub.f32 1.0, %v1072_v21 }
 0xeb1   :  { %v1074_v25 = vmul.f32 %v4088_v51, %v1073_v22  ;;  %v1163_v22 = vld [vmem:[#allocation2 + $0x20] sm:$0x3] }
 0xeb3   :  { %v1075_v26 = vadd.f32 %v4088_v51, %v1074_v25 }
 0xeb5   :  { %v1079_v6 = vsel %vm1078_vm7, %v4088_v51, %v1075_v26 }
 0xeb6   :  { %v1084_v35 = vsel %vm1081_vm8, %v1083_v31, %v1079_v6 }
 0xeb7   :  { %v1104_v37 = vmul.f32 %v1102_v18, %v1084_v35 }
 0xf00   :  { %v956_v19 = vpop.permute.xlu1 %955 }
 0xf01   :  { %v4771_v42 = vadd.f32 %v956_v19, %v948_v14 }
 0xf03   :  { %4089 = vtanh.f32 %v4771_v42 }
 0xf09   :  { %v4090_v23 = vpop.eup %4089 }
 0xf0a   :  { %975 = vrot.lane.b32.xlu0 %v4090_v23, %s4416_s4 }
 0xf14   :  { %v1107_v32 = vpop.permute.xlu0 %1106 }
 0xf15   :  { %v1109_v36 = vmul.f32 %v1107_v32, %v1084_v35 }
 0xf17   :  { %1111 = vrot.lane.b32.xlu2 %v1109_v36, %s4417_s27 }
 0xf71   :  { %v1112_v44 = vpop.permute.xlu2 %1111 }
 0xf72   :  { %v4777_v40 = vadd.f32 %v1112_v44, %v1104_v37 }
 0xf74   :  { %4091 = vtanh.f32 %v4777_v40 }
 0xf7a   :  { %v4092_v46 = vpop.eup %4091 }
 0xf7b   :  { %1123 = vrot.lane.b32.xlu1 %v4092_v46, %s4416_s4 }
 0xf7c   :  { %v976_v27 = vpop.permute.xlu0 %975 }
 0xf7d   :  { %v4781_v1 = vmul.f32 %v976_v27, %v922_v62  ;;  %v1088_v27 = vrot.slane %v4771_v42, 6 }
 0xf7f   :  { %v996_v41 = vpack.c.bf16 %v4781_v1, %v4781_v1 }
 0xf81   :  { %v998_v2 = vrot.slane %v996_v41, 1 }
 0xf83   :  { %999 = vrot.lane.b32.xlu2 %v998_v2, %s4417_s27 }
 0xfdd   :  { %v1000_v43 = vpop.permute.xlu2 %999 }
 0xfde   :  { %3836 = vmatmul.msk.bf16.vlgmr.msrb.gmra.mxu0 %vm154_vm10, %v1000_v43 }
 0xfdf   :  { %1570 = vmatpush.bf16.msrb.mxu0 %v4790_v30 }
 0xfe3   :  { %1571 = vmatpush.bf16.msrb.mxu0 %v4796_v45 }
 0xfed   :  { %v1124_v47 = vpop.permute.xlu1 %1123 }
 0xfee   :  { %v4799_v50 = vmul.f32 %v1124_v47, %v1084_v35 }
 0xff0   :  { %v1164_v52 = vpack.c.bf16 %v4799_v50, %v4799_v50 }
 0xff2   :  { %v1166_v33 = vrot.slane %v1164_v52, 1 }
 0xff4   :  { %1167 = vrot.lane.b32.xlu0 %v1166_v33, %s4417_s27 }
0x105b   :  { %v1013_v53 = vpop.f32.mrf.mxu0 }
0x105c   :  { %v1018_v54 = vrot.slane %v1013_v53, 4 }
0x105e   :  { %v1020_v59 = vadd.f32 %v1018_v54, %v995_v57 }
0x1060   :  { %4093 = vtanh.f32 %v1020_v59  ;;  %v3838_v0 = vmul.f32 -1.442695, %v1020_v59 }
0x1062   :  { %4095 = vpow2.f32 %v3838_v0 }
0x1063   :  { %v1015_v49 = vpop.f32.mrf.mxu0 }
0x1066   :  { %v4094_v61 = vpop.eup %4093  ;;  %v1168_v62 = vpop.permute.xlu0 %1167 }
0x1067   :  { %1092 = vrot.lane.b32.xlu1 %v4094_v61, %s4416_s4  ;;  %3841 = vmatmul.msk.bf16.vlgmr.msra.gmra.mxu3 %vm154_vm10, %v1168_v62  ;;  %v1241_v62 = vrot.slane %v4777_v40, 2 }
0x1068   :  { %1738 = vmatpush.bf16.msra.mxu3 %v4758_v38  ;;  %v4096_v3 = vpop.eup %4095 }
0x1069   :  { %v1050_v4 = vadd.f32 1.0, %v4096_v3 }
0x106b   :  { %4097 = vrcp.f32 %v1050_v4  ;;  %v1062_v15 = vand.u32 2147483648, %v1050_v4  ;;  %vm1056_vm11 = vweird.f32 %v1050_v4  ;;  %v1060_v16 = vand.u32 2147483647, %v1050_v4 }
0x106c   :  { %1739 = vmatpush.bf16.msra.mxu3 %v4764_v39 }
0x106d   :  { %v1063_v51 = vor.u32 1.1754944e-38, %v1062_v15  ;;  %vm1061_vm13 = vcmp.eq.f32.partialorder %v1060_v16, 8.507059e+37 }
0x1071   :  { %v4098_v5 = vpop.eup %4097 }
0x1072   :  { %v1052_v7 = vmul.f32 %v4098_v5, %v1050_v4  ;;  %vm1057_vm9 = vweird.f32 %v4098_v5 }
0x1073   :  { %vm1058_vm12 = vmor %vm1056_vm11, %vm1057_vm9 }
0x1074   :  { %v1053_v10 = vsub.f32 1.0, %v1052_v7 }
0x1076   :  { %v1054_v11 = vmul.f32 %v4098_v5, %v1053_v10 }
0x1078   :  { %v1055_v12 = vadd.f32 %v4098_v5, %v1054_v11 }
0x107a   :  { %v1059_v63 = vsel %vm1058_vm12, %v4098_v5, %v1055_v12 }
0x107b   :  { %v1064_v19 = vsel %vm1061_vm13, %v1063_v51, %v1059_v63  ;;  %v1137_v63 = vld [vmem:[#allocation2 + $0x18] sm:$0xc0] }
0x107c   :  { %v1090_v43 = vmul.f32 %v1088_v27, %v1064_v19 }
0x10d9   :  { %v1093_v14 = vpop.permute.xlu1 %1092 }
0x10da   :  { %v1095_v21 = vmul.f32 %v1093_v14, %v1064_v19 }
0x10dc   :  { %1097 = vrot.lane.b32.xlu0 %v1095_v21, %s4417_s27 }
0x10ea   :  { %v1181_v23 = vpop.f32.mrf.mxu3 }
0x10eb   :  { %v1185_v25 = vadd.f32 %v1181_v23, %v1163_v22 }
0x10ed   :  { %4099 = vtanh.f32 %v1185_v25  ;;  %v3843_v29 = vmul.f32 -1.442695, %v1185_v25 }
0x10ef   :  { %4101 = vpow2.f32 %v3843_v29 }
0x10f2   :  { %v1183_v26 = vpop.f32.mrf.mxu3 }
0x10f3   :  { %v4100_v28 = vpop.eup %4099 }
0x10f4   :  { %1245 = vrot.lane.b32.xlu2 %v4100_v28, %s4416_s4 }
0x10f5   :  { %v4102_v6 = vpop.eup %4101 }
0x10f6   :  { %v1209_v31 = vadd.f32 1.0, %v4102_v6  ;;  %v1299_v6 = vld [vmem:[#allocation2 + $0x10] sm:$0xc0] }
0x10f8   :  { %4103 = vrcp.f32 %v1209_v31  ;;  %v1221_v44 = vand.u32 2147483648, %v1209_v31  ;;  %vm1215_vm15 = vweird.f32 %v1209_v31  ;;  %v1219_v46 = vand.u32 2147483647, %v1209_v31 }
0x10fa   :  { %v1222_v2 = vor.u32 1.1754944e-38, %v1221_v44  ;;  %vm1220_vm1 = vcmp.eq.f32.partialorder %v1219_v46, 8.507059e+37 }
0x10fe   :  { %v4104_v32 = vpop.eup %4103 }
0x10ff   :  { %v1211_v35 = vmul.f32 %v4104_v32, %v1209_v31  ;;  %vm1216_vm14 = vweird.f32 %v4104_v32 }
0x1100   :  { %vm1217_vm0 = vmor %vm1215_vm15, %vm1216_vm14 }
0x1101   :  { %v1212_v36 = vsub.f32 1.0, %v1211_v35 }
0x1103   :  { %v1213_v18 = vmul.f32 %v4104_v32, %v1212_v36 }
0x1105   :  { %v1214_v37 = vadd.f32 %v4104_v32, %v1213_v18 }
0x1107   :  { %v1218_v41 = vsel %vm1217_vm0, %v4104_v32, %v1214_v37 }
0x1108   :  { %v1223_v52 = vsel %vm1220_vm1, %v1222_v2, %v1218_v41 }
0x1109   :  { %v1243_v0 = vmul.f32 %v1241_v62, %v1223_v52 }
0x114e   :  { %v1246_v47 = vpop.permute.xlu2 %1245  ;;  %v1098_v33 = vpop.permute.xlu0 %1097 }
0x114f   :  { %v1248_v53 = vmul.f32 %v1246_v47, %v1223_v52  ;;  %v4811_v54 = vadd.f32 %v1098_v33, %v1090_v43 }
0x1151   :  { %4105 = vtanh.f32 %v4811_v54  ;;  %1250 = vrot.lane.b32.xlu1 %v1248_v53, %s4417_s27 }
0x1157   :  { %v4106_v57 = vpop.eup %4105 }
0x1158   :  { %1117 = vrot.lane.b32.xlu2 %v4106_v57, %s4416_s4 }
0x11b2   :  { %v1118_v59 = vpop.permute.xlu2 %1117 }
0x11b3   :  { %v4816_v49 = vmul.f32 %v1118_v59, %v1064_v19 }
0x11b5   :  { %v1138_v42 = vpack.c.bf16 %v4816_v49, %v4816_v49 }
0x11b7   :  { %v1140_v61 = vrot.slane %v1138_v42, 2 }
0x11b9   :  { %1141 = vrot.lane.b32.xlu1 %v1140_v61, %s4417_s27 }
0x11c3   :  { %v1251_v3 = vpop.permute.xlu1 %1250 }
0x11c4   :  { %v4822_v4 = vadd.f32 %v1251_v3, %v1243_v0 }
0x11c6   :  { %4107 = vtanh.f32 %v4822_v4 }
0x11cc   :  { %v4108_v5 = vpop.eup %4107 }
0x11cd   :  { %1262 = vrot.lane.b32.xlu0 %v4108_v5, %s4416_s4 }
0x122b   :  { %v1142_v7 = vpop.permute.xlu1 %1141 }
0x122c   :  { %3840 = vmatmul.msk.bf16.vlgmr.msra.gmra.mxu2 %vm154_vm10, %v1142_v7 }
0x122d   :  { %1712 = vmatpush.bf16.msra.mxu2 %v4790_v30 }
0x1231   :  { %1713 = vmatpush.bf16.msra.mxu2 %v4796_v45 }
0x123f   :  { %v1263_v10 = vpop.permute.xlu0 %1262 }
0x1240   :  { %v4829_v11 = vmul.f32 %v1263_v10, %v1223_v52 }
0x1242   :  { %v1300_v40 = vpack.c.bf16 %v4829_v11, %v4829_v11 }
0x1244   :  { %1302 = vrot.lane.b32.xlu2 %v1300_v40, %s4417_s27 }
0x129e   :  { %v1303_v12 = vpop.permute.xlu2 %1302 }
0x129f   :  { %3845 = vmatmul.msk.bf16.vlgmr.msra.gmra.mxu1 %vm154_vm10, %v1303_v12 }
0x12a0   :  { %1873 = vmatpush.bf16.msra.mxu1 %v4758_v38 }
0x12a4   :  { %1874 = vmatpush.bf16.msra.mxu1 %v4764_v39 }
0x12af   :  { %v1155_v15 = vpop.f32.mrf.mxu2 }
0x12b0   :  { %v1160_v16 = vrot.slane %v1155_v15, 2  ;;  %v1227_v15 = vrot.slane %v4811_v54, 6 }
0x12b2   :  { %v1162_v51 = vadd.f32 %v1160_v16, %v1137_v63 }
0x12b4   :  { %4109 = vtanh.f32 %v1162_v51  ;;  %v3842_v21 = vmul.f32 -1.442695, %v1162_v51 }
0x12b6   :  { %4111 = vpow2.f32 %v3842_v21 }
0x12b7   :  { %v1157_v14 = vpop.f32.mrf.mxu2 }
0x12ba   :  { %v4110_v19 = vpop.eup %4109 }
0x12bb   :  { %1231 = vrot.lane.b32.xlu1 %v4110_v19, %s4416_s4  ;;  %v1379_v19 = vrot.slane %v4822_v4, 2 }
0x12bc   :  { %v4112_v22 = vpop.eup %4111 }
0x12bd   :  { %v1189_v23 = vadd.f32 1.0, %v4112_v22 }
0x12bf   :  { %4113 = vrcp.f32 %v1189_v23  ;;  %v1201_v44 = vand.u32 2147483648, %v1189_v23  ;;  %vm1195_vm3 = vweird.f32 %v1189_v23  ;;  %v1199_v46 = vand.u32 2147483647, %v1189_v23 }
0x12c1   :  { %v1202_v41 = vor.u32 1.1754944e-38, %v1201_v44  ;;  %vm1200_vm5 = vcmp.eq.f32.partialorder %v1199_v46, 8.507059e+37 }
0x12c5   :  { %v4114_v25 = vpop.eup %4113 }
0x12c6   :  { %v1191_v26 = vmul.f32 %v4114_v25, %v1189_v23  ;;  %vm1196_vm2 = vweird.f32 %v4114_v25 }
0x12c7   :  { %vm1197_vm4 = vmor %vm1195_vm3, %vm1196_vm2 }
0x12c8   :  { %v1192_v31 = vsub.f32 1.0, %v1191_v26 }
0x12ca   :  { %v1193_v35 = vmul.f32 %v4114_v25, %v1192_v31 }
0x12cc   :  { %v1194_v18 = vadd.f32 %v4114_v25, %v1193_v35 }
0x12ce   :  { %v1198_v27 = vsel %vm1197_vm4, %v4114_v25, %v1194_v18  ;;  %v1276_v18 = vld [vmem:[#allocation2 + $0x8] sm:$0x3] }
0x12cf   :  { %v1203_v43 = vsel %vm1200_vm5, %v1202_v41, %v1198_v27 }
0x12d0   :  { %v1229_v16 = vmul.f32 %v1227_v15, %v1203_v43 }
0x131c   :  { %v1316_v28 = vpop.f32.mrf.mxu1 }
0x131d   :  { %v1321_v29 = vrot.slane %v1316_v28, 2 }
0x131f   :  { %v1323_v32 = vadd.f32 %v1321_v29, %v1299_v6 }
0x1321   :  { %4115 = vtanh.f32 %v1323_v32  ;;  %v3847_v52 = vmul.f32 -1.442695, %v1323_v32 }
0x1323   :  { %4117 = vpow2.f32 %v3847_v52 }
0x1324   :  { %v1318_v36 = vpop.f32.mrf.mxu1 }
0x1327   :  { %v4116_v37 = vpop.eup %4115 }
0x1328   :  { %1383 = vrot.lane.b32.xlu0 %v4116_v37, %s4416_s4 }
0x1329   :  { %v4118_v33 = vpop.eup %4117 }
0x132a   :  { %v1347_v53 = vadd.f32 1.0, %v4118_v33 }
0x132c   :  { %4119 = vrcp.f32 %v1347_v53  ;;  %v1359_v0 = vand.u32 2147483648, %v1347_v53  ;;  %vm1353_vm7 = vweird.f32 %v1347_v53  ;;  %v1357_v3 = vand.u32 2147483647, %v1347_v53 }
0x132d   :  { %v1232_v2 = vpop.permute.xlu1 %1231 }
0x132e   :  { %v1234_v47 = vmul.f32 %v1232_v2, %v1203_v43  ;;  %v1360_v7 = vor.u32 1.1754944e-38, %v1359_v0  ;;  %vm1358_vm9 = vcmp.eq.f32.partialorder %v1357_v3, 8.507059e+37 }
0x1330   :  { %1236 = vrot.lane.b32.xlu0 %v1234_v47, %s4417_s27 }
0x1332   :  { %v4120_v57 = vpop.eup %4119 }
0x1333   :  { %v1349_v59 = vmul.f32 %v4120_v57, %v1347_v53  ;;  %vm1354_vm6 = vweird.f32 %v4120_v57 }
0x1334   :  { %vm1355_vm8 = vmor %vm1353_vm7, %vm1354_vm6 }
0x1335   :  { %v1350_v42 = vsub.f32 1.0, %v1349_v59 }
0x1337   :  { %v1351_v61 = vmul.f32 %v4120_v57, %v1350_v42 }
0x1339   :  { %v1352_v62 = vadd.f32 %v4120_v57, %v1351_v61 }
0x133b   :  { %v1356_v5 = vsel %vm1355_vm8, %v4120_v57, %v1352_v62 }
0x133c   :  { %v1361_v40 = vsel %vm1358_vm9, %v1360_v7, %v1356_v5 }
0x133d   :  { %v1381_v21 = vmul.f32 %v1379_v19, %v1361_v40 }
0x139a   :  { %v1384_v10 = vpop.permute.xlu0 %1383 }
0x139b   :  { %v1386_v12 = vmul.f32 %v1384_v10, %v1361_v40 }
0x139d   :  { %1388 = vrot.lane.b32.xlu2 %v1386_v12, %s4417_s27 }
0x13a2   :  { %v1237_v63 = vpop.permute.xlu0 %1236 }
0x13a3   :  { %v4842_v51 = vadd.f32 %v1237_v63, %v1229_v16 }
0x13a5   :  { %4121 = vtanh.f32 %v4842_v51 }
0x13ab   :  { %v4122_v14 = vpop.eup %4121 }
0x13ac   :  { %1256 = vrot.lane.b32.xlu2 %v4122_v14, %s4416_s4 }
0x13f7   :  { %v1389_v22 = vpop.permute.xlu2 %1388 }
0x13f8   :  { %v4847_v23 = vadd.f32 %v1389_v22, %v1381_v21  ;;  %v1365_v21 = vrot.slane %v4842_v51, 6 }
0x13fa   :  { %4123 = vtanh.f32 %v4847_v23 }
0x1400   :  { %v4124_v25 = vpop.eup %4123 }
0x1401   :  { %1400 = vrot.lane.b32.xlu1 %v4124_v25, %s4416_s4 }
0x1406   :  { %v1257_v54 = vpop.permute.xlu2 %1256 }
0x1407   :  { %v4851_v26 = vmul.f32 %v1257_v54, %v1203_v43 }
0x1409   :  { %v1277_v28 = vpack.c.bf16 %v4851_v26, %v4851_v26 }
0x140b   :  { %v1279_v29 = vrot.slane %v1277_v28, 3 }
0x140d   :  { %1280 = vrot.lane.b32.xlu1 %v1279_v29, %s4417_s27 }
0x1473   :  { %v1401_v6 = vpop.permute.xlu1 %1400 }
0x1474   :  { %v4856_v4 = vmul.f32 %v1401_v6, %v1361_v40  ;;  %v1439_v40 = vld [vmem:[#allocation2 + $0x10] sm:$0x30] }
0x1476   :  { %v1440_v31 = vpack.c.bf16 %v4856_v4, %v4856_v4 }
0x1478   :  { %v1442_v32 = vrot.slane %v1440_v31, 3 }
0x147a   :  { %1443 = vrot.lane.b32.xlu0 %v1442_v32, %s4417_s27 }
0x147f   :  { %v1281_v35 = vpop.permute.xlu1 %1280 }
0x1480   :  { %3844 = vmatmul.msk.bf16.vlgmr.msra.gmra.mxu0 %vm154_vm10, %v1281_v35 }
0x1481   :  { %1851 = vmatpush.bf16.msra.mxu0 %v4790_v30 }
0x1485   :  { %1852 = vmatpush.bf16.msra.mxu0 %v4796_v45 }
0x14ec   :  { %v1444_v36 = vpop.permute.xlu0 %1443 }
0x14ed   :  { %3849 = vmatmul.msk.bf16.vlgmr.msrb.gmra.mxu3 %vm154_vm10, %v1444_v36 }
0x14ee   :  { %2014 = vmatpush.bf16.msrb.mxu3 %v4758_v38 }
0x14f2   :  { %2015 = vmatpush.bf16.msrb.mxu3 %v4764_v39 }
0x14fd   :  { %v1294_v37 = vpop.f32.mrf.mxu0 }
0x14fe   :  { %v1298_v44 = vadd.f32 %v1294_v37, %v1276_v18 }
0x1500   :  { %4125 = vtanh.f32 %v1298_v44  ;;  %v3846_v41 = vmul.f32 -1.442695, %v1298_v44 }
0x1502   :  { %4127 = vpow2.f32 %v3846_v41  ;;  %v1520_v41 = vrot.slane %v4847_v23, 2 }
0x1505   :  { %v1296_v46 = vpop.f32.mrf.mxu0 }
0x1506   :  { %v4126_v27 = vpop.eup %4125 }
0x1507   :  { %1369 = vrot.lane.b32.xlu2 %v4126_v27, %s4416_s4 }
0x1508   :  { %v4128_v2 = vpop.eup %4127 }
0x1509   :  { %v1327_v43 = vadd.f32 1.0, %v4128_v2 }
0x150b   :  { %4129 = vrcp.f32 %v1327_v43  ;;  %v1339_v59 = vand.u32 2147483648, %v1327_v43  ;;  %vm1333_vm12 = vweird.f32 %v1327_v43  ;;  %v1337_v42 = vand.u32 2147483647, %v1327_v43 }
0x150d   :  { %v1340_v62 = vor.u32 1.1754944e-38, %v1339_v59  ;;  %vm1338_vm14 = vcmp.eq.f32.partialorder %v1337_v42, 8.507059e+37 }
0x1511   :  { %v4130_v47 = vpop.eup %4129 }
0x1512   :  { %v1329_v52 = vmul.f32 %v4130_v47, %v1327_v43  ;;  %vm1334_vm11 = vweird.f32 %v4130_v47 }
0x1513   :  { %vm1335_vm13 = vmor %vm1333_vm12, %vm1334_vm11 }
0x1514   :  { %v1330_v33 = vsub.f32 1.0, %v1329_v52 }
0x1516   :  { %v1331_v53 = vmul.f32 %v4130_v47, %v1330_v33 }
0x1518   :  { %v1332_v57 = vadd.f32 %v4130_v47, %v1331_v53 }
0x151a   :  { %v1336_v61 = vsel %vm1335_vm13, %v4130_v47, %v1332_v57 }
0x151b   :  { %v1341_v3 = vsel %vm1338_vm14, %v1340_v62, %v1336_v61 }
0x151c   :  { %v1367_v22 = vmul.f32 %v1365_v21, %v1341_v3 }
0x1561   :  { %v1370_v0 = vpop.permute.xlu2 %1369 }
0x1562   :  { %v1372_v5 = vmul.f32 %v1370_v0, %v1341_v3 }
0x1564   :  { %1374 = vrot.lane.b32.xlu1 %v1372_v5, %s4417_s27  ;;  %v1414_v5 = vld [vmem:[#allocation2 + $0x8] sm:$0xc] }
0x1570   :  { %v1457_v7 = vpop.f32.mrf.mxu3 }
0x1571   :  { %v1462_v10 = vrot.slane %v1457_v7, 4 }
0x1573   :  { %v1464_v12 = vadd.f32 %v1462_v10, %v1439_v40 }
0x1575   :  { %4131 = vtanh.f32 %v1464_v12  ;;  %v3851_v63 = vmul.f32 -1.442695, %v1464_v12 }
0x1577   :  { %4133 = vpow2.f32 %v3851_v63 }
0x1578   :  { %v1459_v15 = vpop.f32.mrf.mxu3 }
0x157b   :  { %v4132_v16 = vpop.eup %4131 }
0x157c   :  { %1524 = vrot.lane.b32.xlu0 %v4132_v16, %s4416_s4 }
0x157d   :  { %v4134_v14 = vpop.eup %4133 }
0x157e   :  { %v1488_v19 = vadd.f32 1.0, %v4134_v14 }
0x1580   :  { %4135 = vrcp.f32 %v1488_v19  ;;  %v1500_v36 = vand.u32 2147483648, %v1488_v19  ;;  %vm1494_vm0 = vweird.f32 %v1488_v19  ;;  %v1498_v18 = vand.u32 2147483647, %v1488_v19 }
0x1582   :  { %v1501_v37 = vor.u32 1.1754944e-38, %v1500_v36  ;;  %vm1499_vm2 = vcmp.eq.f32.partialorder %v1498_v18, 8.507059e+37 }
0x1586   :  { %v4136_v28 = vpop.eup %4135 }
0x1587   :  { %v1490_v29 = vmul.f32 %v4136_v28, %v1488_v19  ;;  %vm1495_vm15 = vweird.f32 %v4136_v28 }
0x1588   :  { %vm1496_vm1 = vmor %vm1494_vm0, %vm1495_vm15 }
0x1589   :  { %v1491_v31 = vsub.f32 1.0, %v1490_v29 }
0x158b   :  { %v1492_v32 = vmul.f32 %v4136_v28, %v1491_v31 }
0x158d   :  { %v1493_v35 = vadd.f32 %v4136_v28, %v1492_v32 }
0x158f   :  { %v1497_v51 = vsel %vm1496_vm1, %v4136_v28, %v1493_v35 }
0x1590   :  { %v1502_v46 = vsel %vm1499_vm2, %v1501_v37, %v1497_v51  ;;  %v1581_v37 = vld [vmem:[#allocation2 + $0x10] sm:$0xc] }
0x1591   :  { %v1522_v2 = vmul.f32 %v1520_v41, %v1502_v46 }
0x15d6   :  { %v1375_v25 = vpop.permute.xlu1 %1374 }
0x15d7   :  { %v4871_v54 = vadd.f32 %v1375_v25, %v1367_v22 }
0x15d9   :  { %4137 = vtanh.f32 %v4871_v54 }
0x15df   :  { %v4138_v6 = vpop.eup %4137 }
0x15e0   :  { %1394 = vrot.lane.b32.xlu0 %v4138_v6, %s4416_s4 }
0x15ee   :  { %v1525_v44 = vpop.permute.xlu0 %1524 }
0x15ef   :  { %v1527_v27 = vmul.f32 %v1525_v44, %v1502_v46 }
0x15f1   :  { %1529 = vrot.lane.b32.xlu2 %v1527_v27, %s4417_s27 }
0x164b   :  { %v1530_v43 = vpop.permute.xlu2 %1529 }
0x164c   :  { %v4877_v47 = vadd.f32 %v1530_v43, %v1522_v2 }
0x164e   :  { %4139 = vtanh.f32 %v4877_v47 }
0x1652   :  { %v1395_v52 = vpop.permute.xlu0 %1394 }
0x1653   :  { %v4880_v33 = vmul.f32 %v1395_v52, %v1341_v3 }
0x1654   :  { %v4140_v53 = vpop.eup %4139 }
0x1655   :  { %v1415_v57 = vpack.c.bf16 %v4880_v33, %v4880_v33  ;;  %1541 = vrot.lane.b32.xlu1 %v4140_v53, %s4416_s4 }
0x1657   :  { %1417 = vrot.lane.b32.xlu2 %v1415_v57, %s4417_s27 }
0x16b1   :  { %v1418_v59 = vpop.permute.xlu2 %1417 }
0x16b2   :  { %3848 = vmatmul.msk.bf16.vlgmr.msrb.gmra.mxu2 %vm154_vm10, %v1418_v59 }
0x16b3   :  { %1988 = vmatpush.bf16.msrb.mxu2 %v4790_v30 }
0x16b7   :  { %1989 = vmatpush.bf16.msrb.mxu2 %v4796_v45 }
0x16c7   :  { %v1542_v23 = vpop.permute.xlu1 %1541 }
0x16c8   :  { %v4889_v42 = vmul.f32 %v1542_v23, %v1502_v46 }
0x16ca   :  { %v1582_v61 = vpack.c.bf16 %v4889_v42, %v4889_v42 }
0x16cc   :  { %v1584_v62 = vrot.slane %v1582_v61, 2 }
0x16ce   :  { %1585 = vrot.lane.b32.xlu0 %v1584_v62, %s4417_s27 }
0x1735   :  { %v1431_v0 = vpop.f32.mrf.mxu2 }
0x1736   :  { %v1436_v3 = vrot.slane %v1431_v0, 6 }
0x1738   :  { %v1438_v7 = vadd.f32 %v1436_v3, %v1414_v5 }
0x173a   :  { %4141 = vtanh.f32 %v1438_v7  ;;  %v3850_v15 = vmul.f32 -1.442695, %v1438_v7 }
0x173c   :  { %4143 = vpow2.f32 %v3850_v15 }
0x173d   :  { %v1433_v10 = vpop.f32.mrf.mxu2 }
0x173e   :  { %v1506_v10 = vrot.slane %v4871_v54, 6  ;;  %v1662_v54 = vrot.slane %v4877_v47, 2 }
0x1740   :  { %v4142_v40 = vpop.eup %4141  ;;  %v1586_v12 = vpop.permute.xlu0 %1585 }
0x1741   :  { %3853 = vmatmul.msk.bf16.vlgmr.msrb.gmra.mxu1 %vm154_vm10, %v1586_v12  ;;  %1510 = vrot.lane.b32.xlu1 %v4142_v40, %s4416_s4 }
0x1742   :  { %2156 = vmatpush.bf16.msrb.mxu1 %v4758_v38  ;;  %v4144_v16 = vpop.eup %4143 }
0x1743   :  { %v1468_v63 = vadd.f32 1.0, %v4144_v16 }
0x1745   :  { %4145 = vrcp.f32 %v1468_v63  ;;  %v1480_v28 = vand.u32 2147483648, %v1468_v63  ;;  %vm1474_vm4 = vweird.f32 %v1468_v63  ;;  %v1478_v29 = vand.u32 2147483647, %v1468_v63 }
0x1746   :  { %2157 = vmatpush.bf16.msrb.mxu1 %v4764_v39 }
0x1747   :  { %v1481_v31 = vor.u32 1.1754944e-38, %v1480_v28  ;;  %vm1479_vm6 = vcmp.eq.f32.partialorder %v1478_v29, 8.507059e+37 }
0x174b   :  { %v4146_v14 = vpop.eup %4145 }
0x174c   :  { %v1470_v19 = vmul.f32 %v4146_v14, %v1468_v63  ;;  %vm1475_vm3 = vweird.f32 %v4146_v14 }
0x174d   :  { %vm1476_vm5 = vmor %vm1474_vm4, %vm1475_vm3 }
0x174e   :  { %v1471_v21 = vsub.f32 1.0, %v1470_v19 }
0x1750   :  { %v1472_v22 = vmul.f32 %v4146_v14, %v1471_v21 }
0x1752   :  { %v1473_v25 = vadd.f32 %v4146_v14, %v1472_v22 }
0x1754   :  { %v1477_v6 = vsel %vm1476_vm5, %v4146_v14, %v1473_v25 }
0x1755   :  { %v1482_v35 = vsel %vm1479_vm6, %v1481_v31, %v1477_v6 }
0x1756   :  { %v1508_v12 = vmul.f32 %v1506_v10, %v1482_v35 }
0x17b3   :  { %v1511_v32 = vpop.permute.xlu1 %1510 }
0x17b4   :  { %v1513_v36 = vmul.f32 %v1511_v32, %v1482_v35 }
0x17b6   :  { %1515 = vrot.lane.b32.xlu0 %v1513_v36, %s4417_s27 }
0x17be   :  { %v1599_v18 = vpop.f32.mrf.mxu1 }
0x17bf   :  { %v1604_v51 = vrot.slane %v1599_v18, 6 }
0x17c1   :  { %v1606_v44 = vadd.f32 %v1604_v51, %v1581_v37 }
0x17c3   :  { %4147 = vtanh.f32 %v1606_v44  ;;  %v3855_v41 = vmul.f32 -1.442695, %v1606_v44  ;;  %v1555_v44 = vld [vmem:[#allocation2 + $0x8] sm:$0x30] }
0x17c5   :  { %4149 = vpow2.f32 %v3855_v41 }
0x17c6   :  { %v1601_v46 = vpop.f32.mrf.mxu1 }
0x17c9   :  { %v4148_v27 = vpop.eup %4147 }
0x17ca   :  { %1666 = vrot.lane.b32.xlu2 %v4148_v27, %s4416_s4 }
0x17cb   :  { %v4150_v2 = vpop.eup %4149 }
0x17cc   :  { %v1630_v43 = vadd.f32 1.0, %v4150_v2 }
0x17ce   :  { %4151 = vrcp.f32 %v1630_v43  ;;  %v1642_v61 = vand.u32 2147483648, %v1630_v43  ;;  %vm1636_vm8 = vweird.f32 %v1630_v43  ;;  %v1640_v62 = vand.u32 2147483647, %v1630_v43 }
0x17d0   :  { %v1643_v3 = vor.u32 1.1754944e-38, %v1642_v61  ;;  %vm1641_vm11 = vcmp.eq.f32.partialorder %v1640_v62, 8.507059e+37 }
0x17d4   :  { %v4152_v52 = vpop.eup %4151 }
0x17d5   :  { %v1632_v53 = vmul.f32 %v4152_v52, %v1630_v43  ;;  %vm1637_vm7 = vweird.f32 %v4152_v52 }
0x17d6   :  { %vm1638_vm9 = vmor %vm1636_vm8, %vm1637_vm7 }
0x17d7   :  { %v1633_v57 = vsub.f32 1.0, %v1632_v53 }
0x17d9   :  { %v1634_v59 = vmul.f32 %v4152_v52, %v1633_v57 }
0x17db   :  { %v1635_v23 = vadd.f32 %v4152_v52, %v1634_v59 }
0x17dd   :  { %v1639_v0 = vsel %vm1638_vm9, %v4152_v52, %v1635_v23  ;;  %v1723_v23 = vld [vmem:[#allocation2 + $0x10] sm:$0x3] }
0x17de   :  { %v1644_v7 = vsel %vm1641_vm11, %v1643_v3, %v1639_v0 }
0x17df   :  { %v1664_v25 = vmul.f32 %v1662_v54, %v1644_v7 }
0x1824   :  { %v1667_v5 = vpop.permute.xlu2 %1666 }
0x1825   :  { %v1669_v40 = vmul.f32 %v1667_v5, %v1644_v7 }
0x1827   :  { %1671 = vrot.lane.b32.xlu1 %v1669_v40, %s4417_s27 }
0x1828   :  { %v1516_v15 = vpop.permute.xlu0 %1515 }
0x1829   :  { %v4902_v16 = vadd.f32 %v1516_v15, %v1508_v12 }
0x182b   :  { %4153 = vtanh.f32 %v4902_v16  ;;  %v1648_v54 = vrot.slane %v4902_v16, 6 }
0x1831   :  { %v4154_v63 = vpop.eup %4153 }
0x1832   :  { %1535 = vrot.lane.b32.xlu2 %v4154_v63, %s4416_s4 }
0x188c   :  { %v1536_v14 = vpop.permute.xlu2 %1535 }
0x188d   :  { %v4906_v19 = vmul.f32 %v1536_v14, %v1482_v35 }
0x188f   :  { %v1556_v21 = vpack.c.bf16 %v4906_v19, %v4906_v19 }
0x1891   :  { %v1558_v22 = vrot.slane %v1556_v21, 1 }
0x1893   :  { %1559 = vrot.lane.b32.xlu1 %v1558_v22, %s4417_s27 }
0x1899   :  { %v1672_v28 = vpop.permute.xlu1 %1671 }
0x189a   :  { %v4912_v29 = vadd.f32 %v1672_v28, %v1664_v25 }
0x189c   :  { %4155 = vtanh.f32 %v4912_v29 }
0x18a2   :  { %v4156_v6 = vpop.eup %4155 }
0x18a3   :  { %1683 = vrot.lane.b32.xlu0 %v4156_v6, %s4416_s4 }
0x1905   :  { %v1560_v31 = vpop.permute.xlu1 %1559 }
0x1906   :  { %3852 = vmatmul.msk.bf16.vlgmr.msrb.gmra.mxu0 %vm154_vm10, %v1560_v31 }
0x1907   :  { %2130 = vmatpush.bf16.msrb.mxu0 %v4790_v30 }
0x190b   :  { %2131 = vmatpush.bf16.msrb.mxu0 %v4796_v45 }
0x1915   :  { %v1684_v32 = vpop.permute.xlu0 %1683 }
0x1916   :  { %v4919_v35 = vmul.f32 %v1684_v32, %v1644_v7 }
0x1918   :  { %v1724_v47 = vpack.c.bf16 %v4919_v35, %v4919_v35 }
0x191a   :  { %v1726_v36 = vrot.slane %v1724_v47, 1 }
0x191c   :  { %1727 = vrot.lane.b32.xlu2 %v1726_v36, %s4417_s27 }
0x1976   :  { %v1728_v18 = vpop.permute.xlu2 %1727 }
0x1977   :  { %3857 = vmatmul.msk.bf16.vlgmr.msra.gmra.mxu3 %vm154_vm10, %v1728_v18 }
0x1978   :  { %2298 = vmatpush.bf16.msra.mxu3 %v4758_v38 }
0x197c   :  { %2299 = vmatpush.bf16.msra.mxu3 %v4764_v39 }
0x1983   :  { %v1573_v51 = vpop.f32.mrf.mxu0 }
0x1984   :  { %v1578_v37 = vrot.slane %v1573_v51, 4 }
0x1986   :  { %v1580_v46 = vadd.f32 %v1578_v37, %v1555_v44 }
0x1988   :  { %4157 = vtanh.f32 %v1580_v46  ;;  %v3854_v2 = vmul.f32 -1.442695, %v1580_v46 }
0x198a   :  { %4159 = vpow2.f32 %v3854_v2 }
0x198b   :  { %v1575_v27 = vpop.f32.mrf.mxu0 }
0x198e   :  { %v4158_v41 = vpop.eup %4157 }
0x198f   :  { %1652 = vrot.lane.b32.xlu0 %v4158_v41, %s4416_s4 }
0x1990   :  { %v4160_v43 = vpop.eup %4159 }
0x1991   :  { %v1610_v52 = vadd.f32 1.0, %v4160_v43 }
0x1993   :  { %4161 = vrcp.f32 %v1610_v52  ;;  %v1622_v0 = vand.u32 2147483648, %v1610_v52  ;;  %vm1616_vm13 = vweird.f32 %v1610_v52  ;;  %v1620_v3 = vand.u32 2147483647, %v1610_v52 }
0x1995   :  { %v1623_v7 = vor.u32 1.1754944e-38, %v1622_v0  ;;  %vm1621_vm15 = vcmp.eq.f32.partialorder %v1620_v3, 8.507059e+37 }
0x1999   :  { %v4162_v53 = vpop.eup %4161 }
0x199a   :  { %v1612_v57 = vmul.f32 %v4162_v53, %v1610_v52  ;;  %vm1617_vm12 = vweird.f32 %v4162_v53 }
0x199b   :  { %vm1618_vm14 = vmor %vm1616_vm13, %vm1617_vm12 }
0x199c   :  { %v1613_v59 = vsub.f32 1.0, %v1612_v57 }
0x199e   :  { %v1614_v38 = vmul.f32 %v4162_v53, %v1613_v59  ;;  %v1801_v59 = vrot.slane %v4912_v29, 2 }
0x19a0   :  { %v1615_v61 = vadd.f32 %v4162_v53, %v1614_v38 }
0x19a2   :  { %v1619_v5 = vsel %vm1618_vm14, %v4162_v53, %v1615_v61 }
0x19a3   :  { %v1624_v40 = vsel %vm1621_vm15, %v1623_v7, %v1619_v5 }
0x19a4   :  { %v1650_v25 = vmul.f32 %v1648_v54, %v1624_v40 }
0x19fa   :  { %v1741_v39 = vpop.f32.mrf.mxu3 }
0x19fb   :  { %v1745_v62 = vadd.f32 %v1741_v39, %v1723_v23 }
0x19fd   :  { %4163 = vtanh.f32 %v1745_v62  ;;  %v3859_v14 = vmul.f32 -1.442695, %v1745_v62 }
0x19ff   :  { %4165 = vpow2.f32 %v3859_v14 }
0x1a01   :  { %v1653_v10 = vpop.permute.xlu0 %1652 }
0x1a02   :  { %v1655_v12 = vmul.f32 %v1653_v10, %v1624_v40  ;;  %v1743_v15 = vpop.f32.mrf.mxu3 }
0x1a03   :  { %v4164_v63 = vpop.eup %4163 }
0x1a04   :  { %1657 = vrot.lane.b32.xlu2 %v1655_v12, %s4417_s27  ;;  %1805 = vrot.lane.b32.xlu1 %v4164_v63, %s4416_s4 }
0x1a05   :  { %v4166_v21 = vpop.eup %4165 }
0x1a06   :  { %v1769_v22 = vadd.f32 1.0, %v4166_v21 }
0x1a08   :  { %4167 = vrcp.f32 %v1769_v22  ;;  %v1781_v37 = vand.u32 2147483648, %v1769_v22  ;;  %vm1775_vm1 = vweird.f32 %v1769_v22  ;;  %v1779_v44 = vand.u32 2147483647, %v1769_v22 }
0x1a0a   :  { %v1782_v46 = vor.u32 1.1754944e-38, %v1781_v37  ;;  %vm1780_vm3 = vcmp.eq.f32.partialorder %v1779_v44, 8.507059e+37 }
0x1a0e   :  { %v4168_v31 = vpop.eup %4167 }
0x1a0f   :  { %v1771_v32 = vmul.f32 %v4168_v31, %v1769_v22  ;;  %vm1776_vm0 = vweird.f32 %v4168_v31 }
0x1a10   :  { %vm1777_vm2 = vmor %vm1775_vm1, %vm1776_vm0 }
0x1a11   :  { %v1772_v36 = vsub.f32 1.0, %v1771_v32 }
0x1a13   :  { %v1773_v18 = vmul.f32 %v4168_v31, %v1772_v36 }
0x1a15   :  { %v1774_v51 = vadd.f32 %v4168_v31, %v1773_v18 }
0x1a17   :  { %v1778_v16 = vsel %vm1777_vm2, %v4168_v31, %v1774_v51 }
0x1a18   :  { %v1783_v41 = vsel %vm1780_vm3, %v1782_v46, %v1778_v16 }
0x1a19   :  { %v1803_v38 = vmul.f32 %v1801_v59, %v1783_v41 }
0x1a5e   :  { %v1658_v28 = vpop.permute.xlu2 %1657 }
0x1a5f   :  { %v4931_v6 = vadd.f32 %v1658_v28, %v1650_v25  ;;  %v1859_v28 = vld [vmem:[#allocation2] sm:$0xc0] }
0x1a61   :  { %4169 = vtanh.f32 %v4931_v6 }
0x1a67   :  { %v4170_v47 = vpop.eup %4169 }
0x1a68   :  { %1677 = vrot.lane.b32.xlu1 %v4170_v47, %s4416_s4 }
0x1a76   :  { %v1806_v27 = vpop.permute.xlu1 %1805 }
0x1a77   :  { %v1808_v2 = vmul.f32 %v1806_v27, %v1783_v41 }
0x1a79   :  { %1810 = vrot.lane.b32.xlu0 %v1808_v2, %s4417_s27 }
0x1ada   :  { %v1678_v43 = vpop.permute.xlu1 %1677 }
0x1adb   :  { %v4936_v52 = vmul.f32 %v1678_v43, %v1624_v40  ;;  %v1697_v40 = vld [vmem:[#allocation2 + $0x8] sm:$0xc0] }
0x1add   :  { %v1698_v53 = vpack.c.bf16 %v4936_v52, %v4936_v52 }
0x1adf   :  { %v1700_v57 = vrot.slane %v1698_v53, 2 }
0x1ae1   :  { %1701 = vrot.lane.b32.xlu0 %v1700_v57, %s4417_s27 }
0x1aeb   :  { %v1811_v23 = vpop.permute.xlu0 %1810 }
0x1aec   :  { %v4942_v39 = vadd.f32 %v1811_v23, %v1803_v38 }
0x1aee   :  { %4171 = vtanh.f32 %v4942_v39 }
0x1af4   :  { %v4172_v61 = vpop.eup %4171 }
0x1af5   :  { %1822 = vrot.lane.b32.xlu2 %v4172_v61, %s4416_s4 }
0x1b4f   :  { %v1823_v62 = vpop.permute.xlu2 %1822 }
0x1b50   :  { %v4946_v0 = vmul.f32 %v1823_v62, %v1783_v41 }
0x1b52   :  { %v1860_v3 = vpack.c.bf16 %v4946_v0, %v4946_v0 }
0x1b53   :  { %v1702_v5 = vpop.permute.xlu0 %1701 }
0x1b54   :  { %3856 = vmatmul.msk.bf16.vlgmr.msra.gmra.mxu2 %vm154_vm10, %v1702_v5  ;;  %1862 = vrot.lane.b32.xlu1 %v1860_v3, %s4417_s27 }
0x1b55   :  { %2272 = vmatpush.bf16.msra.mxu2 %v4790_v30 }
0x1b59   :  { %2273 = vmatpush.bf16.msra.mxu2 %v4796_v45 }
0x1bc6   :  { %v1863_v29 = vpop.permute.xlu1 %1862 }
0x1bc7   :  { %3861 = vmatmul.msk.bf16.vlgmr.msra.gmra.mxu1 %vm154_vm10, %v1863_v29 }
0x1bd7   :  { %v1715_v7 = vpop.f32.mrf.mxu2 }
0x1bd8   :  { %v1720_v10 = vrot.slane %v1715_v7, 2 }
0x1bda   :  { %v1722_v12 = vadd.f32 %v1720_v10, %v1697_v40 }
0x1bdc   :  { %4173 = vtanh.f32 %v1722_v12  ;;  %v3858_v14 = vmul.f32 -1.442695, %v1722_v12 }
0x1bde   :  { %4175 = vpow2.f32 %v3858_v14 }
0x1bdf   :  { %v1717_v15 = vpop.f32.mrf.mxu2 }
0x1be0   :  { %v1787_v15 = vrot.slane %v4931_v6, 6 }
0x1be2   :  { %v4174_v63 = vpop.eup %4173 }
0x1be3   :  { %1791 = vrot.lane.b32.xlu0 %v4174_v63, %s4416_s4 }
0x1be4   :  { %v4176_v21 = vpop.eup %4175 }
0x1be5   :  { %v1749_v22 = vadd.f32 1.0, %v4176_v21 }
0x1be7   :  { %4177 = vrcp.f32 %v1749_v22  ;;  %v1761_v37 = vand.u32 2147483648, %v1749_v22  ;;  %vm1755_vm5 = vweird.f32 %v1749_v22  ;;  %v1759_v44 = vand.u32 2147483647, %v1749_v22 }
0x1be9   :  { %v1762_v46 = vor.u32 1.1754944e-38, %v1761_v37  ;;  %vm1760_vm7 = vcmp.eq.f32.partialorder %v1759_v44, 8.507059e+37 }
0x1bed   :  { %v4178_v30 = vpop.eup %4177 }
0x1bee   :  { %v1751_v54 = vmul.f32 %v4178_v30, %v1749_v22  ;;  %vm1756_vm4 = vweird.f32 %v4178_v30 }
0x1bef   :  { %vm1757_vm6 = vmor %vm1755_vm5, %vm1756_vm4 }
0x1bf0   :  { %v1752_v31 = vsub.f32 1.0, %v1751_v54 }
0x1bf2   :  { %v1753_v47 = vmul.f32 %v4178_v30, %v1752_v31 }
0x1bf4   :  { %v1754_v18 = vadd.f32 %v4178_v30, %v1753_v47 }
0x1bf6   :  { %v1758_v16 = vsel %vm1757_vm6, %v4178_v30, %v1754_v18  ;;  %v1939_v30 = vrot.slane %v4942_v39, 2 }
0x1bf7   :  { %v1763_v41 = vsel %vm1760_vm7, %v1762_v46, %v1758_v16  ;;  %v1836_v16 = vld [vmem:[#allocation2 + $0x28] sm:$0x3] }
0x1bf8   :  { %v1789_v63 = vmul.f32 %v1787_v15, %v1763_v41 }
0x1c44   :  { %v1876_v45 = vpop.f32.mrf.mxu1 }
0x1c45   :  { %v1881_v25 = vrot.slane %v1876_v45, 2 }
0x1c47   :  { %v1883_v32 = vadd.f32 %v1881_v25, %v1859_v28 }
0x1c49   :  { %4179 = vtanh.f32 %v1883_v32  ;;  %v3863_v43 = vmul.f32 -1.442695, %v1883_v32 }
0x1c4b   :  { %4181 = vpow2.f32 %v3863_v43 }
0x1c4c   :  { %v1878_v36 = vpop.f32.mrf.mxu1 }
0x1c4f   :  { %v4180_v51 = vpop.eup %4179 }
0x1c50   :  { %1943 = vrot.lane.b32.xlu2 %v4180_v51, %s4416_s4 }
0x1c51   :  { %v4182_v53 = vpop.eup %4181 }
0x1c52   :  { %v1907_v57 = vadd.f32 1.0, %v4182_v53 }
0x1c54   :  { %4183 = vrcp.f32 %v1907_v57  ;;  %v1919_v3 = vand.u32 2147483648, %v1907_v57  ;;  %vm1913_vm9 = vweird.f32 %v1907_v57  ;;  %v1917_v5 = vand.u32 2147483647, %v1907_v57 }
0x1c55   :  { %v1792_v27 = vpop.permute.xlu0 %1791 }
0x1c56   :  { %v1794_v2 = vmul.f32 %v1792_v27, %v1763_v41  ;;  %v1920_v7 = vor.u32 1.1754944e-38, %v1919_v3  ;;  %vm1918_vm12 = vcmp.eq.f32.partialorder %v1917_v5, 8.507059e+37 }
0x1c58   :  { %1796 = vrot.lane.b32.xlu2 %v1794_v2, %s4417_s27 }
0x1c5a   :  { %v4184_v59 = vpop.eup %4183 }
0x1c5b   :  { %v1909_v38 = vmul.f32 %v4184_v59, %v1907_v57  ;;  %vm1914_vm8 = vweird.f32 %v4184_v59 }
0x1c5c   :  { %vm1915_vm11 = vmor %vm1913_vm9, %vm1914_vm8 }
0x1c5d   :  { %v1910_v23 = vsub.f32 1.0, %v1909_v38 }
0x1c5f   :  { %v1911_v61 = vmul.f32 %v4184_v59, %v1910_v23  ;;  %v1999_v23 = vld [vmem:[#allocation2] sm:$0x30] }
0x1c61   :  { %v1912_v62 = vadd.f32 %v4184_v59, %v1911_v61 }
0x1c63   :  { %v1916_v29 = vsel %vm1915_vm11, %v4184_v59, %v1912_v62 }
0x1c64   :  { %v1921_v40 = vsel %vm1918_vm12, %v1920_v7, %v1916_v29 }
0x1c65   :  { %v1941_v54 = vmul.f32 %v1939_v30, %v1921_v40 }
0x1caa   :  { %v1944_v10 = vpop.permute.xlu2 %1943 }
0x1cab   :  { %v1946_v12 = vmul.f32 %v1944_v10, %v1921_v40 }
0x1cad   :  { %1948 = vrot.lane.b32.xlu1 %v1946_v12, %s4417_s27 }
0x1cb2   :  { %v1797_v14 = vpop.permute.xlu2 %1796 }
0x1cb3   :  { %v4960_v21 = vadd.f32 %v1797_v14, %v1789_v63 }
0x1cb5   :  { %4185 = vtanh.f32 %v4960_v21 }
0x1cbb   :  { %v4186_v22 = vpop.eup %4185 }
0x1cbc   :  { %1816 = vrot.lane.b32.xlu1 %v4186_v22, %s4416_s4 }
0x1d1f   :  { %v1949_v45 = vpop.permute.xlu1 %1948 }
0x1d20   :  { %v4965_v25 = vadd.f32 %v1949_v45, %v1941_v54 }
0x1d22   :  { %4187 = vtanh.f32 %v4965_v25 }
0x1d28   :  { %v4188_v28 = vpop.eup %4187 }
0x1d29   :  { %1960 = vrot.lane.b32.xlu0 %v4188_v28, %s4416_s4 }
0x1d2e   :  { %v1817_v6 = vpop.permute.xlu1 %1816 }
0x1d2f   :  { %v4969_v31 = vmul.f32 %v1817_v6, %v1763_v41 }
0x1d31   :  { %v1837_v32 = vpack.c.bf16 %v4969_v31, %v4969_v31 }
0x1d33   :  { %v1839_v47 = vrot.slane %v1837_v32, 3 }
0x1d35   :  { %1840 = vrot.lane.b32.xlu0 %v1839_v47, %s4417_s27 }
0x1d9b   :  { %v1961_v36 = vpop.permute.xlu0 %1960 }
0x1d9c   :  { %v4974_v39 = vmul.f32 %v1961_v36, %v1921_v40 }
0x1d9e   :  { %v2000_v18 = vpack.c.bf16 %v4974_v39, %v4974_v39 }
0x1da0   :  { %v2002_v51 = vrot.slane %v2000_v18, 3 }
0x1da2   :  { %2003 = vrot.lane.b32.xlu2 %v2002_v51, %s4417_s27 }
0x1da7   :  { %v1841_v37 = vpop.permute.xlu0 %1840 }
0x1da8   :  { %3860 = vmatmul.msk.bf16.vlgmr.msra.gmra.mxu0 %vm154_vm10, %v1841_v37 }
0x1dfc   :  { %v2004_v44 = vpop.permute.xlu2 %2003 }
0x1dfd   :  { %3865 = vmatmul.msk.bf16.vlgmr.msrb.gmra.mxu3 %vm154_vm10, %v2004_v44 }
0x1e25   :  { %v1854_v46 = vpop.f32.mrf.mxu0 }
0x1e26   :  { %v1858_v27 = vadd.f32 %v1854_v46, %v1836_v16 }
0x1e28   :  { %4189 = vtanh.f32 %v1858_v27  ;;  %v3862_v43 = vmul.f32 -1.442695, %v1858_v27 }
0x1e2a   :  { %4191 = vpow2.f32 %v3862_v43  ;;  %v1925_v43 = vrot.slane %v4960_v21, 6 }
0x1e2d   :  { %v1856_v41 = vpop.f32.mrf.mxu0 }
0x1e2e   :  { %v4190_v2 = vpop.eup %4189 }
0x1e2f   :  { %1929 = vrot.lane.b32.xlu1 %v4190_v2, %s4416_s4 }
0x1e30   :  { %v4192_v53 = vpop.eup %4191 }
0x1e31   :  { %v1887_v57 = vadd.f32 1.0, %v4192_v53 }
0x1e33   :  { %4193 = vrcp.f32 %v1887_v57  ;;  %v1899_v12 = vand.u32 2147483648, %v1887_v57  ;;  %vm1893_vm14 = vweird.f32 %v1887_v57  ;;  %v1897_v15 = vand.u32 2147483647, %v1887_v57 }
0x1e35   :  { %v1900_v14 = vor.u32 1.1754944e-38, %v1899_v12  ;;  %vm1898_vm0 = vcmp.eq.f32.partialorder %v1897_v15, 8.507059e+37 }
0x1e39   :  { %v4194_v3 = vpop.eup %4193 }
0x1e3a   :  { %v1889_v29 = vmul.f32 %v4194_v3, %v1887_v57  ;;  %vm1894_vm13 = vweird.f32 %v4194_v3 }
0x1e3b   :  { %vm1895_vm15 = vmor %vm1893_vm14, %vm1894_vm13 }
0x1e3c   :  { %v1890_v7 = vsub.f32 1.0, %v1889_v29 }
0x1e3e   :  { %v1891_v10 = vmul.f32 %v4194_v3, %v1890_v7 }
0x1e40   :  { %v1892_v40 = vadd.f32 %v4194_v3, %v1891_v10 }
0x1e42   :  { %v1896_v63 = vsel %vm1895_vm15, %v4194_v3, %v1892_v40 }
0x1e43   :  { %v1901_v30 = vsel %vm1898_vm0, %v1900_v14, %v1896_v63 }
0x1e44   :  { %v1927_v53 = vmul.f32 %v1925_v43, %v1901_v30 }
0x1e80   :  { %v2017_v59 = vpop.f32.mrf.mxu3 }
0x1e81   :  { %v2022_v38 = vrot.slane %v2017_v59, 4 }
0x1e83   :  { %v2024_v61 = vadd.f32 %v2022_v38, %v1999_v23  ;;  %v2080_v23 = vrot.slane %v4965_v25, 2 }
0x1e85   :  { %4195 = vtanh.f32 %v2024_v61  ;;  %v3867_v45 = vmul.f32 -1.442695, %v2024_v61 }
0x1e87   :  { %4197 = vpow2.f32 %v3867_v45 }
0x1e88   :  { %v2019_v62 = vpop.f32.mrf.mxu3 }
0x1e8b   :  { %v4196_v5 = vpop.eup %4195 }
0x1e8c   :  { %2084 = vrot.lane.b32.xlu2 %v4196_v5, %s4416_s4 }
0x1e8d   :  { %v4198_v28 = vpop.eup %4197 }
0x1e8e   :  { %v2048_v6 = vadd.f32 1.0, %v4198_v28 }
0x1e90   :  { %4199 = vrcp.f32 %v2048_v6  ;;  %v2060_v37 = vand.u32 2147483648, %v2048_v6  ;;  %vm2054_vm2 = vweird.f32 %v2048_v6  ;;  %v2058_v44 = vand.u32 2147483647, %v2048_v6 }
0x1e92   :  { %v2061_v46 = vor.u32 1.1754944e-38, %v2060_v37  ;;  %vm2059_vm4 = vcmp.eq.f32.partialorder %v2058_v44, 8.507059e+37 }
0x1e96   :  { %v4200_v32 = vpop.eup %4199 }
0x1e97   :  { %v2050_v47 = vmul.f32 %v4200_v32, %v2048_v6  ;;  %vm2055_vm1 = vweird.f32 %v4200_v32 }
0x1e98   :  { %vm2056_vm3 = vmor %vm2054_vm2, %vm2055_vm1 }
0x1e99   :  { %v2051_v36 = vsub.f32 1.0, %v2050_v47  ;;  %v2141_v47 = vld [vmem:[#allocation2] sm:$0xc] }
0x1e9b   :  { %v2052_v18 = vmul.f32 %v4200_v32, %v2051_v36 }
0x1e9d   :  { %v2053_v51 = vadd.f32 %v4200_v32, %v2052_v18 }
0x1e9f   :  { %v2057_v16 = vsel %vm2056_vm3, %v4200_v32, %v2053_v51 }
0x1ea0   :  { %v2062_v41 = vsel %vm2059_vm4, %v2061_v46, %v2057_v16 }
0x1ea1   :  { %v1930_v22 = vpop.permute.xlu1 %1929  ;;  %v2082_v61 = vmul.f32 %v2080_v23, %v2062_v41 }
0x1ea2   :  { %v1932_v54 = vmul.f32 %v1930_v22, %v1901_v30 }
0x1ea4   :  { %1934 = vrot.lane.b32.xlu0 %v1932_v54, %s4417_s27 }
0x1ee6   :  { %v2085_v27 = vpop.permute.xlu2 %2084 }
0x1ee7   :  { %v2087_v2 = vmul.f32 %v2085_v27, %v2062_v41 }
0x1ee9   :  { %2089 = vrot.lane.b32.xlu1 %v2087_v2, %s4417_s27 }
0x1f16   :  { %v1935_v57 = vpop.permute.xlu0 %1934 }
0x1f17   :  { %v4986_v59 = vadd.f32 %v1935_v57, %v1927_v53 }
0x1f19   :  { %4201 = vtanh.f32 %v4986_v59 }
0x1f1f   :  { %v4202_v38 = vpop.eup %4201 }
0x1f20   :  { %1954 = vrot.lane.b32.xlu2 %v4202_v38, %s4416_s4 }
0x1f5b   :  { %v2090_v62 = vpop.permute.xlu1 %2089 }
0x1f5c   :  { %v4991_v3 = vadd.f32 %v2090_v62, %v2082_v61 }
0x1f5e   :  { %4203 = vtanh.f32 %v4991_v3 }
0x1f64   :  { %v4204_v5 = vpop.eup %4203 }
0x1f65   :  { %2101 = vrot.lane.b32.xlu0 %v4204_v5, %s4416_s4 }
0x1f7a   :  { %v1955_v21 = vpop.permute.xlu2 %1954 }
0x1f7b   :  { %v4995_v29 = vmul.f32 %v1955_v21, %v1901_v30  ;;  %v1974_v30 = vld [vmem:[#allocation2 + $0x28] sm:$0xc] }
0x1f7d   :  { %v1975_v7 = vpack.c.bf16 %v4995_v29, %v4995_v29 }
0x1f7f   :  { %1977 = vrot.lane.b32.xlu1 %v1975_v7, %s4417_s27 }
0x1fd7   :  { %v2102_v10 = vpop.permute.xlu0 %2101 }
0x1fd8   :  { %v5000_v40 = vmul.f32 %v2102_v10, %v2062_v41 }
0x1fda   :  { %v2142_v25 = vpack.c.bf16 %v5000_v40, %v5000_v40 }
0x1fdc   :  { %v2144_v12 = vrot.slane %v2142_v25, 2 }
0x1fde   :  { %2145 = vrot.lane.b32.xlu2 %v2144_v12, %s4417_s27 }
0x1ff1   :  { %v1978_v15 = vpop.permute.xlu1 %1977 }
0x1ff2   :  { %3864 = vmatmul.msk.bf16.vlgmr.msrb.gmra.mxu2 %vm154_vm10, %v1978_v15 }
0x2038   :  { %v2146_v63 = vpop.permute.xlu2 %2145 }
0x2039   :  { %3869 = vmatmul.msk.bf16.vlgmr.msrb.gmra.mxu1 %vm154_vm10, %v2146_v63 }
0x2075   :  { %v1991_v14 = vpop.f32.mrf.mxu2 }
0x2076   :  { %v1996_v22 = vrot.slane %v1991_v14, 6 }
0x2078   :  { %v1998_v54 = vadd.f32 %v1996_v22, %v1974_v30 }
0x207a   :  { %4205 = vtanh.f32 %v1998_v54  ;;  %v3866_v37 = vmul.f32 -1.442695, %v1998_v54 }
0x207d   :  { %v1993_v45 = vpop.f32.mrf.mxu2 }
0x2080   :  { %v4206_v28 = vpop.eup %4205 }
0x2081   :  { %2070 = vrot.lane.b32.xlu0 %v4206_v28, %s4416_s4 }
0x20b6   :  { %v2159_v6 = vpop.f32.mrf.mxu1 }
0x20b7   :  { %v2164_v32 = vrot.slane %v2159_v6, 6 }
0x20b9   :  { %v2166_v36 = vadd.f32 %v2164_v32, %v2141_v47  ;;  %v2066_v47 = vrot.slane %v4986_v59, 6 }
0x20bb   :  { %4207 = vtanh.f32 %v2166_v36  ;;  %v3871_v21 = vmul.f32 -1.442695, %v2166_v36 }
0x20bc   :  { %4209 = vpow2.f32 %v3866_v37 }
0x20be   :  { %v2161_v18 = vpop.f32.mrf.mxu1 }
0x20c1   :  { %v4208_v51 = vpop.eup %4207 }
0x20c2   :  { %2226 = vrot.lane.b32.xlu1 %v4208_v51, %s4416_s4  ;;  %v4210_v44 = vpop.eup %4209 }
0x20c3   :  { %v2028_v16 = vadd.f32 1.0, %v4210_v44  ;;  %v2222_v44 = vrot.slane %v4991_v3, 2 }
0x20c5   :  { %4211 = vrcp.f32 %v2028_v16  ;;  %v2040_v53 = vand.u32 2147483648, %v2028_v16  ;;  %vm2034_vm6 = vweird.f32 %v2028_v16  ;;  %v2038_v57 = vand.u32 2147483647, %v2028_v16 }
0x20c6   :  { %4213 = vpow2.f32 %v3871_v21 }
0x20c7   :  { %v2041_v23 = vor.u32 1.1754944e-38, %v2040_v53  ;;  %vm2039_vm8 = vcmp.eq.f32.partialorder %v2038_v57, 8.507059e+37 }
0x20cb   :  { %v4212_v46 = vpop.eup %4211 }
0x20cc   :  { %v2030_v27 = vmul.f32 %v4212_v46, %v2028_v16  ;;  %vm2035_vm5 = vweird.f32 %v4212_v46  ;;  %v4214_v7 = vpop.eup %4213 }
0x20cd   :  { %vm2036_vm7 = vmor %vm2034_vm6, %vm2035_vm5  ;;  %v2190_v10 = vadd.f32 1.0, %v4214_v7  ;;  %v2115_v7 = vld [vmem:[#allocation2 + $0x28] sm:$0x30]  ;;  %vm280_vm6 = vcmask 254976  }
0x20ce   :  { %v2031_v41 = vsub.f32 1.0, %v2030_v27 }
0x20cf   :  { %4215 = vrcp.f32 %v2190_v10  ;;  %v2202_v22 = vand.u32 2147483648, %v2190_v10  ;;  %vm2196_vm11 = vweird.f32 %v2190_v10  ;;  %v2200_v30 = vand.u32 2147483647, %v2190_v10 }
0x20d0   :  { %v2032_v2 = vmul.f32 %v4212_v46, %v2031_v41 }
0x20d1   :  { %v2203_v45 = vor.u32 1.1754944e-38, %v2202_v22  ;;  %vm2201_vm13 = vcmp.eq.f32.partialorder %v2200_v30, 8.507059e+37  ;;  %v2283_v22 = vld [vmem:[#allocation2] sm:$0x3] }
0x20d2   :  { %v2033_v43 = vadd.f32 %v4212_v46, %v2032_v2 }
0x20d4   :  { %v2037_v38 = vsel %vm2036_vm7, %v4212_v46, %v2033_v43  ;;  %vm708_vm7 = vcmask 261126  }
0x20d5   :  { %v2042_v62 = vsel %vm2039_vm8, %v2041_v23, %v2037_v38  ;;  %v4216_v25 = vpop.eup %4215  ;;  %vm567_vm8 = vcmask 259076  }
0x20d6   :  { %v2192_v12 = vmul.f32 %v4216_v25, %v2190_v10  ;;  %vm2197_vm9 = vweird.f32 %v4216_v25  ;;  %v2068_v36 = vmul.f32 %v2066_v47, %v2042_v62 }
0x20d7   :  { %vm2198_vm12 = vmor %vm2196_vm11, %vm2197_vm9  ;;  %vm429_vm9 = vcmask 521476   ;;  %vm286_vm11 = vcmask 523526  }
0x20d8   :  { %v2193_v15 = vsub.f32 1.0, %v2192_v12 }
0x20da   :  { %v2194_v63 = vmul.f32 %v4216_v25, %v2193_v15 }
0x20dc   :  { %v2195_v14 = vadd.f32 %v4216_v25, %v2194_v63 }
0x20de   :  { %v2199_v54 = vsel %vm2198_vm12, %v4216_v25, %v2195_v14  ;;  %vm423_vm12 = vcmask 257026  }
0x20df   :  { %v2204_v6 = vsel %vm2201_vm13, %v2203_v45, %v2199_v54  ;;  %vm573_vm13 = vcmask 519426  }
0x20e0   :  { %v2224_v16 = vmul.f32 %v2222_v44, %v2204_v6 }
0x20f3   :  { %v2071_v61 = vpop.permute.xlu0 %2070 }
0x20f4   :  { %v2073_v5 = vmul.f32 %v2071_v61, %v2042_v62 }
0x20f6   :  { %2075 = vrot.lane.b32.xlu2 %v2073_v5, %s4417_s27 }
0x2134   :  { %v2227_v28 = vpop.permute.xlu1 %2226 }
0x2135   :  { %v2229_v32 = vmul.f32 %v2227_v28, %v2204_v6 }
0x2137   :  { %2231 = vrot.lane.b32.xlu0 %v2229_v32, %s4417_s27 }
0x2150   :  { %v2076_v18 = vpop.permute.xlu2 %2075 }
0x2151   :  { %v5012_v51 = vadd.f32 %v2076_v18, %v2068_v36 }
0x2153   :  { %4217 = vtanh.f32 %v5012_v51 }
0x2159   :  { %v4218_v37 = vpop.eup %4217 }
0x215a   :  { %2095 = vrot.lane.b32.xlu1 %v4218_v37, %s4416_s4 }
0x21a9   :  { %v2232_v46 = vpop.permute.xlu0 %2231 }
0x21aa   :  { %v5017_v27 = vadd.f32 %v2232_v46, %v2224_v16 }
0x21ac   :  { %4219 = vtanh.f32 %v5017_v27 }
0x21b2   :  { %v4220_v41 = vpop.eup %4219 }
0x21b3   :  { %2243 = vrot.lane.b32.xlu2 %v4220_v41, %s4416_s4 }
0x21cc   :  { %v2096_v59 = vpop.permute.xlu1 %2095 }
0x21cd   :  { %v5021_v2 = vmul.f32 %v2096_v59, %v2042_v62 }
0x21cf   :  { %v2116_v43 = vpack.c.bf16 %v5021_v2, %v5021_v2 }
0x21d1   :  { %v2118_v53 = vrot.slane %v2116_v43, 1 }
0x21d3   :  { %2119 = vrot.lane.b32.xlu0 %v2118_v53, %s4417_s27 }
0x220d   :  { %v2244_v57 = vpop.permute.xlu2 %2243 }
0x220e   :  { %v5026_v3 = vmul.f32 %v2244_v57, %v2204_v6 }
0x2210   :  { %v2284_v38 = vpack.c.bf16 %v5026_v3, %v5026_v3 }
0x2212   :  { %v2286_v23 = vrot.slane %v2284_v38, 1 }
0x2214   :  { %2287 = vrot.lane.b32.xlu1 %v2286_v23, %s4417_s27 }
0x2245   :  { %v2120_v61 = vpop.permute.xlu0 %2119 }
0x2246   :  { %3868 = vmatmul.msk.bf16.vlgmr.msrb.gmra.mxu0 %vm154_vm10, %v2120_v61 }
0x2286   :  { %v2288_v62 = vpop.permute.xlu1 %2287 }
0x2287   :  { %3873 = vmatmul.msk.bf16.vlgmr.msra.gmra.mxu3 %vm154_vm10, %v2288_v62 }
0x22c3   :  { %v2133_v5 = vpop.f32.mrf.mxu0 }
0x22c4   :  { %v2138_v21 = vrot.slane %v2133_v5, 4 }
0x22c6   :  { %v2140_v10 = vadd.f32 %v2138_v21, %v2115_v7 }
0x22c8   :  { %4221 = vtanh.f32 %v2140_v10  ;;  %v3870_v15 = vmul.f32 -1.442695, %v2140_v10 }
0x22ca   :  { %4223 = vpow2.f32 %v3870_v15 }
0x22cb   :  { %v2135_v25 = vpop.f32.mrf.mxu0 }
0x22ce   :  { %v4222_v12 = vpop.eup %4221 }
0x22cf   :  { %2212 = vrot.lane.b32.xlu2 %v4222_v12, %s4416_s4 }
0x22d0   :  { %v4224_v63 = vpop.eup %4223 }
0x22d1   :  { %v2170_v14 = vadd.f32 1.0, %v4224_v63 }
0x22d3   :  { %4225 = vrcp.f32 %v2170_v14  ;;  %v2182_v37 = vand.u32 2147483648, %v2170_v14  ;;  %vm2176_vm15 = vweird.f32 %v2170_v14  ;;  %v2180_v44 = vand.u32 2147483647, %v2170_v14 }
0x22d5   :  { %v2183_v46 = vor.u32 1.1754944e-38, %v2182_v37  ;;  %vm2181_vm1 = vcmp.eq.f32.partialorder %v2180_v44, 8.507059e+37  ;;  %v3974_v44 = vld [vmem:[%s5448_s5 + $0x34] sm:$0xf0] }
0x22d9   :  { %v4226_v45 = vpop.eup %4225 }
0x22da   :  { %v2172_v32 = vmul.f32 %v4226_v45, %v2170_v14  ;;  %vm2177_vm14 = vweird.f32 %v4226_v45 }
0x22db   :  { %vm2178_vm0 = vmor %vm2176_vm15, %vm2177_vm14  ;;  %vm714_vm14 = vcmask 517376   ;;  %vm2456_vm15 = vcmask 523264  }
0x22dc   :  { %v2173_v47 = vsub.f32 1.0, %v2172_v32 }
0x22de   :  { %v2174_v36 = vmul.f32 %v4226_v45, %v2173_v47 }
0x22e0   :  { %v2175_v18 = vadd.f32 %v4226_v45, %v2174_v36 }
0x22e2   :  { %v2179_v16 = vsel %vm2178_vm0, %v4226_v45, %v2175_v18 }
0x22e3   :  { %v2184_v59 = vsel %vm2181_vm1, %v2183_v46, %v2179_v16  ;;  %v3973_v46 = vld [vmem:[%s5448_s5 + $0x34] sm:$0xf] }
0x230a   :  { %v2301_v30 = vpop.f32.mrf.mxu3 }
0x230b   :  { %v2305_v54 = vadd.f32 %v2301_v30, %v2283_v22  ;;  %v2208_v22 = vrot.slane %v5012_v51, 6  ;;  %v2361_v51 = vrot.slane %v5017_v27, 2 }
0x230d   :  { %4227 = vtanh.f32 %v2305_v54  ;;  %v3875_v53 = vmul.f32 -1.442695, %v2305_v54  ;;  %v2210_v30 = vmul.f32 %v2208_v22, %v2184_v59  ;;  %v3888_v22 = vld [vmem:[%s5448_s5 + $0x18] sm:$0xf0] }
0x230f   :  { %4229 = vpow2.f32 %v3875_v53  ;;  %v3972_v53 = vld [vmem:[%s5448_s5 + $0x24] sm:$0xf0] }
0x2312   :  { %v2303_v28 = vpop.f32.mrf.mxu3 }
0x2313   :  { %v4228_v6 = vpop.eup %4227 }
0x2314   :  { %2365 = vrot.lane.b32.xlu0 %v4228_v6, %s4416_s4 }
0x2315   :  { %v4230_v57 = vpop.eup %4229 }
0x2316   :  { %v2329_v38 = vadd.f32 1.0, %v4230_v57  ;;  %v5111_v57 = vld [vmem:[%s5449_s6 + $0x8] sm:$0xff] }
0x2317   :  { %2536 = vmatpush.bf16.msrb.mxu2 %v5111_v57 }
0x2318   :  { %4231 = vrcp.f32 %v2329_v38  ;;  %v2341_v7 = vand.u32 2147483648, %v2329_v38  ;;  %vm2335_vm3 = vweird.f32 %v2329_v38  ;;  %v2339_v10 = vand.u32 2147483647, %v2329_v38 }
0x231a   :  { %v2342_v12 = vor.u32 1.1754944e-38, %v2341_v7  ;;  %vm2340_vm5 = vcmp.eq.f32.partialorder %v2339_v10, 8.507059e+37 }
0x231e   :  { %v4232_v23 = vpop.eup %4231 }
0x231f   :  { %v2331_v61 = vmul.f32 %v4232_v23, %v2329_v38  ;;  %vm2336_vm2 = vweird.f32 %v4232_v23  ;;  %v3971_v38 = vld [vmem:[%s5448_s5 + $0x24] sm:$0xf] }
0x2320   :  { %vm2337_vm4 = vmor %vm2335_vm3, %vm2336_vm2 }
0x2321   :  { %v2332_v62 = vsub.f32 1.0, %v2331_v61 }
0x2323   :  { %v2333_v5 = vmul.f32 %v4232_v23, %v2332_v62  ;;  %v3896_v62 = vld [vmem:[%s5448_s5 + $0x28] sm:$0xf0] }
0x2325   :  { %v2334_v21 = vadd.f32 %v4232_v23, %v2333_v5  ;;  %v3899_v5 = vor.u32 %v3971_v38, %v3896_v62 }
0x2327   :  { %v2338_v25 = vsel %vm2337_vm4, %v4232_v23, %v2334_v21 }
0x2328   :  { %v2343_v63 = vsel %vm2340_vm5, %v2342_v12, %v2338_v25  ;;  %v3886_v12 = vld [vmem:[%s5448_s5 + $0x10] sm:$0xf] }
0x2329   :  { %v2213_v41 = vpop.permute.xlu2 %2212  ;;  %v2363_v6 = vmul.f32 %v2361_v51, %v2343_v63  ;;  %v3968_v51 = vld [vmem:[%s5448_s5 + $0x4] sm:$0xf0] }
0x232a   :  { %v2215_v43 = vmul.f32 %v2213_v41, %v2184_v59  ;;  %v3904_v41 = vld [vmem:[%s5448_s5 + $0x38] sm:$0xf0] }
0x232c   :  { %2217 = vrot.lane.b32.xlu1 %v2215_v43, %s4417_s27  ;;  %v3907_v43 = vor.u32 %v3973_v46, %v3904_v41 }
0x232e   :  { %2486 = vmatpush.bf16.msra.mxu1 %v3907_v43 }
0x2332   :  { %2487 = vmatpush.bf16.msra.mxu1 %v3899_v5 }
0x2386   :  { %v2366_v15 = vpop.permute.xlu0 %2365 }
0x2387   :  { %v2368_v14 = vmul.f32 %v2366_v15, %v2343_v63  ;;  %v3970_v15 = vld [vmem:[%s5448_s5 + $0x14] sm:$0xf0] }
0x2389   :  { %2370 = vrot.lane.b32.xlu2 %v2368_v14, %s4417_s27  ;;  %v3887_v14 = vor.u32 %v3970_v15, %v3886_v12 }
0x239e   :  { %v2218_v54 = vpop.permute.xlu1 %2217 }
0x239f   :  { %v5038_v45 = vadd.f32 %v2218_v54, %v2210_v30  ;;  %v5141_v30 = vld [vmem:[%s5449_s6] sm:$0xff] }
0x23a0   :  { %v3878_v54 = vld [vmem:[%s5448_s5] sm:$0xf]  ;;  %2537 = vmatpush.bf16.msrb.mxu2 %v5141_v30 }
0x23a1   :  { %4233 = vtanh.f32 %v5038_v45 }
0x23a7   :  { %v4234_v28 = vpop.eup %4233 }
0x23a8   :  { %2237 = vrot.lane.b32.xlu0 %v4234_v28, %s4416_s4 }
0x23b0   :  { %277 = vrot.lane.b32.xlu0 %v4614_v48, %s4417_s27 }
0x23b8   :  { %705 = vrot.lane.b32.xlu0 %v4711_v20, %s4417_s27 }
0x23c0   :  { %1128 = vrot.lane.b32.xlu0 %v4816_v49, %s4417_s27 }
0x23c8   :  { %1551 = vrot.lane.b32.xlu0 %v4889_v42, %s4416_s4 }
0x23d0   :  { %1970 = vrot.lane.b32.xlu0 %v4974_v39, %s4416_s4 }
0x23e3   :  { %v2371_v32 = vpop.permute.xlu2 %2370 }
0x23e4   :  { %v2373_v47 = vadd.f32 %v2371_v32, %v2363_v6  ;;  %v3967_v6 = vld [vmem:[%s5448_s5 + $0x4] sm:$0xf]  ;;  %v3880_v32 = vld [vmem:[%s5448_s5 + $0x8] sm:$0xf0] }
0x23e6   :  { %4235 = vtanh.f32 %v2373_v47  ;;  %v3879_v47 = vor.u32 %v3968_v51, %v3878_v54 }
0x23ec   :  { %v4236_v36 = vpop.eup %4235 }
0x23ed   :  { %2382 = vrot.lane.b32.xlu1 %v4236_v36, %s4416_s4  ;;  %v3883_v36 = vor.u32 %v3967_v6, %v3880_v32 }
0x23f5   :  { %420 = vrot.lane.b32.xlu1 %v4644_v56, %s4417_s27 }
0x23fd   :  { %845 = vrot.lane.b32.xlu1 %v4736_v24, %s4417_s27 }
0x2405   :  { %1267 = vrot.lane.b32.xlu1 %v4851_v26, %s4417_s27 }
0x240d   :  { %1693 = vrot.lane.b32.xlu1 %v4919_v35, %s4416_s4 }
0x2415   :  { %2111 = vrot.lane.b32.xlu1 %v5000_v40, %s4416_s4 }
0x241a   :  { %v2238_v48 = vpop.permute.xlu0 %2237 }
0x241b   :  { %v5064_v20 = vmul.f32 %v2238_v48, %v2184_v59  ;;  %v3894_v59 = vld [vmem:[%s5448_s5 + $0x20] sm:$0xf] }
0x241c   :  { %v3895_v61 = vor.u32 %v3972_v53, %v3894_v59 }
0x241d   :  { %v2258_v49 = vpack.c.bf16 %v5064_v20, %v5064_v20 }
0x241f   :  { %v2260_v42 = vrot.slane %v2258_v49, 2 }
0x2421   :  { %2261 = vrot.lane.b32.xlu2 %v2260_v42, %s4417_s27 }
0x2422   :  { %v278_v56 = vpop.permute.xlu0 %277 }
0x2423   :  { %281 = vst.msk [vmem:[#allocation3] sm:$0x3] %vm280_vm6, %v278_v56 }
0x2429   :  { %564 = vrot.lane.b32.xlu2 %v4676_v55, %s4417_s27 }
0x242a   :  { %v706_v24 = vpop.permute.xlu0 %705 }
0x242b   :  { %709 = vst.msk [vmem:[#allocation3] sm:$0xc0] %vm708_vm7, %v706_v24 }
0x2431   :  { %986 = vrot.lane.b32.xlu2 %v4781_v1, %s4417_s27 }
0x2432   :  { %v1129_v26 = vpop.permute.xlu0 %1128 }
0x2433   :  { %1131 = vst.msk [vmem:[#allocation3 + $0x8] sm:$0x30] %vm567_vm8, %v1129_v26 }
0x2439   :  { %1410 = vrot.lane.b32.xlu2 %v4856_v4, %s4416_s4 }
0x243a   :  { %v1552_v35 = vpop.permute.xlu0 %1551 }
0x243b   :  { %1554 = vst.msk [vmem:[#allocation3 + $0x8] sm:$0x30] %vm429_vm9, %v1552_v35 }
0x2441   :  { %1832 = vrot.lane.b32.xlu2 %v4946_v0, %s4416_s4 }
0x2442   :  { %v1971_v55 = vpop.permute.xlu0 %1970 }
0x2443   :  { %1973 = vst.msk [vmem:[#allocation3] sm:$0xc0] %vm286_vm11, %v1971_v55 }
0x2449   :  { %2253 = vrot.lane.b32.xlu2 %v5026_v3, %s4416_s4  ;;  %v3902_v3 = vld [vmem:[%s5448_s5 + $0x30] sm:$0xf] }
0x244a   :  { %v3903_v16 = vor.u32 %v3974_v44, %v3902_v3 }
0x244c   :  { %2467 = vmatpush.bf16.msra.mxu0 %v3903_v16 }
0x2450   :  { %2468 = vmatpush.bf16.msra.mxu0 %v3895_v61 }
0x2454   :  { %2469 = vmatpush.bf16.msra.mxu0 %v3887_v14 }
0x2458   :  { %2470 = vmatpush.bf16.msra.mxu0 %v3879_v47 }
0x245c   :  { %2794 = vmatpush.bf16.msrb.mxu0 %v5111_v57 }
0x245f   :  { %v2383_v1 = vpop.permute.xlu1 %2382 }
0x2460   :  { %v2385_v39 = vmul.f32 %v2383_v1, %v2343_v63  ;;  %v3969_v63 = vld [vmem:[%s5448_s5 + $0x14] sm:$0xf]  ;;  %2795 = vmatpush.bf16.msrb.mxu0 %v5141_v30  ;;  %v2410_v1 = vld [vmem:[%s5451_s8] sm:$0x3]  ;;  %s3783_s5 = sshll.u32 %s4419_s26, 4  ;;  %s3784_s5 = int_to_ptr.vmem [resolvable:$true] %s3783_s5 }
0x2461   :  { %v3891_v28 = vor.u32 %v3969_v63, %v3888_v22 }
0x2462   :  { %2392 = vrot.lane.b32.xlu0 %v2385_v39, %s4416_s4  ;;  %v5177_v39 = vperm.slane %v2410_v1, 0 }
0x2463   :  { %2488 = vmatpush.bf16.msra.mxu1 %v3891_v28 }
0x2467   :  { %v421_v40 = vpop.permute.xlu1 %420  ;;  %2489 = vmatpush.bf16.msra.mxu1 %v3883_v36 }
0x2468   :  { %424 = vst.msk [vmem:[#allocation3] sm:$0xc] %vm423_vm12, %v421_v40  ;;  %v5179_v40 = vperm.slane %v2410_v1, 1 }
0x246b   :  { %2860 = vmatpush.bf16.msrb.mxu1 %v5111_v57 }
0x246f   :  { %v846_v4 = vpop.permute.xlu1 %845  ;;  %2861 = vmatpush.bf16.msrb.mxu1 %v5141_v30 }
0x2470   :  { %848 = vst.msk [vmem:[#allocation3 + $0x8] sm:$0x3] %vm280_vm6, %v846_v4 }
0x2477   :  { %v1268_v27 = vpop.permute.xlu1 %1267 }
0x2478   :  { %1270 = vst.msk [vmem:[#allocation3 + $0x8] sm:$0xc0] %vm708_vm7, %v1268_v27 }
0x247b   :  { %v2262_v0 = vpop.permute.xlu2 %2261 }
0x247c   :  { %3872 = vmatmul.msk.bf16.vlgmr.msra.gmra.mxu2 %vm154_vm10, %v2262_v0 }
0x247d   :  { %2662 = vmatpush.bf16.msra.mxu2 %v5111_v57 }
0x247f   :  { %v1694_v18 = vpop.permute.xlu1 %1693 }
0x2481   :  { %2663 = vmatpush.bf16.msra.mxu2 %v5141_v30 }
0x2483   :  { %v565_v37 = vpop.permute.xlu2 %564 }
0x2484   :  { %568 = vst.msk [vmem:[#allocation3] sm:$0x30] %vm567_vm8, %v565_v37 }
0x2487   :  { %v2112_v23 = vpop.permute.xlu1 %2111 }
0x2488   :  { %2114 = vst.msk [vmem:[#allocation3] sm:$0x30] %vm429_vm9, %v2112_v23 }
0x248b   :  { %v987_v21 = vpop.permute.xlu2 %986 }
0x248c   :  { %989 = vst.msk [vmem:[#allocation3 + $0x8] sm:$0xc] %vm423_vm12, %v987_v21  ;;  %2538 = vmatmul.bf16.vlgmr.msrb.gmra.mxu2 %v4415_v8 }
0x248d   :  { %1696 = vst.msk [vmem:[#allocation3 + $0x8] sm:$0xc] %vm573_vm13, %v1694_v18  ;;  %2922 = vmatpush.bf16.msrb.mxu2 %v5111_v57 }
0x2491   :  { %2923 = vmatpush.bf16.msrb.mxu2 %v5141_v30 }
0x2493   :  { %v1411_v7 = vpop.permute.xlu2 %1410 }
0x2494   :  { %1413 = vst.msk [vmem:[#allocation3 + $0x8] sm:$0xc0] %vm286_vm11, %v1411_v7 }
0x249b   :  { %v1833_v10 = vpop.permute.xlu2 %1832 }
0x249c   :  { %1835 = vst.msk [vmem:[#allocation3 + $0x8] sm:$0x3] %vm714_vm14, %v1833_v10 }
0x24a3   :  { %v2254_v25 = vpop.permute.xlu2 %2253  ;;  %v2397_v42 = vld [vmem:[#allocation3 + $0x8] sm:$0xff] }
0x24a4   :  { %2256 = vst.msk [vmem:[#allocation3] sm:$0xc] %vm573_vm13, %v2254_v25 }
0x24d4   :  { %v2393_v48 = vpop.permute.xlu0 %2392 }
0x24d5   :  { %2395 = vst.msk [vmem:[#allocation3] sm:$0x3] %vm714_vm14, %v2393_v48 }
0x24dc   :  { %v2396_v49 = vld [vmem:[#allocation3] sm:$0xff] }
0x24dd   :  { %v2400_v56 = vpack.c.bf16 %v2397_v42, %v2396_v49 }
0x24df   :  { %3908 = vmatmul.msk.bf16.vlgmr.msra.gmra.mxu0 %vm2456_vm15, %v2400_v56  ;;  %3910 = vmatmul.msk.bf16.vlgmr.msra.gmra.mxu1 %vm2456_vm15, %v2400_v56 }
0x24e0   :  { %3054 = vmatpush.bf16.msra.mxu0 %v5111_v57  ;;  %3120 = vmatpush.bf16.msra.mxu1 %v5111_v57 }
0x24e4   :  { %3055 = vmatpush.bf16.msra.mxu0 %v5141_v30  ;;  %3121 = vmatpush.bf16.msra.mxu1 %v5141_v30 }
0x24ff   :  { %v5172_v24 = vpop.f32.mrf.mxu2 }
0x2507   :  { %v2277_v26 = vpop.f32.mrf.mxu2 }
0x250f   :  { %v2539_v35 = vpop.f32.mrf.mxu2 }
0x2517   :  { %v2541_v55 = vpop.f32.mrf.mxu2 }
0x255c   :  { %v2472_v4 = vpop.f32.mrf.mxu0  ;;  %v2491_v27 = vpop.f32.mrf.mxu1 }
0x255d   :  { %v2473_v0 = vadd.f32 %v2472_v4, %v5177_v39  ;;  %v2492_v18 = vadd.f32 %v2491_v27, %v5179_v40 }
0x255f   :  { %2501 = vst [vmem:[#allocation2 + $0x30] sm:$0xff] %v2473_v0 }
0x2560   :  { %2502 = vst [vmem:[#allocation2] sm:$0xff] %v2492_v18 }
0x2564   :  { %v2474_v37 = vpop.f32.mrf.mxu0  ;;  %v2493_v3 = vpop.f32.mrf.mxu1 }
0x2565   :  { %v2475_v44 = vadd.f32 %v2474_v37, %v5177_v39  ;;  %v2494_v16 = vadd.f32 %v2493_v3, %v5179_v40 }
0x2566   :  { %v2517_v46 = vld [vmem:[#allocation2 + $0x30] sm:$0x3]  ;;  %v2648_v42 = vld [vmem:[#allocation2 + $0x30] sm:$0xc] }
0x2567   :  { %v2543_v41 = vadd.f32 %v2539_v35, %v2517_v46  ;;  %2503 = vst [vmem:[#allocation2 + $0x18] sm:$0xff] %v2475_v44  ;;  %v2280_v46 = vrot.slane %v5172_v24, 2 }
0x2568   :  { %2504 = vst [vmem:[#allocation2 + $0x10] sm:$0xff] %v2494_v16 }
0x2569   :  { %4237 = vtanh.f32 %v2543_v41  ;;  %v3928_v43 = vmul.f32 -1.442695, %v2543_v41 }
0x256b   :  { %4239 = vpow2.f32 %v3928_v43  ;;  %v2257_v43 = vld [vmem:[#allocation2 + $0x28] sm:$0xc0] }
0x256f   :  { %v4238_v59 = vpop.eup %4237 }
0x2570   :  { %2616 = vrot.lane.b32.xlu1 %v4238_v59, %s4416_s4 }
0x2571   :  { %v4240_v53 = vpop.eup %4239 }
0x2572   :  { %v2577_v38 = vadd.f32 1.0, %v4240_v53  ;;  %v2282_v53 = vadd.f32 %v2280_v46, %v2257_v43  ;;  %v2713_v46 = vld [vmem:[#allocation2 + $0x30] sm:$0x30] }
0x2574   :  { %4241 = vrcp.f32 %v2577_v38  ;;  %v2589_v7 = vand.u32 2147483648, %v2577_v38  ;;  %vm2583_vm1 = vweird.f32 %v2577_v38  ;;  %v2587_v10 = vand.u32 2147483647, %v2577_v38 }
0x2576   :  { %v2590_v12 = vor.u32 1.1754944e-38, %v2589_v7  ;;  %vm2588_vm3 = vcmp.eq.f32.partialorder %v2587_v10, 8.507059e+37 }
0x257a   :  { %v4242_v23 = vpop.eup %4241 }
0x257b   :  { %v2579_v61 = vmul.f32 %v4242_v23, %v2577_v38  ;;  %vm2584_vm0 = vweird.f32 %v4242_v23 }
0x257c   :  { %vm2585_vm2 = vmor %vm2583_vm1, %vm2584_vm0 }
0x257d   :  { %v2580_v62 = vsub.f32 1.0, %v2579_v61 }
0x257f   :  { %v2581_v5 = vmul.f32 %v4242_v23, %v2580_v62 }
0x2581   :  { %v2582_v21 = vadd.f32 %v4242_v23, %v2581_v5 }
0x2583   :  { %v2586_v25 = vsel %vm2585_vm2, %v4242_v23, %v2582_v21 }
0x2584   :  { %v2591_v63 = vsel %vm2588_vm3, %v2590_v12, %v2586_v25  ;;  %v3874_v25 = vmul.f32 -1.442695, %v2282_v53 }
0x2585   :  { %v2614_v22 = vmul.f32 0.0, %v2591_v63 }
0x25e2   :  { %v2617_v15 = vpop.permute.xlu1 %2616 }
0x25e3   :  { %v2619_v14 = vmul.f32 %v2617_v15, %v2591_v63 }
0x25e5   :  { %2621 = vrot.lane.b32.xlu2 %v2619_v14, %s4417_s27 }
0x263f   :  { %v2622_v54 = vpop.permute.xlu2 %2621 }
0x2640   :  { %v2624_v28 = vadd.f32 %v2622_v54, %v2614_v22  ;;  %v3978_v54 = vld [vmem:[%s5450_s7 + $0x8] sm:$0xff] }
0x2641   :  { %2563 = vmatpush.bf16.msrb.mxu3 %v3978_v54 }
0x2642   :  { %4243 = vtanh.f32 %v2624_v28  ;;  %v2694_v5 = vrot.slane %v2624_v28, 6 }
0x2648   :  { %v4244_v51 = vpop.eup %4243 }
0x2649   :  { %2638 = vrot.lane.b32.xlu0 %v4244_v51, %s4416_s4 }
0x26bb   :  { %v2639_v6 = vpop.permute.xlu0 %2638 }
0x26bc   :  { %v2641_v32 = vmul.f32 %v2639_v6, %v2591_v63 }
0x26be   :  { %v2649_v47 = vpack.c.bf16 %v2641_v32, %v2641_v32  ;;  %v3977_v32 = vld [vmem:[%s5450_s7] sm:$0xff] }
0x26bf   :  { %2564 = vmatpush.bf16.msrb.mxu3 %v3977_v32 }
0x26c0   :  { %2651 = vrot.lane.b32.xlu1 %v2649_v47, %s4417_s27 }
0x26c2   :  { %2565 = vmatmul.bf16.vlgmr.msrb.gmra.mxu3 %v4415_v8 }
0x26c3   :  { %2728 = vmatpush.bf16.msra.mxu3 %v5111_v57 }
0x26c7   :  { %2729 = vmatpush.bf16.msra.mxu3 %v5141_v30 }
0x26cb   :  { %2988 = vmatpush.bf16.msrb.mxu3 %v5111_v57 }
0x26cf   :  { %2989 = vmatpush.bf16.msrb.mxu3 %v5141_v30 }
0x2732   :  { %v2652_v36 = vpop.permute.xlu1 %2651 }
0x2733   :  { %3930 = vmatmul.msk.bf16.vlgmr.msra.gmra.mxu2 %vm154_vm10, %v2652_v36 }
0x2734   :  { %3182 = vmatpush.bf16.msra.mxu2 %v5111_v57 }
0x2738   :  { %3183 = vmatpush.bf16.msra.mxu2 %v5141_v30 }
0x27b6   :  { %v2665_v48 = vpop.f32.mrf.mxu2 }
0x27b7   :  { %v2670_v49 = vrot.slane %v2665_v48, 6 }
0x27b9   :  { %v2672_v56 = vadd.f32 %v2670_v49, %v2648_v42 }
0x27bb   :  { %4245 = vtanh.f32 %v2672_v56  ;;  %v3931_v55 = vmul.f32 -1.442695, %v2672_v56 }
0x27bd   :  { %4247 = vpow2.f32 %v3931_v55 }
0x27be   :  { %v2667_v26 = vpop.f32.mrf.mxu2 }
0x27c1   :  { %v4246_v35 = vpop.eup %4245 }
0x27c2   :  { %2698 = vrot.lane.b32.xlu2 %v4246_v35, %s4416_s4 }
0x27c3   :  { %v4248_v1 = vpop.eup %4247 }
0x27c4   :  { %v2676_v4 = vadd.f32 1.0, %v4248_v1 }
0x27c6   :  { %4249 = vrcp.f32 %v2676_v4  ;;  %v2688_v44 = vand.u32 2147483648, %v2676_v4  ;;  %vm2682_vm5 = vweird.f32 %v2676_v4  ;;  %v2686_v16 = vand.u32 2147483647, %v2676_v4 }
0x27c7   :  { %4251 = vtanh.f32 %v2282_v53 }
0x27c8   :  { %v2689_v59 = vor.u32 1.1754944e-38, %v2688_v44  ;;  %vm2687_vm1 = vcmp.eq.f32.partialorder %v2686_v16, 8.507059e+37 }
0x27cc   :  { %v4250_v27 = vpop.eup %4249 }
0x27cd   :  { %v2678_v0 = vmul.f32 %v4250_v27, %v2676_v4  ;;  %vm2683_vm4 = vweird.f32 %v4250_v27  ;;  %v4252_v62 = vpop.eup %4251  ;;  %v2347_v4 = vrot.slane %v5038_v45, 6 }
0x27ce   :  { %vm2684_vm0 = vmor %vm2682_vm5, %vm2683_vm4 }
0x27cf   :  { %v2679_v18 = vsub.f32 1.0, %v2678_v0 }
0x27d1   :  { %v2680_v37 = vmul.f32 %v4250_v27, %v2679_v18 }
0x27d3   :  { %v2681_v3 = vadd.f32 %v4250_v27, %v2680_v37 }
0x27d5   :  { %v2685_v41 = vsel %vm2684_vm0, %v4250_v27, %v2681_v3 }
0x27d6   :  { %v2690_v23 = vsel %vm2687_vm1, %v2689_v59, %v2685_v41 }
0x27d7   :  { %v2696_v21 = vmul.f32 %v2694_v5, %v2690_v23 }
0x281c   :  { %v2699_v38 = vpop.permute.xlu2 %2698 }
0x281d   :  { %v2701_v61 = vmul.f32 %v2699_v38, %v2690_v23 }
0x281f   :  { %2703 = vrot.lane.b32.xlu0 %v2701_v61, %s4417_s27 }
0x2827   :  { %2351 = vrot.lane.b32.xlu0 %v4252_v62, %s4416_s4 }
0x2891   :  { %v2704_v7 = vpop.permute.xlu0 %2703 }
0x2892   :  { %v5196_v10 = vadd.f32 %v2704_v7, %v2696_v21 }
0x2894   :  { %4253 = vtanh.f32 %v5196_v10 }
0x2895   :  { %4255 = vpow2.f32 %v3874_v25 }
0x2899   :  { %v2352_v35 = vpop.permute.xlu0 %2351 }
0x289a   :  { %v4254_v24 = vpop.eup %4253 }
0x289b   :  { %2709 = vrot.lane.b32.xlu1 %v4254_v24, %s4416_s4  ;;  %v4256_v12 = vpop.eup %4255 }
0x289c   :  { %v2309_v15 = vadd.f32 1.0, %v4256_v12 }
0x289e   :  { %4257 = vrcp.f32 %v2309_v15  ;;  %v2321_v49 = vand.u32 2147483648, %v2309_v15  ;;  %vm2315_vm3 = vweird.f32 %v2309_v15  ;;  %v2319_v42 = vand.u32 2147483647, %v2309_v15 }
0x28a0   :  { %v2322_v26 = vor.u32 1.1754944e-38, %v2321_v49  ;;  %vm2320_vm5 = vcmp.eq.f32.partialorder %v2319_v42, 8.507059e+37 }
0x28a4   :  { %v4258_v63 = vpop.eup %4257 }
0x28a5   :  { %v2311_v14 = vmul.f32 %v4258_v63, %v2309_v15  ;;  %vm2316_vm2 = vweird.f32 %v4258_v63 }
0x28a6   :  { %vm2317_vm4 = vmor %vm2315_vm3, %vm2316_vm2 }
0x28a7   :  { %v2312_v22 = vsub.f32 1.0, %v2311_v14 }
0x28a9   :  { %v2313_v51 = vmul.f32 %v4258_v63, %v2312_v22 }
0x28ab   :  { %v2314_v36 = vadd.f32 %v4258_v63, %v2313_v51 }
0x28ad   :  { %v2318_v56 = vsel %vm2317_vm4, %v4258_v63, %v2314_v36 }
0x28ae   :  { %v5211_v55 = vsel %vm2320_vm5, %v2322_v26, %v2318_v56 }
0x28af   :  { %v2354_v1 = vmul.f32 %v2352_v35, %v5211_v55  ;;  %v2349_v27 = vmul.f32 %v2347_v4, %v5211_v55 }
0x290d   :  { %v2710_v28 = vpop.permute.xlu1 %2709 }
0x290e   :  { %v2712_v6 = vmul.f32 %v2710_v28, %v2690_v23 }
0x2910   :  { %v2714_v47 = vpack.c.bf16 %v2712_v6, %v2712_v6 }
0x2912   :  { %v2716_v48 = vrot.slane %v2714_v47, 1 }
0x2914   :  { %2717 = vrot.lane.b32.xlu2 %v2716_v48, %s4417_s27 }
0x291c   :  { %2356 = vrot.lane.b32.xlu2 %v2354_v1, %s4417_s27 }
0x2924   :  { %570 = vrot.lane.b32.xlu2 %v4659_v9, %s4416_s4 }
0x292c   :  { %991 = vrot.lane.b32.xlu2 %v4746_v34, %s4416_s4  ;;  %v5227_v34 = vpop.f32.mrf.mxu3 }
0x2934   :  { %v2568_v3 = vpop.f32.mrf.mxu3 }
0x296e   :  { %v2718_v8 = vpop.permute.xlu2 %2717 }
0x296f   :  { %3932 = vmatmul.msk.bf16.vlgmr.msra.gmra.mxu3 %vm154_vm10, %v2718_v8 }
0x2970   :  { %3248 = vmatpush.bf16.msra.mxu3 %v5111_v57 }
0x2974   :  { %3249 = vmatpush.bf16.msra.mxu3 %v5141_v30 }
0x2976   :  { %v2357_v0 = vpop.permute.xlu2 %2356 }
0x2977   :  { %v2359_v18 = vadd.f32 %v2357_v0, %v2349_v27 }
0x297e   :  { %v571_v37 = vpop.permute.xlu2 %570 }
0x297f   :  { %574 = vst.msk [vmem:[#allocation3 + $0x18] sm:$0xc] %vm573_vm13, %v571_v37 }
0x2986   :  { %v992_v9 = vpop.permute.xlu2 %991 }
0x2987   :  { %994 = vst.msk [vmem:[#allocation3 + $0x10] sm:$0x30] %vm429_vm9, %v992_v9 }
0x29f2   :  { %v2731_v44 = vpop.f32.mrf.mxu3 }
0x29f3   :  { %v2736_v16 = vrot.slane %v2731_v44, 4 }
0x29f5   :  { %v2738_v41 = vadd.f32 %v2736_v16, %v2713_v46  ;;  %v2779_v46 = vld [vmem:[#allocation2 + $0x30] sm:$0xc0] }
0x29f7   :  { %4259 = vtanh.f32 %v2738_v41  ;;  %v3933_v53 = vmul.f32 -1.442695, %v2738_v41 }
0x29f8   :  { %4261 = vtanh.f32 %v2359_v18 }
0x29f9   :  { %4263 = vpow2.f32 %v3933_v53 }
0x29fa   :  { %v2733_v45 = vpop.f32.mrf.mxu3 }
0x29fd   :  { %v4260_v59 = vpop.eup %4259 }
0x29fe   :  { %2764 = vrot.lane.b32.xlu1 %v4260_v59, %s4416_s4  ;;  %v4262_v43 = vpop.eup %4261 }
0x29ff   :  { %v4264_v38 = vpop.eup %4263 }
0x2a00   :  { %v2742_v23 = vadd.f32 1.0, %v4264_v38 }
0x2a02   :  { %4265 = vrcp.f32 %v2742_v23  ;;  %vm2748_vm1 = vweird.f32 %v2742_v23 }
0x2a06   :  { %2376 = vrot.lane.b32.xlu1 %v4262_v43, %s4416_s4 }
0x2a08   :  { %v4266_v61 = vpop.eup %4265 }
0x2a09   :  { %v2744_v62 = vmul.f32 %v4266_v61, %v2742_v23  ;;  %vm2749_vm0 = vweird.f32 %v4266_v61 }
0x2a0a   :  { %vm2750_vm2 = vmor %vm2748_vm1, %vm2749_vm0 }
0x2a0e   :  { %426 = vrot.lane.b32.xlu1 %v4627_v60, %s4416_s4  ;;  %v2745_v60 = vsub.f32 1.0, %v2744_v62 }
0x2a10   :  { %v2746_v5 = vmul.f32 %v4266_v61, %v2745_v60 }
0x2a12   :  { %v2747_v21 = vadd.f32 %v4266_v61, %v2746_v5 }
0x2a14   :  { %v2751_v7 = vsel %vm2750_vm2, %v4266_v61, %v2747_v21 }
0x2a16   :  { %850 = vrot.lane.b32.xlu1 %v4716_v13, %s4416_s4  ;;  %v2754_v13 = vand.u32 2147483648, %v2742_v23 }
0x2a1e   :  { %1272 = vrot.lane.b32.xlu1 %v4829_v11, %s4416_s4  ;;  %v2752_v11 = vand.u32 2147483647, %v2742_v23 }
0x2a20   :  { %vm2753_vm3 = vcmp.eq.f32.partialorder %v2752_v11, 8.507059e+37 }
0x2a26   :  { %1688 = vrot.lane.b32.xlu1 %v4936_v52, %s4417_s27  ;;  %v2755_v52 = vor.u32 1.1754944e-38, %v2754_v13 }
0x2a2e   :  { %2106 = vrot.lane.b32.xlu1 %v5021_v2, %s4417_s27  ;;  %v2756_v2 = vsel %vm2753_vm3, %v2755_v52, %v2751_v7 }
0x2a70   :  { %v2765_v24 = vpop.permute.xlu1 %2764 }
0x2a71   :  { %v2767_v25 = vmul.f32 %v2765_v24, %v2756_v2 }
0x2a73   :  { %2769 = vrot.lane.b32.xlu0 %v2767_v25, %s4417_s27 }
0x2a78   :  { %v2377_v12 = vpop.permute.xlu1 %2376 }
0x2a7b   :  { %283 = vrot.lane.b32.xlu0 %v4597_v58, %s4416_s4 }
0x2a80   :  { %v427_v15 = vpop.permute.xlu1 %426 }
0x2a81   :  { %430 = vst.msk [vmem:[#allocation3 + $0x18] sm:$0x30] %vm429_vm9, %v427_v15 }
0x2a83   :  { %711 = vrot.lane.b32.xlu0 %v4689_v17, %s4416_s4  ;;  %v2379_v17 = vmul.f32 %v2377_v12, %v5211_v55 }
0x2a88   :  { %v851_v63 = vpop.permute.xlu1 %850 }
0x2a89   :  { %853 = vst.msk [vmem:[#allocation3 + $0x10] sm:$0xc0] %vm286_vm11, %v851_v63 }
0x2a8b   :  { %1133 = vrot.lane.b32.xlu0 %v4799_v50, %s4416_s4  ;;  %v2760_v50 = vrot.slane %v5196_v10, 6 }
0x2a8d   :  { %v2762_v54 = vmul.f32 %v2760_v50, %v2756_v2  ;;  %v2845_v50 = vld [vmem:[#allocation2 + $0x18] sm:$0x3] }
0x2a90   :  { %v1273_v14 = vpop.permute.xlu1 %1272 }
0x2a91   :  { %1275 = vst.msk [vmem:[#allocation3 + $0x10] sm:$0x3] %vm714_vm14, %v1273_v14 }
0x2a93   :  { %1546 = vrot.lane.b32.xlu0 %v4906_v19, %s4417_s27 }
0x2a98   :  { %v1689_v22 = vpop.permute.xlu1 %1688 }
0x2a99   :  { %1691 = vst.msk [vmem:[#allocation3 + $0x10] sm:$0x30] %vm567_vm8, %v1689_v22 }
0x2a9b   :  { %1965 = vrot.lane.b32.xlu0 %v4995_v29, %s4417_s27 }
0x2aa0   :  { %v2107_v58 = vpop.permute.xlu1 %2106 }
0x2aa1   :  { %2109 = vst.msk [vmem:[#allocation3 + $0x18] sm:$0xc] %vm423_vm12, %v2107_v58 }
0x2aa3   :  { %2387 = vrot.lane.b32.xlu0 %v2379_v17, %s4417_s27 }
0x2ae5   :  { %v2770_v28 = vpop.permute.xlu0 %2769 }
0x2ae6   :  { %v5260_v51 = vadd.f32 %v2770_v28, %v2762_v54 }
0x2ae8   :  { %4267 = vtanh.f32 %v5260_v51  ;;  %v2826_v24 = vrot.slane %v5260_v51, 6 }
0x2aed   :  { %v284_v19 = vpop.permute.xlu0 %283 }
0x2aee   :  { %v4268_v6 = vpop.eup %4267  ;;  %287 = vst.msk [vmem:[#allocation3 + $0x18] sm:$0xc0] %vm286_vm11, %v284_v19 }
0x2aef   :  { %2775 = vrot.lane.b32.xlu2 %v4268_v6, %s4416_s4 }
0x2af5   :  { %v712_v29 = vpop.permute.xlu0 %711 }
0x2af6   :  { %715 = vst.msk [vmem:[#allocation3 + $0x18] sm:$0x3] %vm714_vm14, %v712_v29 }
0x2af7   :  { %1405 = vrot.lane.b32.xlu2 %v4880_v33, %s4417_s27 }
0x2afd   :  { %v1134_v32 = vpop.permute.xlu0 %1133 }
0x2afe   :  { %1136 = vst.msk [vmem:[#allocation3 + $0x10] sm:$0xc] %vm573_vm13, %v1134_v32 }
0x2aff   :  { %1827 = vrot.lane.b32.xlu2 %v4969_v31, %s4417_s27 }
0x2b05   :  { %v1547_v10 = vpop.permute.xlu0 %1546 }
0x2b06   :  { %1549 = vst.msk [vmem:[#allocation3 + $0x10] sm:$0xc] %vm423_vm12, %v1547_v10 }
0x2b07   :  { %2248 = vrot.lane.b32.xlu2 %v5064_v20, %s4417_s27 }
0x2b0d   :  { %v1966_v47 = vpop.permute.xlu0 %1965 }
0x2b0e   :  { %1968 = vst.msk [vmem:[#allocation3 + $0x18] sm:$0x3] %vm280_vm6, %v1966_v47 }
0x2b15   :  { %v2388_v36 = vpop.permute.xlu0 %2387 }
0x2b16   :  { %2390 = vst.msk [vmem:[#allocation3 + $0x18] sm:$0xc0] %vm708_vm7, %v2388_v36 }
0x2b49   :  { %v2776_v48 = vpop.permute.xlu2 %2775 }
0x2b4a   :  { %v2778_v33 = vmul.f32 %v2776_v48, %v2756_v2 }
0x2b4c   :  { %v2780_v49 = vpack.c.bf16 %v2778_v33, %v2778_v33 }
0x2b4e   :  { %v2782_v42 = vrot.slane %v2780_v49, 2 }
0x2b50   :  { %2783 = vrot.lane.b32.xlu1 %v2782_v42, %s4417_s27 }
0x2b51   :  { %v1406_v56 = vpop.permute.xlu2 %1405 }
0x2b52   :  { %1408 = vst.msk [vmem:[#allocation3 + $0x10] sm:$0x3] %vm280_vm6, %v1406_v56 }
0x2b59   :  { %v1828_v31 = vpop.permute.xlu2 %1827 }
0x2b5a   :  { %1830 = vst.msk [vmem:[#allocation3 + $0x10] sm:$0xc0] %vm708_vm7, %v1828_v31 }
0x2b61   :  { %v2249_v26 = vpop.permute.xlu2 %2248  ;;  %v2398_v20 = vld [vmem:[#allocation3 + $0x10] sm:$0xff] }
0x2b62   :  { %2251 = vst.msk [vmem:[#allocation3 + $0x18] sm:$0x30] %vm567_vm8, %v2249_v26 }
0x2b69   :  { %v2399_v35 = vld [vmem:[#allocation3 + $0x18] sm:$0xff] }
0x2b6a   :  { %v2401_v55 = vpack.c.bf16 %v2399_v35, %v2398_v20 }
0x2b6c   :  { %3909 = vmatmul.msk.bf16.gmra.mxu0 %vm2456_vm15, %v2401_v55  ;;  %3911 = vmatmul.msk.bf16.gmra.mxu1 %vm2456_vm15, %v2401_v55 }
0x2bc2   :  { %v2784_v1 = vpop.permute.xlu1 %2783 }
0x2bc3   :  { %3934 = vmatmul.msk.bf16.vlgmr.msrb.gmra.mxu0 %vm154_vm10, %v2784_v1 }
0x2bc4   :  { %3314 = vmatpush.bf16.msrb.mxu0 %v5111_v57 }
0x2bc8   :  { %3315 = vmatpush.bf16.msrb.mxu0 %v5141_v30 }
0x2be9   :  { %v2477_v8 = vpop.f32.mrf.mxu0  ;;  %v2496_v4 = vpop.f32.mrf.mxu1 }
0x2bea   :  { %v2478_v27 = vadd.f32 %v2477_v8, %v5177_v39  ;;  %v2497_v0 = vadd.f32 %v2496_v4, %v5179_v40 }
0x2bec   :  { %2505 = vst [vmem:[#allocation2 + $0x8] sm:$0xff] %v2478_v27 }
0x2bed   :  { %2506 = vst [vmem:[#allocation2 + $0x20] sm:$0xff] %v2497_v0 }
0x2bf1   :  { %v2479_v18 = vpop.f32.mrf.mxu0  ;;  %v2498_v37 = vpop.f32.mrf.mxu1 }
0x2bf2   :  { %v2480_v9 = vadd.f32 %v2479_v18, %v5177_v39  ;;  %v2499_v3 = vadd.f32 %v2498_v37, %v5179_v40 }
0x2bf4   :  { %2507 = vst [vmem:[#allocation2 + $0x28] sm:$0xff] %v2480_v9 }
0x2bf5   :  { %2508 = vst [vmem:[#allocation2 + $0x38] sm:$0xff] %v2499_v3 }
0x2c40   :  { %v2797_v44 = vpop.f32.mrf.mxu0 }
0x2c41   :  { %v2802_v16 = vrot.slane %v2797_v44, 2 }
0x2c43   :  { %v2804_v41 = vadd.f32 %v2802_v16, %v2779_v46  ;;  %v2908_v16 = vld [vmem:[#allocation2 + $0x18] sm:$0xc] }
0x2c45   :  { %4269 = vtanh.f32 %v2804_v41  ;;  %v3935_v43 = vmul.f32 -1.442695, %v2804_v41 }
0x2c47   :  { %4271 = vpow2.f32 %v3935_v43 }
0x2c48   :  { %v2799_v45 = vpop.f32.mrf.mxu0 }
0x2c4b   :  { %v4270_v59 = vpop.eup %4269 }
0x2c4c   :  { %2830 = vrot.lane.b32.xlu2 %v4270_v59, %s4416_s4 }
0x2c4d   :  { %v4272_v53 = vpop.eup %4271 }
0x2c4e   :  { %v2808_v38 = vadd.f32 1.0, %v4272_v53 }
0x2c50   :  { %4273 = vrcp.f32 %v2808_v38  ;;  %v2820_v60 = vand.u32 2147483648, %v2808_v38  ;;  %vm2814_vm7 = vweird.f32 %v2808_v38  ;;  %v2818_v5 = vand.u32 2147483647, %v2808_v38 }
0x2c52   :  { %v2821_v13 = vor.u32 1.1754944e-38, %v2820_v60  ;;  %vm2819_vm9 = vcmp.eq.f32.partialorder %v2818_v5, 8.507059e+37 }
0x2c56   :  { %v4274_v23 = vpop.eup %4273 }
0x2c57   :  { %v2810_v39 = vmul.f32 %v4274_v23, %v2808_v38  ;;  %vm2815_vm6 = vweird.f32 %v4274_v23 }
0x2c58   :  { %vm2816_vm8 = vmor %vm2814_vm7, %vm2815_vm6 }
0x2c59   :  { %v2811_v61 = vsub.f32 1.0, %v2810_v39 }
0x2c5b   :  { %v2812_v40 = vmul.f32 %v4274_v23, %v2811_v61 }
0x2c5d   :  { %v2813_v62 = vadd.f32 %v4274_v23, %v2812_v40 }
0x2c5f   :  { %v2817_v21 = vsel %vm2816_vm8, %v4274_v23, %v2813_v62 }
0x2c60   :  { %v2822_v7 = vsel %vm2819_vm9, %v2821_v13, %v2817_v21 }
0x2c61   :  { %v2828_v2 = vmul.f32 %v2826_v24, %v2822_v7 }
0x2ca6   :  { %v2831_v11 = vpop.permute.xlu2 %2830 }
0x2ca7   :  { %v2833_v52 = vmul.f32 %v2831_v11, %v2822_v7 }
0x2ca9   :  { %2835 = vrot.lane.b32.xlu0 %v2833_v52, %s4417_s27 }
0x2d1b   :  { %v2836_v25 = vpop.permute.xlu0 %2835 }
0x2d1c   :  { %v2838_v12 = vadd.f32 %v2836_v25, %v2828_v2 }
0x2d1e   :  { %4275 = vtanh.f32 %v2838_v12  ;;  %v2889_v55 = vrot.slane %v2838_v12, 6 }
0x2d24   :  { %v4276_v15 = vpop.eup %4275 }
0x2d25   :  { %2841 = vrot.lane.b32.xlu1 %v4276_v15, %s4416_s4 }
0x2d97   :  { %v2842_v63 = vpop.permute.xlu1 %2841 }
0x2d98   :  { %v2844_v14 = vmul.f32 %v2842_v63, %v2822_v7 }
0x2d9a   :  { %v2846_v22 = vpack.c.bf16 %v2844_v14, %v2844_v14 }
0x2d9c   :  { %v2848_v58 = vrot.slane %v2846_v22, 3 }
0x2d9e   :  { %2849 = vrot.lane.b32.xlu2 %v2848_v58, %s4417_s27 }
0x2df8   :  { %v2850_v17 = vpop.permute.xlu2 %2849 }
0x2df9   :  { %3936 = vmatmul.msk.bf16.vlgmr.msrb.gmra.mxu1 %vm154_vm10, %v2850_v17 }
0x2dfa   :  { %3380 = vmatpush.bf16.msrb.mxu1 %v5111_v57 }
0x2dfe   :  { %3381 = vmatpush.bf16.msrb.mxu1 %v5141_v30 }
0x2e76   :  { %v2863_v54 = vpop.f32.mrf.mxu1 }
0x2e77   :  { %v2867_v28 = vadd.f32 %v2863_v54, %v2845_v50  ;;  %v2973_v54 = vld [vmem:[#allocation2 + $0x18] sm:$0x30] }
0x2e79   :  { %4277 = vtanh.f32 %v2867_v28  ;;  %v3937_v6 = vmul.f32 -1.442695, %v2867_v28 }
0x2e7b   :  { %4279 = vpow2.f32 %v3937_v6 }
0x2e7e   :  { %v2865_v51 = vpop.f32.mrf.mxu1 }
0x2e7f   :  { %v4278_v19 = vpop.eup %4277 }
0x2e80   :  { %2893 = vrot.lane.b32.xlu0 %v4278_v19, %s4416_s4 }
0x2e81   :  { %v4280_v29 = vpop.eup %4279 }
0x2e82   :  { %v2871_v32 = vadd.f32 1.0, %v4280_v29 }
0x2e84   :  { %4281 = vrcp.f32 %v2871_v32  ;;  %v2883_v49 = vand.u32 2147483648, %v2871_v32  ;;  %vm2877_vm12 = vweird.f32 %v2871_v32  ;;  %v2881_v42 = vand.u32 2147483647, %v2871_v32 }
0x2e86   :  { %v2884_v31 = vor.u32 1.1754944e-38, %v2883_v49  ;;  %vm2882_vm14 = vcmp.eq.f32.partialorder %v2881_v42, 8.507059e+37 }
0x2e8a   :  { %v4282_v10 = vpop.eup %4281 }
0x2e8b   :  { %v2873_v47 = vmul.f32 %v4282_v10, %v2871_v32  ;;  %vm2878_vm11 = vweird.f32 %v4282_v10 }
0x2e8c   :  { %vm2879_vm13 = vmor %vm2877_vm12, %vm2878_vm11 }
0x2e8d   :  { %v2874_v36 = vsub.f32 1.0, %v2873_v47 }
0x2e8f   :  { %v2875_v48 = vmul.f32 %v4282_v10, %v2874_v36 }
0x2e91   :  { %v2876_v33 = vadd.f32 %v4282_v10, %v2875_v48 }
0x2e93   :  { %v2880_v56 = vsel %vm2879_vm13, %v4282_v10, %v2876_v33 }
0x2e94   :  { %v2885_v20 = vsel %vm2882_vm14, %v2884_v31, %v2880_v56 }
0x2e95   :  { %v2891_v1 = vmul.f32 %v2889_v55, %v2885_v20 }
0x2ef2   :  { %v2894_v26 = vpop.permute.xlu0 %2893 }
0x2ef3   :  { %v2896_v35 = vmul.f32 %v2894_v26, %v2885_v20 }
0x2ef5   :  { %2898 = vrot.lane.b32.xlu1 %v2896_v35, %s4417_s27 }
0x2f67   :  { %v2899_v8 = vpop.permute.xlu1 %2898 }
0x2f68   :  { %v2901_v4 = vadd.f32 %v2899_v8, %v2891_v1 }
0x2f6a   :  { %4283 = vtanh.f32 %v2901_v4  ;;  %v2954_v52 = vrot.slane %v2901_v4, 6 }
0x2f70   :  { %v4284_v27 = vpop.eup %4283 }
0x2f71   :  { %2904 = vrot.lane.b32.xlu2 %v4284_v27, %s4416_s4 }
0x2fcb   :  { %v2905_v0 = vpop.permute.xlu2 %2904 }
0x2fcc   :  { %v2907_v18 = vmul.f32 %v2905_v0, %v2885_v20 }
0x2fce   :  { %v2909_v37 = vpack.c.bf16 %v2907_v18, %v2907_v18 }
0x2fd0   :  { %2911 = vrot.lane.b32.xlu0 %v2909_v37, %s4417_s27 }
0x3042   :  { %v2912_v9 = vpop.permute.xlu0 %2911 }
0x3043   :  { %3938 = vmatmul.msk.bf16.vlgmr.msrb.gmra.mxu2 %vm154_vm10, %v2912_v9 }
0x3044   :  { %3442 = vmatpush.bf16.msrb.mxu2 %v5111_v57 }
0x3048   :  { %3443 = vmatpush.bf16.msrb.mxu2 %v5141_v30 }
0x30c6   :  { %v2925_v3 = vpop.f32.mrf.mxu2 }
0x30c7   :  { %v2930_v44 = vrot.slane %v2925_v3, 6 }
0x30c9   :  { %v2932_v46 = vadd.f32 %v2930_v44, %v2908_v16 }
0x30cb   :  { %4285 = vtanh.f32 %v2932_v46  ;;  %v3939_v59 = vmul.f32 -1.442695, %v2932_v46  ;;  %v3039_v46 = vld [vmem:[#allocation2 + $0x18] sm:$0xc0] }
0x30cd   :  { %4287 = vpow2.f32 %v3939_v59 }
0x30ce   :  { %v2927_v41 = vpop.f32.mrf.mxu2 }
0x30d1   :  { %v4286_v45 = vpop.eup %4285 }
0x30d2   :  { %2958 = vrot.lane.b32.xlu1 %v4286_v45, %s4416_s4 }
0x30d3   :  { %v4288_v43 = vpop.eup %4287 }
0x30d4   :  { %v2936_v53 = vadd.f32 1.0, %v4288_v43 }
0x30d6   :  { %4289 = vrcp.f32 %v2936_v53  ;;  %v2948_v62 = vand.u32 2147483648, %v2936_v53  ;;  %vm2942_vm5 = vweird.f32 %v2936_v53  ;;  %v2946_v60 = vand.u32 2147483647, %v2936_v53 }
0x30d8   :  { %v2949_v21 = vor.u32 1.1754944e-38, %v2948_v62  ;;  %vm2947_vm1 = vcmp.eq.f32.partialorder %v2946_v60, 8.507059e+37 }
0x30dc   :  { %v4290_v38 = vpop.eup %4289 }
0x30dd   :  { %v2938_v23 = vmul.f32 %v4290_v38, %v2936_v53  ;;  %vm2943_vm4 = vweird.f32 %v4290_v38 }
0x30de   :  { %vm2944_vm0 = vmor %vm2942_vm5, %vm2943_vm4 }
0x30df   :  { %v2939_v39 = vsub.f32 1.0, %v2938_v23 }
0x30e1   :  { %v2940_v61 = vmul.f32 %v4290_v38, %v2939_v39 }
0x30e3   :  { %v2941_v40 = vadd.f32 %v4290_v38, %v2940_v61 }
0x30e5   :  { %v2945_v5 = vsel %vm2944_vm0, %v4290_v38, %v2941_v40 }
0x30e6   :  { %v2950_v11 = vsel %vm2947_vm1, %v2949_v21, %v2945_v5 }
0x30e7   :  { %v2956_v24 = vmul.f32 %v2954_v52, %v2950_v11 }
0x3144   :  { %v2959_v13 = vpop.permute.xlu1 %2958 }
0x3145   :  { %v2961_v7 = vmul.f32 %v2959_v13, %v2950_v11 }
0x3147   :  { %2963 = vrot.lane.b32.xlu2 %v2961_v7, %s4417_s27 }
0x31a1   :  { %v2964_v2 = vpop.permute.xlu2 %2963 }
0x31a2   :  { %v2966_v25 = vadd.f32 %v2964_v2, %v2956_v24 }
0x31a4   :  { %4291 = vtanh.f32 %v2966_v25  ;;  %v3020_v55 = vrot.slane %v2966_v25, 6 }
0x31aa   :  { %v4292_v12 = vpop.eup %4291 }
0x31ab   :  { %2969 = vrot.lane.b32.xlu0 %v4292_v12, %s4416_s4 }
0x321d   :  { %v2970_v15 = vpop.permute.xlu0 %2969 }
0x321e   :  { %v2972_v63 = vmul.f32 %v2970_v15, %v2950_v11 }
0x3220   :  { %v2974_v14 = vpack.c.bf16 %v2972_v63, %v2972_v63 }
0x3222   :  { %v2976_v22 = vrot.slane %v2974_v14, 1 }
0x3224   :  { %2977 = vrot.lane.b32.xlu1 %v2976_v22, %s4417_s27 }
0x3296   :  { %v2978_v58 = vpop.permute.xlu1 %2977 }
0x3297   :  { %3940 = vmatmul.msk.bf16.vlgmr.msrb.gmra.mxu3 %vm154_vm10, %v2978_v58  ;;  %v3105_v58 = vld [vmem:[#allocation2 + $0x8] sm:$0x3] }
0x3298   :  { %3508 = vmatpush.bf16.msrb.mxu3 %v5111_v57 }
0x329c   :  { %3509 = vmatpush.bf16.msrb.mxu3 %v5141_v30 }
0x331a   :  { %v2991_v17 = vpop.f32.mrf.mxu3 }
0x331b   :  { %v2996_v50 = vrot.slane %v2991_v17, 4 }
0x331d   :  { %v2998_v28 = vadd.f32 %v2996_v50, %v2973_v54 }
0x331f   :  { %4293 = vtanh.f32 %v2998_v28  ;;  %v3941_v6 = vmul.f32 -1.442695, %v2998_v28 }
0x3321   :  { %4295 = vpow2.f32 %v3941_v6 }
0x3322   :  { %v2993_v51 = vpop.f32.mrf.mxu3 }
0x3325   :  { %v4294_v19 = vpop.eup %4293 }
0x3326   :  { %3024 = vrot.lane.b32.xlu2 %v4294_v19, %s4416_s4 }
0x3327   :  { %v4296_v29 = vpop.eup %4295 }
0x3328   :  { %v3002_v32 = vadd.f32 1.0, %v4296_v29 }
0x332a   :  { %4297 = vrcp.f32 %v3002_v32  ;;  %v3014_v49 = vand.u32 2147483648, %v3002_v32  ;;  %vm3008_vm3 = vweird.f32 %v3002_v32  ;;  %v3012_v42 = vand.u32 2147483647, %v3002_v32 }
0x332c   :  { %v3015_v31 = vor.u32 1.1754944e-38, %v3014_v49  ;;  %vm3013_vm7 = vcmp.eq.f32.partialorder %v3012_v42, 8.507059e+37 }
0x3330   :  { %v4298_v10 = vpop.eup %4297 }
0x3331   :  { %v3004_v47 = vmul.f32 %v4298_v10, %v3002_v32  ;;  %vm3009_vm2 = vweird.f32 %v4298_v10 }
0x3332   :  { %vm3010_vm6 = vmor %vm3008_vm3, %vm3009_vm2 }
0x3333   :  { %v3005_v36 = vsub.f32 1.0, %v3004_v47 }
0x3335   :  { %v3006_v48 = vmul.f32 %v4298_v10, %v3005_v36 }
0x3337   :  { %v3007_v33 = vadd.f32 %v4298_v10, %v3006_v48 }
0x3339   :  { %v3011_v56 = vsel %vm3010_vm6, %v4298_v10, %v3007_v33 }
0x333a   :  { %v3016_v20 = vsel %vm3013_vm7, %v3015_v31, %v3011_v56 }
0x333b   :  { %v3022_v1 = vmul.f32 %v3020_v55, %v3016_v20 }
0x3380   :  { %v3025_v26 = vpop.permute.xlu2 %3024 }
0x3381   :  { %v3027_v35 = vmul.f32 %v3025_v26, %v3016_v20 }
0x3383   :  { %3029 = vrot.lane.b32.xlu0 %v3027_v35, %s4417_s27 }
0x33f5   :  { %v3030_v8 = vpop.permute.xlu0 %3029 }
0x33f6   :  { %v3032_v4 = vadd.f32 %v3030_v8, %v3022_v1 }
0x33f8   :  { %4299 = vtanh.f32 %v3032_v4  ;;  %v3086_v7 = vrot.slane %v3032_v4, 6 }
0x33fe   :  { %v4300_v27 = vpop.eup %4299 }
0x33ff   :  { %3035 = vrot.lane.b32.xlu1 %v4300_v27, %s4416_s4 }
0x3471   :  { %v3036_v0 = vpop.permute.xlu1 %3035 }
0x3472   :  { %v3038_v18 = vmul.f32 %v3036_v0, %v3016_v20 }
0x3474   :  { %v3040_v37 = vpack.c.bf16 %v3038_v18, %v3038_v18 }
0x3476   :  { %v3042_v9 = vrot.slane %v3040_v37, 2 }
0x3478   :  { %3043 = vrot.lane.b32.xlu2 %v3042_v9, %s4417_s27 }
0x34d2   :  { %v3044_v3 = vpop.permute.xlu2 %3043 }
0x34d3   :  { %3942 = vmatmul.msk.bf16.vlgmr.msra.gmra.mxu0 %vm154_vm10, %v3044_v3  ;;  %v3168_v3 = vld [vmem:[#allocation2 + $0x8] sm:$0xc] }
0x34d4   :  { %3574 = vmatpush.bf16.msra.mxu0 %v5111_v57 }
0x34d8   :  { %3575 = vmatpush.bf16.msra.mxu0 %v5141_v30 }
0x3550   :  { %v3057_v44 = vpop.f32.mrf.mxu0 }
0x3551   :  { %v3062_v16 = vrot.slane %v3057_v44, 2 }
0x3553   :  { %v3064_v41 = vadd.f32 %v3062_v16, %v3039_v46 }
0x3555   :  { %4301 = vtanh.f32 %v3064_v41  ;;  %v3943_v43 = vmul.f32 -1.442695, %v3064_v41 }
0x3557   :  { %4303 = vpow2.f32 %v3943_v43 }
0x3558   :  { %v3059_v45 = vpop.f32.mrf.mxu0 }
0x355b   :  { %v4302_v59 = vpop.eup %4301 }
0x355c   :  { %3090 = vrot.lane.b32.xlu0 %v4302_v59, %s4416_s4 }
0x355d   :  { %v4304_v53 = vpop.eup %4303 }
0x355e   :  { %v3068_v38 = vadd.f32 1.0, %v4304_v53 }
0x3560   :  { %4305 = vrcp.f32 %v3068_v38  ;;  %v3080_v30 = vand.u32 2147483648, %v3068_v38  ;;  %vm3074_vm9 = vweird.f32 %v3068_v38  ;;  %v3078_v62 = vand.u32 2147483647, %v3068_v38 }
0x3562   :  { %v3081_v5 = vor.u32 1.1754944e-38, %v3080_v30  ;;  %vm3079_vm12 = vcmp.eq.f32.partialorder %v3078_v62, 8.507059e+37 }
0x3566   :  { %v4306_v23 = vpop.eup %4305 }
0x3567   :  { %v3070_v39 = vmul.f32 %v4306_v23, %v3068_v38  ;;  %vm3075_vm8 = vweird.f32 %v4306_v23 }
0x3568   :  { %vm3076_vm11 = vmor %vm3074_vm9, %vm3075_vm8 }
0x3569   :  { %v3071_v61 = vsub.f32 1.0, %v3070_v39 }
0x356b   :  { %v3072_v57 = vmul.f32 %v4306_v23, %v3071_v61 }
0x356d   :  { %v3073_v40 = vadd.f32 %v4306_v23, %v3072_v57 }
0x356f   :  { %v3077_v60 = vsel %vm3076_vm11, %v4306_v23, %v3073_v40 }
0x3570   :  { %v3082_v13 = vsel %vm3079_vm12, %v3081_v5, %v3077_v60 }
0x3571   :  { %v3088_v52 = vmul.f32 %v3086_v7, %v3082_v13 }
0x35ce   :  { %v3091_v21 = vpop.permute.xlu0 %3090 }
0x35cf   :  { %v3093_v11 = vmul.f32 %v3091_v21, %v3082_v13 }
0x35d1   :  { %3095 = vrot.lane.b32.xlu1 %v3093_v11, %s4417_s27 }
0x3643   :  { %v3096_v24 = vpop.permute.xlu1 %3095 }
0x3644   :  { %v3098_v2 = vadd.f32 %v3096_v24, %v3088_v52 }
0x3646   :  { %4307 = vtanh.f32 %v3098_v2  ;;  %v3149_v20 = vrot.slane %v3098_v2, 6 }
0x364c   :  { %v4308_v25 = vpop.eup %4307 }
0x364d   :  { %3101 = vrot.lane.b32.xlu2 %v4308_v25, %s4416_s4 }
0x36a7   :  { %v3102_v12 = vpop.permute.xlu2 %3101 }
0x36a8   :  { %v3104_v15 = vmul.f32 %v3102_v12, %v3082_v13 }
0x36aa   :  { %v3106_v63 = vpack.c.bf16 %v3104_v15, %v3104_v15 }
0x36ac   :  { %v3108_v14 = vrot.slane %v3106_v63, 3 }
0x36ae   :  { %3109 = vrot.lane.b32.xlu0 %v3108_v14, %s4417_s27 }
0x3720   :  { %v3110_v22 = vpop.permute.xlu0 %3109 }
0x3721   :  { %3944 = vmatmul.msk.bf16.vlgmr.msra.gmra.mxu1 %vm154_vm10, %v3110_v22  ;;  %v3233_v22 = vld [vmem:[#allocation2 + $0x8] sm:$0x30] }
0x379e   :  { %v3123_v17 = vpop.f32.mrf.mxu1 }
0x379f   :  { %v3127_v50 = vadd.f32 %v3123_v17, %v3105_v58 }
0x37a1   :  { %4309 = vtanh.f32 %v3127_v50  ;;  %v3945_v51 = vmul.f32 -1.442695, %v3127_v50 }
0x37a3   :  { %4311 = vpow2.f32 %v3945_v51 }
0x37a6   :  { %v3125_v54 = vpop.f32.mrf.mxu1 }
0x37a7   :  { %v4310_v28 = vpop.eup %4309 }
0x37a8   :  { %3153 = vrot.lane.b32.xlu1 %v4310_v28, %s4416_s4 }
0x37a9   :  { %v4312_v19 = vpop.eup %4311 }
0x37aa   :  { %v3131_v6 = vadd.f32 1.0, %v4312_v19 }
0x37ac   :  { %4313 = vrcp.f32 %v3131_v6  ;;  %v3143_v48 = vand.u32 2147483648, %v3131_v6  ;;  %vm3137_vm14 = vweird.f32 %v3131_v6  ;;  %v3141_v33 = vand.u32 2147483647, %v3131_v6 }
0x37ae   :  { %v3144_v42 = vor.u32 1.1754944e-38, %v3143_v48  ;;  %vm3142_vm5 = vcmp.eq.f32.partialorder %v3141_v33, 8.507059e+37 }
0x37b2   :  { %v4314_v29 = vpop.eup %4313 }
0x37b3   :  { %v3133_v32 = vmul.f32 %v4314_v29, %v3131_v6  ;;  %vm3138_vm13 = vweird.f32 %v4314_v29 }
0x37b4   :  { %vm3139_vm4 = vmor %vm3137_vm14, %vm3138_vm13 }
0x37b5   :  { %v3134_v10 = vsub.f32 1.0, %v3133_v32 }
0x37b7   :  { %v3135_v47 = vmul.f32 %v4314_v29, %v3134_v10 }
0x37b9   :  { %v3136_v36 = vadd.f32 %v4314_v29, %v3135_v47 }
0x37bb   :  { %v3140_v49 = vsel %vm3139_vm4, %v4314_v29, %v3136_v36 }
0x37bc   :  { %v3145_v31 = vsel %vm3142_vm5, %v3144_v42, %v3140_v49 }
0x37bd   :  { %v3151_v35 = vmul.f32 %v3149_v20, %v3145_v31 }
0x381a   :  { %v3154_v56 = vpop.permute.xlu1 %3153 }
0x381b   :  { %v3156_v26 = vmul.f32 %v3154_v56, %v3145_v31 }
0x381d   :  { %3158 = vrot.lane.b32.xlu2 %v3156_v26, %s4417_s27 }
0x3877   :  { %v3159_v55 = vpop.permute.xlu2 %3158 }
0x3878   :  { %v3161_v1 = vadd.f32 %v3159_v55, %v3151_v35 }
0x387a   :  { %4315 = vtanh.f32 %v3161_v1  ;;  %v3214_v21 = vrot.slane %v3161_v1, 6 }
0x3880   :  { %v4316_v8 = vpop.eup %4315 }
0x3881   :  { %3164 = vrot.lane.b32.xlu0 %v4316_v8, %s4416_s4 }
0x38f3   :  { %v3165_v4 = vpop.permute.xlu0 %3164 }
0x38f4   :  { %v3167_v27 = vmul.f32 %v3165_v4, %v3145_v31 }
0x38f6   :  { %v3169_v0 = vpack.c.bf16 %v3167_v27, %v3167_v27 }
0x38f8   :  { %3171 = vrot.lane.b32.xlu1 %v3169_v0, %s4417_s27 }
0x396a   :  { %v3172_v18 = vpop.permute.xlu1 %3171 }
0x396b   :  { %3946 = vmatmul.msk.bf16.vlgmr.msra.gmra.mxu2 %vm154_vm10, %v3172_v18 }
0x39ee   :  { %v3185_v37 = vpop.f32.mrf.mxu2 }
0x39ef   :  { %v3190_v9 = vrot.slane %v3185_v37, 6 }
0x39f1   :  { %v3192_v44 = vadd.f32 %v3190_v9, %v3168_v3  ;;  %v3299_v9 = vld [vmem:[#allocation2 + $0x8] sm:$0xc0] }
0x39f3   :  { %4317 = vtanh.f32 %v3192_v44  ;;  %v3947_v41 = vmul.f32 -1.442695, %v3192_v44 }
0x39f5   :  { %4319 = vpow2.f32 %v3947_v41 }
0x39f6   :  { %v3187_v16 = vpop.f32.mrf.mxu2 }
0x39f9   :  { %v4318_v46 = vpop.eup %4317 }
0x39fa   :  { %3218 = vrot.lane.b32.xlu2 %v4318_v46, %s4416_s4 }
0x39fb   :  { %v4320_v45 = vpop.eup %4319 }
0x39fc   :  { %v3196_v59 = vadd.f32 1.0, %v4320_v45 }
0x39fe   :  { %4321 = vrcp.f32 %v3196_v59  ;;  %v3208_v61 = vand.u32 2147483648, %v3196_v59  ;;  %vm3202_vm1 = vweird.f32 %v3196_v59  ;;  %v3206_v57 = vand.u32 2147483647, %v3196_v59 }
0x3a00   :  { %v3209_v30 = vor.u32 1.1754944e-38, %v3208_v61  ;;  %vm3207_vm3 = vcmp.eq.f32.partialorder %v3206_v57, 8.507059e+37 }
0x3a04   :  { %v4322_v43 = vpop.eup %4321 }
0x3a05   :  { %v3198_v53 = vmul.f32 %v4322_v43, %v3196_v59  ;;  %vm3203_vm0 = vweird.f32 %v4322_v43 }
0x3a06   :  { %vm3204_vm2 = vmor %vm3202_vm1, %vm3203_vm0 }
0x3a07   :  { %v3199_v38 = vsub.f32 1.0, %v3198_v53 }
0x3a09   :  { %v3200_v23 = vmul.f32 %v4322_v43, %v3199_v38 }
0x3a0b   :  { %v3201_v39 = vadd.f32 %v4322_v43, %v3200_v23 }
0x3a0d   :  { %v3205_v40 = vsel %vm3204_vm2, %v4322_v43, %v3201_v39 }
0x3a0e   :  { %v3210_v60 = vsel %vm3207_vm3, %v3209_v30, %v3205_v40 }
0x3a0f   :  { %v3216_v13 = vmul.f32 %v3214_v21, %v3210_v60 }
0x3a54   :  { %v3219_v62 = vpop.permute.xlu2 %3218 }
0x3a55   :  { %v3221_v5 = vmul.f32 %v3219_v62, %v3210_v60 }
0x3a57   :  { %3223 = vrot.lane.b32.xlu0 %v3221_v5, %s4417_s27 }
0x3ac9   :  { %v3224_v11 = vpop.permute.xlu0 %3223 }
0x3aca   :  { %v3226_v7 = vadd.f32 %v3224_v11, %v3216_v13 }
0x3acc   :  { %4323 = vtanh.f32 %v3226_v7  ;;  %v3280_v31 = vrot.slane %v3226_v7, 6 }
0x3ad2   :  { %v4324_v52 = vpop.eup %4323 }
0x3ad3   :  { %3229 = vrot.lane.b32.xlu1 %v4324_v52, %s4416_s4 }
0x3b45   :  { %v3230_v24 = vpop.permute.xlu1 %3229 }
0x3b46   :  { %v3232_v2 = vmul.f32 %v3230_v24, %v3210_v60 }
0x3b48   :  { %v3234_v25 = vpack.c.bf16 %v3232_v2, %v3232_v2 }
0x3b4a   :  { %v3236_v12 = vrot.slane %v3234_v25, 1 }
0x3b4c   :  { %3237 = vrot.lane.b32.xlu2 %v3236_v12, %s4417_s27 }
0x3ba6   :  { %v3238_v15 = vpop.permute.xlu2 %3237 }
0x3ba7   :  { %3948 = vmatmul.msk.bf16.vlgmr.msra.gmra.mxu3 %vm154_vm10, %v3238_v15  ;;  %v3365_v15 = vld [vmem:[#allocation2 + $0x28] sm:$0x3] }
0x3c2a   :  { %v3251_v63 = vpop.f32.mrf.mxu3 }
0x3c2b   :  { %v3256_v14 = vrot.slane %v3251_v63, 4 }
0x3c2d   :  { %v3258_v58 = vadd.f32 %v3256_v14, %v3233_v22 }
0x3c2f   :  { %4325 = vtanh.f32 %v3258_v58  ;;  %v3949_v54 = vmul.f32 -1.442695, %v3258_v58 }
0x3c31   :  { %4327 = vpow2.f32 %v3949_v54 }
0x3c32   :  { %v3253_v17 = vpop.f32.mrf.mxu3 }
0x3c35   :  { %v4326_v50 = vpop.eup %4325 }
0x3c36   :  { %3284 = vrot.lane.b32.xlu0 %v4326_v50, %s4416_s4 }
0x3c37   :  { %v4328_v28 = vpop.eup %4327 }
0x3c38   :  { %v3262_v51 = vadd.f32 1.0, %v4328_v28 }
0x3c3a   :  { %4329 = vrcp.f32 %v3262_v51  ;;  %v3274_v47 = vand.u32 2147483648, %v3262_v51  ;;  %vm3268_vm7 = vweird.f32 %v3262_v51  ;;  %v3272_v36 = vand.u32 2147483647, %v3262_v51 }
0x3c3c   :  { %v3275_v33 = vor.u32 1.1754944e-38, %v3274_v47  ;;  %vm3273_vm9 = vcmp.eq.f32.partialorder %v3272_v36, 8.507059e+37 }
0x3c40   :  { %v4330_v19 = vpop.eup %4329 }
0x3c41   :  { %v3264_v6 = vmul.f32 %v4330_v19, %v3262_v51  ;;  %vm3269_vm6 = vweird.f32 %v4330_v19 }
0x3c42   :  { %vm3270_vm8 = vmor %vm3268_vm7, %vm3269_vm6 }
0x3c43   :  { %v3265_v29 = vsub.f32 1.0, %v3264_v6 }
0x3c45   :  { %v3266_v32 = vmul.f32 %v4330_v19, %v3265_v29 }
0x3c47   :  { %v3267_v10 = vadd.f32 %v4330_v19, %v3266_v32 }
0x3c49   :  { %v3271_v48 = vsel %vm3270_vm8, %v4330_v19, %v3267_v10 }
0x3c4a   :  { %v3276_v42 = vsel %vm3273_vm9, %v3275_v33, %v3271_v48 }
0x3c4b   :  { %v3282_v26 = vmul.f32 %v3280_v31, %v3276_v42 }
0x3ca8   :  { %v3285_v49 = vpop.permute.xlu0 %3284 }
0x3ca9   :  { %v3287_v56 = vmul.f32 %v3285_v49, %v3276_v42 }
0x3cab   :  { %3289 = vrot.lane.b32.xlu1 %v3287_v56, %s4417_s27 }
0x3d1d   :  { %v3290_v20 = vpop.permute.xlu1 %3289 }
0x3d1e   :  { %v3292_v35 = vadd.f32 %v3290_v20, %v3282_v26 }
0x3d20   :  { %4331 = vtanh.f32 %v3292_v35  ;;  %v3346_v5 = vrot.slane %v3292_v35, 6 }
0x3d26   :  { %v4332_v55 = vpop.eup %4331 }
0x3d27   :  { %3295 = vrot.lane.b32.xlu2 %v4332_v55, %s4416_s4 }
0x3d81   :  { %v3296_v1 = vpop.permute.xlu2 %3295 }
0x3d82   :  { %v3298_v8 = vmul.f32 %v3296_v1, %v3276_v42 }
0x3d84   :  { %v3300_v4 = vpack.c.bf16 %v3298_v8, %v3298_v8 }
0x3d86   :  { %v3302_v27 = vrot.slane %v3300_v4, 2 }
0x3d88   :  { %3303 = vrot.lane.b32.xlu0 %v3302_v27, %s4417_s27 }
0x3dfa   :  { %v3304_v0 = vpop.permute.xlu0 %3303 }
0x3dfb   :  { %3950 = vmatmul.msk.bf16.vlgmr.msrb.gmra.mxu0 %vm154_vm10, %v3304_v0  ;;  %v3428_v0 = vld [vmem:[#allocation2 + $0x28] sm:$0xc] }
0x3e78   :  { %v3317_v18 = vpop.f32.mrf.mxu0 }
0x3e79   :  { %v3322_v37 = vrot.slane %v3317_v18, 2 }
0x3e7b   :  { %v3324_v3 = vadd.f32 %v3322_v37, %v3299_v9 }
0x3e7d   :  { %4333 = vtanh.f32 %v3324_v3  ;;  %v3951_v46 = vmul.f32 -1.442695, %v3324_v3 }
0x3e7f   :  { %4335 = vpow2.f32 %v3951_v46 }
0x3e80   :  { %v3319_v44 = vpop.f32.mrf.mxu0 }
0x3e83   :  { %v4334_v16 = vpop.eup %4333 }
0x3e84   :  { %3350 = vrot.lane.b32.xlu1 %v4334_v16, %s4416_s4 }
0x3e85   :  { %v4336_v41 = vpop.eup %4335 }
0x3e86   :  { %v3328_v45 = vadd.f32 1.0, %v4336_v41 }
0x3e88   :  { %4337 = vrcp.f32 %v3328_v45  ;;  %v3340_v39 = vand.u32 2147483648, %v3328_v45  ;;  %vm3334_vm12 = vweird.f32 %v3328_v45  ;;  %v3338_v61 = vand.u32 2147483647, %v3328_v45 }
0x3e8a   :  { %v3341_v40 = vor.u32 1.1754944e-38, %v3340_v39  ;;  %vm3339_vm14 = vcmp.eq.f32.partialorder %v3338_v61, 8.507059e+37 }
0x3e8e   :  { %v4338_v59 = vpop.eup %4337 }
0x3e8f   :  { %v3330_v43 = vmul.f32 %v4338_v59, %v3328_v45  ;;  %vm3335_vm11 = vweird.f32 %v4338_v59 }
0x3e90   :  { %vm3336_vm13 = vmor %vm3334_vm12, %vm3335_vm11 }
0x3e91   :  { %v3331_v53 = vsub.f32 1.0, %v3330_v43 }
0x3e93   :  { %v3332_v38 = vmul.f32 %v4338_v59, %v3331_v53 }
0x3e95   :  { %v3333_v23 = vadd.f32 %v4338_v59, %v3332_v38 }
0x3e97   :  { %v3337_v57 = vsel %vm3336_vm13, %v4338_v59, %v3333_v23 }
0x3e98   :  { %v3342_v62 = vsel %vm3339_vm14, %v3341_v40, %v3337_v57 }
0x3e99   :  { %v3348_v21 = vmul.f32 %v3346_v5, %v3342_v62 }
0x3ef6   :  { %v3351_v30 = vpop.permute.xlu1 %3350 }
0x3ef7   :  { %v3353_v60 = vmul.f32 %v3351_v30, %v3342_v62 }
0x3ef9   :  { %3355 = vrot.lane.b32.xlu2 %v3353_v60, %s4417_s27 }
0x3f53   :  { %v3356_v13 = vpop.permute.xlu2 %3355 }
0x3f54   :  { %v3358_v11 = vadd.f32 %v3356_v13, %v3348_v21 }
0x3f56   :  { %4339 = vtanh.f32 %v3358_v11  ;;  %v3409_v42 = vrot.slane %v3358_v11, 6 }
0x3f5c   :  { %v4340_v7 = vpop.eup %4339 }
0x3f5d   :  { %3361 = vrot.lane.b32.xlu0 %v4340_v7, %s4416_s4 }
0x3fcf   :  { %v3362_v52 = vpop.permute.xlu0 %3361 }
0x3fd0   :  { %v3364_v24 = vmul.f32 %v3362_v52, %v3342_v62 }
0x3fd2   :  { %v3366_v2 = vpack.c.bf16 %v3364_v24, %v3364_v24 }
0x3fd4   :  { %v3368_v25 = vrot.slane %v3366_v2, 3 }
0x3fd6   :  { %3369 = vrot.lane.b32.xlu1 %v3368_v25, %s4417_s27 }
0x4048   :  { %v3370_v12 = vpop.permute.xlu1 %3369 }
0x4049   :  { %3952 = vmatmul.msk.bf16.vlgmr.msrb.gmra.mxu1 %vm154_vm10, %v3370_v12  ;;  %v3493_v12 = vld [vmem:[#allocation2 + $0x28] sm:$0x30] }
0x40c6   :  { %v3383_v63 = vpop.f32.mrf.mxu1 }
0x40c7   :  { %v3387_v14 = vadd.f32 %v3383_v63, %v3365_v15 }
0x40c9   :  { %4341 = vtanh.f32 %v3387_v14  ;;  %v3953_v17 = vmul.f32 -1.442695, %v3387_v14 }
0x40cb   :  { %4343 = vpow2.f32 %v3953_v17 }
0x40ce   :  { %v3385_v22 = vpop.f32.mrf.mxu1 }
0x40cf   :  { %v4342_v58 = vpop.eup %4341 }
0x40d0   :  { %3413 = vrot.lane.b32.xlu2 %v4342_v58, %s4416_s4 }
0x40d1   :  { %v4344_v50 = vpop.eup %4343 }
0x40d2   :  { %v3391_v54 = vadd.f32 1.0, %v4344_v50 }
0x40d4   :  { %4345 = vrcp.f32 %v3391_v54  ;;  %v3403_v32 = vand.u32 2147483648, %v3391_v54  ;;  %vm3397_vm5 = vweird.f32 %v3391_v54  ;;  %v3401_v10 = vand.u32 2147483647, %v3391_v54 }
0x40d6   :  { %v3404_v36 = vor.u32 1.1754944e-38, %v3403_v32  ;;  %vm3402_vm1 = vcmp.eq.f32.partialorder %v3401_v10, 8.507059e+37  ;;  %v2544_v10 = vld [vmem:[#allocation2 + $0x38] sm:$0xc0] }
0x40da   :  { %v4346_v28 = vpop.eup %4345 }
0x40db   :  { %v3393_v51 = vmul.f32 %v4346_v28, %v3391_v54  ;;  %vm3398_vm4 = vweird.f32 %v4346_v28 }
0x40dc   :  { %vm3399_vm0 = vmor %vm3397_vm5, %vm3398_vm4 }
0x40dd   :  { %v3394_v19 = vsub.f32 1.0, %v3393_v51 }
0x40df   :  { %v3395_v6 = vmul.f32 %v4346_v28, %v3394_v19 }
0x40e1   :  { %v3396_v29 = vadd.f32 %v4346_v28, %v3395_v6 }
0x40e3   :  { %v3400_v47 = vsel %vm3399_vm0, %v4346_v28, %v3396_v29 }
0x40e4   :  { %v3405_v33 = vsel %vm3402_vm1, %v3404_v36, %v3400_v47  ;;  %v2571_v47 = vrot.slane %v5227_v34, 2 }
0x40e5   :  { %v3411_v56 = vmul.f32 %v3409_v42, %v3405_v33 }
0x412a   :  { %v3414_v48 = vpop.permute.xlu2 %3413 }
0x412b   :  { %v3416_v49 = vmul.f32 %v3414_v48, %v3405_v33 }
0x412d   :  { %3418 = vrot.lane.b32.xlu0 %v3416_v49, %s4417_s27  ;;  %v2573_v49 = vadd.f32 %v2571_v47, %v2544_v10 }
0x419f   :  { %v3419_v31 = vpop.permute.xlu0 %3418 }
0x41a0   :  { %v3421_v26 = vadd.f32 %v3419_v31, %v3411_v56 }
0x41a2   :  { %4347 = vtanh.f32 %v3421_v26  ;;  %v3474_v30 = vrot.slane %v3421_v26, 6 }
0x41a8   :  { %v4348_v20 = vpop.eup %4347 }
0x41a9   :  { %3424 = vrot.lane.b32.xlu1 %v4348_v20, %s4416_s4 }
0x421b   :  { %v3425_v35 = vpop.permute.xlu1 %3424 }
0x421c   :  { %v3427_v55 = vmul.f32 %v3425_v35, %v3405_v33 }
0x421e   :  { %v3429_v1 = vpack.c.bf16 %v3427_v55, %v3427_v55  ;;  %v3929_v55 = vmul.f32 -1.442695, %v2573_v49 }
0x4220   :  { %3431 = vrot.lane.b32.xlu2 %v3429_v1, %s4417_s27 }
0x427a   :  { %v3432_v8 = vpop.permute.xlu2 %3431 }
0x427b   :  { %3954 = vmatmul.msk.bf16.vlgmr.msrb.gmra.mxu2 %vm154_vm10, %v3432_v8 }
0x42fe   :  { %v3445_v4 = vpop.f32.mrf.mxu2 }
0x42ff   :  { %v3450_v27 = vrot.slane %v3445_v4, 6 }
0x4301   :  { %v3452_v18 = vadd.f32 %v3450_v27, %v3428_v0 }
0x4303   :  { %4349 = vtanh.f32 %v3452_v18  ;;  %v3955_v3 = vmul.f32 -1.442695, %v3452_v18 }
0x4305   :  { %4351 = vpow2.f32 %v3955_v3 }
0x4306   :  { %v3447_v37 = vpop.f32.mrf.mxu2 }
0x4309   :  { %v4350_v9 = vpop.eup %4349 }
0x430a   :  { %3478 = vrot.lane.b32.xlu0 %v4350_v9, %s4416_s4 }
0x430b   :  { %v4352_v44 = vpop.eup %4351 }
0x430c   :  { %v3456_v16 = vadd.f32 1.0, %v4352_v44 }
0x430e   :  { %4353 = vrcp.f32 %v3456_v16  ;;  %v3468_v53 = vand.u32 2147483648, %v3456_v16  ;;  %vm3462_vm3 = vweird.f32 %v3456_v16  ;;  %v3466_v38 = vand.u32 2147483647, %v3456_v16 }
0x4310   :  { %v3469_v39 = vor.u32 1.1754944e-38, %v3468_v53  ;;  %vm3467_vm7 = vcmp.eq.f32.partialorder %v3466_v38, 8.507059e+37 }
0x4314   :  { %v4354_v46 = vpop.eup %4353 }
0x4315   :  { %v3458_v41 = vmul.f32 %v4354_v46, %v3456_v16  ;;  %vm3463_vm2 = vweird.f32 %v4354_v46 }
0x4316   :  { %vm3464_vm6 = vmor %vm3462_vm3, %vm3463_vm2 }
0x4317   :  { %v3459_v45 = vsub.f32 1.0, %v3458_v41 }
0x4319   :  { %v3460_v59 = vmul.f32 %v4354_v46, %v3459_v45 }
0x431b   :  { %v3461_v43 = vadd.f32 %v4354_v46, %v3460_v59 }
0x431d   :  { %v3465_v23 = vsel %vm3464_vm6, %v4354_v46, %v3461_v43  ;;  %vm3634_vm6 = vcmask 523270  }
0x431e   :  { %v3470_v57 = vsel %vm3467_vm7, %v3469_v39, %v3465_v23 }
0x431f   :  { %v3476_v62 = vmul.f32 %v3474_v30, %v3470_v57 }
0x437c   :  { %v3479_v61 = vpop.permute.xlu0 %3478 }
0x437d   :  { %v3481_v40 = vmul.f32 %v3479_v61, %v3470_v57 }
0x437f   :  { %3483 = vrot.lane.b32.xlu1 %v3481_v40, %s4417_s27 }
0x43f1   :  { %v3484_v60 = vpop.permute.xlu1 %3483 }
0x43f2   :  { %v3486_v5 = vadd.f32 %v3484_v60, %v3476_v62 }
0x43f4   :  { %4355 = vtanh.f32 %v3486_v5  ;;  %v3540_v31 = vrot.slane %v3486_v5, 6 }
0x43fa   :  { %v4356_v21 = vpop.eup %4355 }
0x43fb   :  { %3489 = vrot.lane.b32.xlu2 %v4356_v21, %s4416_s4 }
0x4455   :  { %v3490_v13 = vpop.permute.xlu2 %3489 }
0x4456   :  { %v3492_v11 = vmul.f32 %v3490_v13, %v3470_v57  ;;  %v3559_v57 = vld [vmem:[#allocation2 + $0x28] sm:$0xc0] }
0x4458   :  { %v3494_v7 = vpack.c.bf16 %v3492_v11, %v3492_v11 }
0x445a   :  { %v3496_v52 = vrot.slane %v3494_v7, 1 }
0x445c   :  { %3497 = vrot.lane.b32.xlu0 %v3496_v52, %s4417_s27 }
0x44ce   :  { %v3498_v24 = vpop.permute.xlu0 %3497 }
0x44cf   :  { %3956 = vmatmul.msk.bf16.vlgmr.msrb.gmra.mxu3 %vm154_vm10, %v3498_v24 }
0x4552   :  { %v3511_v2 = vpop.f32.mrf.mxu3 }
0x4553   :  { %v3516_v25 = vrot.slane %v3511_v2, 4 }
0x4555   :  { %v3518_v15 = vadd.f32 %v3516_v25, %v3493_v12 }
0x4557   :  { %4357 = vtanh.f32 %v3518_v15  ;;  %v3957_v22 = vmul.f32 -1.442695, %v3518_v15 }
0x4559   :  { %4359 = vpow2.f32 %v3957_v22 }
0x455a   :  { %v3513_v63 = vpop.f32.mrf.mxu3 }
0x455d   :  { %v4358_v14 = vpop.eup %4357 }
0x455e   :  { %3544 = vrot.lane.b32.xlu1 %v4358_v14, %s4416_s4 }
0x455f   :  { %v4360_v58 = vpop.eup %4359 }
0x4560   :  { %v3522_v17 = vadd.f32 1.0, %v4360_v58 }
0x4562   :  { %4361 = vrcp.f32 %v3522_v17  ;;  %v3534_v6 = vand.u32 2147483648, %v3522_v17  ;;  %vm3528_vm9 = vweird.f32 %v3522_v17  ;;  %v3532_v29 = vand.u32 2147483647, %v3522_v17 }
0x4563   :  { %4363 = vtanh.f32 %v2573_v49 }
0x4564   :  { %v3535_v36 = vor.u32 1.1754944e-38, %v3534_v6  ;;  %vm3533_vm12 = vcmp.eq.f32.partialorder %v3532_v29, 8.507059e+37 }
0x4568   :  { %v4362_v50 = vpop.eup %4361 }
0x4569   :  { %v3524_v54 = vmul.f32 %v4362_v50, %v3522_v17  ;;  %vm3529_vm8 = vweird.f32 %v4362_v50  ;;  %v4364_v56 = vpop.eup %4363 }
0x456a   :  { %vm3530_vm11 = vmor %vm3528_vm9, %vm3529_vm8 }
0x456b   :  { %v3525_v28 = vsub.f32 1.0, %v3524_v54 }
0x456d   :  { %v3526_v51 = vmul.f32 %v4362_v50, %v3525_v28 }
0x456f   :  { %v3527_v19 = vadd.f32 %v4362_v50, %v3526_v51 }
0x4571   :  { %v3531_v32 = vsel %vm3530_vm11, %v4362_v50, %v3527_v19 }
0x4572   :  { %v3536_v33 = vsel %vm3533_vm12, %v3535_v36, %v3531_v32 }
0x4573   :  { %v3542_v26 = vmul.f32 %v3540_v31, %v3536_v33 }
0x45d0   :  { %v3545_v48 = vpop.permute.xlu1 %3544 }
0x45d1   :  { %v3547_v42 = vmul.f32 %v3545_v48, %v3536_v33 }
0x45d3   :  { %3549 = vrot.lane.b32.xlu2 %v3547_v42, %s4417_s27 }
0x45db   :  { %2627 = vrot.lane.b32.xlu2 %v4364_v56, %s4416_s4  ;;  %v4418_v56 = vmov 64.0  }
0x462d   :  { %v3550_v20 = vpop.permute.xlu2 %3549 }
0x462e   :  { %v5357_v35 = vadd.f32 %v3550_v20, %v3542_v26 }
0x4630   :  { %4365 = vtanh.f32 %v5357_v35  ;;  %v3606_v19 = vrot.slane %v5357_v35, 6 }
0x4631   :  { %4367 = vpow2.f32 %v3929_v55 }
0x4635   :  { %v2628_v43 = vpop.permute.xlu2 %2627 }
0x4636   :  { %v4366_v34 = vpop.eup %4365 }
0x4637   :  { %3555 = vrot.lane.b32.xlu0 %v4366_v34, %s4416_s4  ;;  %v4368_v1 = vpop.eup %4367 }
0x4638   :  { %v2597_v8 = vadd.f32 1.0, %v4368_v1 }
0x463a   :  { %4369 = vrcp.f32 %v2597_v8  ;;  %v2609_v46 = vand.u32 2147483648, %v2597_v8  ;;  %vm2603_vm14 = vweird.f32 %v2597_v8  ;;  %v2607_v41 = vand.u32 2147483647, %v2597_v8 }
0x463c   :  { %v2610_v59 = vor.u32 1.1754944e-38, %v2609_v46  ;;  %vm2608_vm5 = vcmp.eq.f32.partialorder %v2607_v41, 8.507059e+37  ;;  %v3675_v46 = vld [vmem:[%s5454_s11 + $0x8] sm:$0xff]  ;;  %v3674_v41 = vld [vmem:[%s5454_s11] sm:$0xff] }
0x4640   :  { %v4370_v4 = vpop.eup %4369 }
0x4641   :  { %v2599_v27 = vmul.f32 %v4370_v4, %v2597_v8  ;;  %vm2604_vm13 = vweird.f32 %v4370_v4 }
0x4642   :  { %vm2605_vm4 = vmor %vm2603_vm14, %vm2604_vm13 }
0x4643   :  { %v2600_v0 = vsub.f32 1.0, %v2599_v27 }
0x4645   :  { %v2601_v37 = vmul.f32 %v4370_v4, %v2600_v0 }
0x4647   :  { %v2602_v44 = vadd.f32 %v4370_v4, %v2601_v37  ;;  %v3680_v37 = vld [vmem:[%s5454_s11 + $0x30] sm:$0xff] }
0x4649   :  { %v2606_v45 = vsel %vm2605_vm4, %v4370_v4, %v2602_v44  ;;  %v3677_v44 = vld [vmem:[%s5454_s11 + $0x18] sm:$0xff] }
0x464a   :  { %v2611_v53 = vsel %vm2608_vm5, %v2610_v59, %v2606_v45  ;;  %v3714_v45 = vld [vmem:[%s5456_s13 + $0x18] sm:$0xff]  ;;  %v3713_v59 = vld [vmem:[%s5456_s13 + $0x10] sm:$0xff] }
0x464b   :  { %v2630_v38 = vmul.f32 %v2628_v43, %v2611_v53  ;;  %v2625_v62 = vmul.f32 0.0, %v2611_v53  ;;  %3734 = vmatpush.msra.mxu2 %v3714_v45 }
0x464d   :  { %3735 = vmatpush.msra.mxu2 %v3713_v59 }
0x46a9   :  { %v3556_v18 = vpop.permute.xlu0 %3555 }
0x46aa   :  { %v3558_v9 = vmul.f32 %v3556_v18, %v3536_v33  ;;  %v3681_v18 = vld [vmem:[%s5454_s11 + $0x38] sm:$0xff] }
0x46ab   :  { %3698 = vmatpush.msra.mxu1 %v3681_v18 }
0x46ac   :  { %v3560_v3 = vpack.c.bf16 %v3558_v9, %v3558_v9  ;;  %v3679_v9 = vld [vmem:[%s5454_s11 + $0x28] sm:$0xff] }
0x46ad   :  { %3699 = vmatpush.msra.mxu1 %v3680_v37 }
0x46ae   :  { %v3562_v16 = vrot.slane %v3560_v3, 2  ;;  %v3678_v3 = vld [vmem:[%s5454_s11 + $0x20] sm:$0xff] }
0x46af   :  { %3700 = vmatpush.msra.mxu1 %v3679_v9 }
0x46b0   :  { %3563 = vrot.lane.b32.xlu1 %v3562_v16, %s4417_s27  ;;  %v3676_v16 = vld [vmem:[%s5454_s11 + $0x10] sm:$0xff] }
0x46b1   :  { %3701 = vmatpush.msra.mxu1 %v3678_v3 }
0x46b3   :  { %3702 = vmatpush.msra.mxu1 %v3677_v44 }
0x46b5   :  { %3703 = vmatpush.msra.mxu1 %v3676_v16 }
0x46b7   :  { %3704 = vmatpush.msra.mxu1 %v3675_v46 }
0x46b8   :  { %2632 = vrot.lane.b32.xlu1 %v2630_v38, %s4417_s27  ;;  %v3712_v38 = vld [vmem:[%s5456_s13 + $0x8] sm:$0xff] }
0x46b9   :  { %3705 = vmatpush.msra.mxu1 %v3674_v41  ;;  %3736 = vmatpush.msra.mxu2 %v3712_v38 }
0x4722   :  { %v3564_v23 = vpop.permute.xlu1 %3563 }
0x4723   :  { %3958 = vmatmul.msk.bf16.vlgmr.msra.gmra.mxu0 %vm154_vm10, %v3564_v23 }
0x472a   :  { %v2633_v30 = vpop.permute.xlu1 %2632 }
0x472b   :  { %v2635_v5 = vadd.f32 %v2633_v30, %v2625_v62 }
0x47a0   :  { %v3577_v39 = vpop.f32.mrf.mxu0 }
0x47a1   :  { %v3582_v61 = vrot.slane %v3577_v39, 2 }
0x47a3   :  { %v3584_v40 = vadd.f32 %v3582_v61, %v3559_v57 }
0x47a5   :  { %4371 = vtanh.f32 %v3584_v40  ;;  %v3959_v11 = vmul.f32 -1.442695, %v3584_v40 }
0x47a6   :  { %4373 = vtanh.f32 %v2635_v5 }
0x47a7   :  { %4375 = vpow2.f32 %v3959_v11 }
0x47a8   :  { %v3579_v60 = vpop.f32.mrf.mxu0 }
0x47a9   :  { %v3984_v60 = vld [vmem:[%s5452_s9] ss:$0 sm:$0xff] }
0x47ab   :  { %v4372_v21 = vpop.eup %4371 }
0x47ac   :  { %3610 = vrot.lane.b32.xlu0 %v4372_v21, %s4416_s4  ;;  %v4374_v13 = vpop.eup %4373  ;;  %v3985_v21 = vld [vmem:[%s5453_s10] ss:$0 sm:$0xff] }
0x47ad   :  { %v4376_v7 = vpop.eup %4375 }
0x47ae   :  { %v3588_v52 = vadd.f32 1.0, %v4376_v7 }
0x47b0   :  { %4377 = vrcp.f32 %v3588_v52  ;;  %v3600_v63 = vand.u32 2147483648, %v3588_v52  ;;  %vm3594_vm1 = vweird.f32 %v3588_v52  ;;  %v3598_v14 = vand.u32 2147483647, %v3588_v52 }
0x47b2   :  { %v3601_v58 = vor.u32 1.1754944e-38, %v3600_v63  ;;  %vm3599_vm3 = vcmp.eq.f32.partialorder %v3598_v14, 8.507059e+37 }
0x47b4   :  { %2644 = vrot.lane.b32.xlu0 %v4374_v13, %s4416_s4 }
0x47b6   :  { %v4378_v24 = vpop.eup %4377 }
0x47b7   :  { %v3590_v2 = vmul.f32 %v4378_v24, %v3588_v52  ;;  %vm3595_vm0 = vweird.f32 %v4378_v24 }
0x47b8   :  { %vm3596_vm2 = vmor %vm3594_vm1, %vm3595_vm0 }
0x47b9   :  { %v3591_v25 = vsub.f32 1.0, %v3590_v2  ;;  %v3748_v2 = vld [vmem:[%s5458_s15 + $0x18] sm:$0xff] }
0x47ba   :  { %3768 = vmatpush.msra.mxu3 %v3748_v2 }
0x47bb   :  { %v3592_v12 = vmul.f32 %v4378_v24, %v3591_v25  ;;  %v3747_v25 = vld [vmem:[%s5458_s15 + $0x10] sm:$0xff] }
0x47bc   :  { %3769 = vmatpush.msra.mxu3 %v3747_v25 }
0x47bd   :  { %v3593_v15 = vadd.f32 %v4378_v24, %v3592_v12  ;;  %v3746_v12 = vld [vmem:[%s5458_s15 + $0x8] sm:$0xff] }
0x47be   :  { %3770 = vmatpush.msra.mxu3 %v3746_v12 }
0x47bf   :  { %v3597_v22 = vsel %vm3596_vm2, %v4378_v24, %v3593_v15  ;;  %v3711_v24 = vld [vmem:[%s5456_s13] sm:$0xff] }
0x47c0   :  { %v3602_v50 = vsel %vm3599_vm3, %v3601_v58, %v3597_v22  ;;  %3737 = vmatpush.msra.mxu2 %v3711_v24  ;;  %v3986_v15 = vld [vmem:[%s5455_s12] ss:$0 sm:$0xff] }
0x47c1   :  { %v3608_v6 = vmul.f32 %v3606_v19, %v3602_v50  ;;  %v3745_v58 = vld [vmem:[%s5458_s15] sm:$0xff]  ;;  %s3785_s15 = sshll.u32 %s5460_s17, 4  ;;  %s3786_s15 = int_to_ptr.hbm [resolvable:$true] %s3785_s15 }
0x47c2   :  { %3771 = vmatpush.msra.mxu3 %v3745_v58  ;;  %v3988_v19 = vld [vmem:[%s5459_s16] ss:$0 sm:$0xff] }
0x481e   :  { %v3611_v17 = vpop.permute.xlu0 %3610 }
0x481f   :  { %v3613_v54 = vmul.f32 %v3611_v17, %v3602_v50  ;;  %v3987_v17 = vld [vmem:[%s5457_s14] ss:$0 sm:$0xff] }
0x4821   :  { %3615 = vrot.lane.b32.xlu2 %v3613_v54, %s4417_s27 }
0x4826   :  { %v2645_v28 = vpop.permute.xlu0 %2644 }
0x4827   :  { %v2647_v51 = vmul.f32 %v2645_v28, %v2611_v53 }
0x4829   :  { %3630 = vrot.lane.b32.xlu0 %v2647_v51, %s4416_s4 }
0x487b   :  { %v3616_v29 = vpop.permute.xlu2 %3615 }
0x487c   :  { %v3618_v32 = vadd.f32 %v3616_v29, %v3608_v6 }
0x487e   :  { %4379 = vtanh.f32 %v3618_v32 }
0x487f   :  { %4381 = vrcp.f32 %v4418_v56 }
0x4884   :  { %v4380_v10 = vpop.eup %4379 }
0x4885   :  { %3621 = vrot.lane.b32.xlu1 %v4380_v10, %s4416_s4  ;;  %v4382_v31 = vpop.eup %4381 }
0x4886   :  { %v3639_v26 = vmul.f32 64.0, %v4382_v31  ;;  %vm3643_vm7 = vweird.f32 %v4382_v31 }
0x4888   :  { %v3640_v20 = vsub.f32 1.0, %v3639_v26 }
0x488a   :  { %v3641_v35 = vmul.f32 %v4382_v31, %v3640_v20 }
0x488c   :  { %v3642_v34 = vadd.f32 %v4382_v31, %v3641_v35 }
0x488e   :  { %v3644_v55 = vsel %vm3643_vm7, %v4382_v31, %v3642_v34 }
0x489b   :  { %v3631_v48 = vpop.permute.xlu0 %3630 }
0x48f7   :  { %v3622_v47 = vpop.permute.xlu1 %3621 }
0x48f8   :  { %v3624_v36 = vmul.f32 %v3622_v47, %v3602_v50 }
0x48fa   :  { %3626 = vrot.lane.b32.xlu2 %v3624_v36, %s4417_s27 }
0x4954   :  { %v3627_v33 = vpop.permute.xlu2 %3626 }
0x4955   :  { %v3633_v49 = vsel %vm154_vm10, %v3627_v33, %v3631_v48 }
0x4956   :  { %v3635_v42 = vsel %vm3634_vm6, %v3633_v49, 0.0 }
0x4957   :  { %3636 = vadd.xlane.f32.xlu1 %v3635_v42 }
0x49ca   :  { %v3637_v1 = vpop.xlane.xlu1 %3636 }
0x49cb   :  { %v3645_v8 = vmul.f32 %v3644_v55, %v3637_v1 }
0x49cd   :  { %v3646_v4 = vsub.f32 %v3633_v49, %v3645_v8 }
0x49cf   :  { %v3647_v27 = vmul.f32 %v3646_v4, %v3646_v4 }
0x49d1   :  { %v3648_v0 = vsel %vm3634_vm6, %v3647_v27, 0.0 }
0x49d2   :  { %3649 = vadd.xlane.f32.xlu2 %v3648_v0 }
0x4a45   :  { %v3650_v43 = vpop.xlane.xlu2 %3649 }
0x4a46   :  { %v3651_v53 = vmul.f32 %v3650_v43, %v3644_v55 }
0x4a48   :  { %v3652_v23 = vadd.f32 1e-05, %v3651_v53 }
0x4a4a   :  { %4383 = vrsqrt.f32 %v3652_v23  ;;  %vm3659_vm9 = vweird.f32 %v3652_v23 }
0x4a50   :  { %v4384_v39 = vpop.eup %4383 }
0x4a51   :  { %v3654_v61 = vmul.f32 %v4384_v39, %v3652_v23  ;;  %vm3660_vm8 = vweird.f32 %v4384_v39 }
0x4a52   :  { %vm3661_vm11 = vmor %vm3659_vm9, %vm3660_vm8 }
0x4a53   :  { %v3655_v57 = vmul.f32 %v4384_v39, %v3654_v61 }
0x4a55   :  { %v3656_v40 = vmul.f32 0.5, %v3655_v57 }
0x4a57   :  { %v3657_v30 = vsub.f32 1.5, %v3656_v40 }
0x4a59   :  { %v3658_v62 = vmul.f32 %v4384_v39, %v3657_v30 }
0x4a5b   :  { %v3662_v5 = vsel %vm3661_vm11, %v4384_v39, %v3658_v62 }
0x4a5c   :  { %v3663_v13 = vmul.f32 %v3662_v5, %v3646_v4 }
0x4a5e   :  { %v3668_v11 = vmul.f32 %v3984_v60, %v3663_v13 }
0x4a60   :  { %v3673_v7 = vadd.f32 %v3985_v21, %v3668_v11 }
0x4a62   :  { %v3687_v52 = vrot.slane %v3673_v7, 6 }
0x4a64   :  { %3960 = vmatmul.msk.f32.vlgmr.msra.gmra.mxu1 %vm2456_vm15, %v3687_v52  ;;  %vm3776_vm15 = vcmask 58368  }
0x4ae1   :  { %v3707_v63 = vpop.f32.mrf.mxu1 }
0x4ae2   :  { %v3708_v14 = vadd.f32 %v3986_v15, %v3707_v63 }
0x4ae4   :  { %v3710_v22 = vmax.f32 %v3708_v14, 0.0 }
0x4ae6   :  { %3961 = vmatmul.msk.f32.vlgmr.msra.gmra.mxu2 %vm154_vm10, %v3710_v22 }
0x4b69   :  { %v3739_v50 = vpop.f32.mrf.mxu2 }
0x4b6a   :  { %v3740_v54 = vadd.f32 %v3987_v17, %v3739_v50 }
0x4b6c   :  { %v3743_v28 = vadd.f32 %v3740_v54, %v3687_v52 }
0x4b6e   :  { %v3744_v51 = vmax.f32 %v3743_v28, 0.0 }
0x4b70   :  { %3962 = vmatmul.msk.f32.vlgmr.msra.gmra.mxu3 %vm154_vm10, %v3744_v51 }
0x4bf3   :  { %v3773_v6 = vpop.f32.mrf.mxu3 }
0x4bf4   :  { %v3774_v29 = vadd.f32 %v3988_v19, %v3773_v6 }
0x4bf6   :  { %3777 = vst.msk [vmem:[#allocation4] sm:$0x3] %vm3776_vm15, %v3774_v29 }
0x4bf7   :  { %3788 = dma.vmem_to_hbm [thread:$0]  %s3784_s5, 32, %s3786_s15, [#allocation5]  }
0x4bf8   :  { %4413 = dma.done.wait [#allocation5], 32  }
0x4bf9   :  { %4414 = vsyncadd [#allocation5], 4294967264 }
0x4bfa   :  { %3793 = vsyncpa [#allocation5], 1 }

</bundles_post_ra>
